<compile_context>
chip_gen: v7x
topology: tpu7x:2x2x1
jax: 0.10.0
libtpu: 0.0.40
codegen_flags: <defaults>
</compile_context>

<pallas_src>
import functools
import math

import jax
import jax.numpy as jnp
from jax.experimental import pallas as pl
from jax.experimental.pallas import tpu as pltpu


# ----------------------------------------------------------------------------
# In-kernel helpers
# ----------------------------------------------------------------------------

def _layernorm(h, g, b, eps=1e-5):
    mu = jnp.mean(h, axis=-1, keepdims=True)
    var = jnp.mean((h - mu) ** 2, axis=-1, keepdims=True)
    return (h - mu) * jax.lax.rsqrt(var + eps) * g + b


def _softmax_last(s):
    s = s - jnp.max(s, axis=-1, keepdims=True)
    p = jnp.exp(s)
    return p / jnp.sum(p, axis=-1, keepdims=True)     # exact division (argmax safety)


def _rep_spec(a):
    """BlockSpec covering the whole (small) array, same block for every grid step."""
    nd = a.ndim
    return pl.BlockSpec(a.shape, lambda *_, _nd=nd: (0,) * _nd)


# ----------------------------------------------------------------------------
# Fused encoder stack: ALL encoder layers in one pallas_call (grid over batch)
# ----------------------------------------------------------------------------

def _encoder_kernel(x_ref, mask_ref, wqkv_ref, bqkv_ref, wo_ref, bo_ref,
                    ln_ref, w1_ref, b1_ref, w2_ref, b2_ref, o_ref,
                    *, n_enc, scale):
    H = x_ref.shape[-1]
    x = x_ref[0]                                                    # (S, H)
    m = mask_ref[0]                                                 # (1, S) additive
    for l in range(n_enc):
        # Merged Q/K/V projection: one (S,H)@(H,3H) matmul.
        qkv = jnp.dot(x, wqkv_ref[l], preferred_element_type=jnp.float32) + bqkv_ref[l]
        q = qkv[:, :H]
        k = qkv[:, H:2 * H]
        v = qkv[:, 2 * H:]
        # QK^T contracting on H (no in-kernel transpose).
        s = jax.lax.dot_general(q, k, (((1,), (1,)), ((), ())),
                                preferred_element_type=jnp.float32) * scale + m
        p = _softmax_last(s)
        a = jnp.dot(p, v, preferred_element_type=jnp.float32)
        attn = jnp.dot(a, wo_ref[l], preferred_element_type=jnp.float32) + bo_ref[l]
        h = _layernorm(attn + x, ln_ref[0, l], ln_ref[1, l])
        f = jnp.maximum(jnp.dot(h, w1_ref[l], preferred_element_type=jnp.float32)
                        + b1_ref[l], 0.0)
        f = jnp.dot(f, w2_ref[l], preferred_element_type=jnp.float32) + b2_ref[l]
        x = _layernorm(f + h, ln_ref[2, l], ln_ref[3, l])
    o_ref[0] = x


def encode(src_emb, mask_add, ep, *, scale):
    B, S, H = src_emb.shape
    n_enc = ep["wqkv"].shape[0]
    weights = (ep["wqkv"], ep["bqkv"], ep["wo"], ep["bo"], ep["ln"],
               ep["w1"], ep["b1"], ep["w2"], ep["b2"])
    return pl.pallas_call(
        functools.partial(_encoder_kernel, n_enc=n_enc, scale=scale),
        out_shape=jax.ShapeDtypeStruct((B, S, H), jnp.float32),
        grid=(B,),
        in_specs=[pl.BlockSpec((1, S, H), lambda b: (b, 0, 0)),
                  pl.BlockSpec((1, 1, S), lambda b: (b, 0, 0))]
                 + [_rep_spec(w) for w in weights],
        out_specs=pl.BlockSpec((1, S, H), lambda b: (b, 0, 0)),
        compiler_params=pltpu.CompilerParams(dimension_semantics=("parallel",)),
    )(src_emb, mask_add, *weights)


# ----------------------------------------------------------------------------
# Fused greedy decode: cross-K/V precompute + all decode steps in ONE kernel
# ----------------------------------------------------------------------------

def _decode_kernel(enc_ref, emb_ref, wkv_ref, bkv_ref, w_sq_ref, b_sq_ref,
                   ln_ref, w1_ref, b1_ref, w2_ref, b2_ref, fcw_ref, fcb_ref,
                   out_ref, *, n_dec, scale, sos_idx, eos_idx, max_len):
    B, Se, H = enc_ref.shape
    V = fcw_ref.shape[1]

    # Rows written after the early break (and row 0) must stay zero.
    out_ref[...] = jnp.zeros_like(out_ref)

    # Loop-invariant cross-attention K/V for all layers: one lane-dense matmul
    # (B*Se, H) @ (H, 2*n_dec*H); the result stays live in VMEM for all steps.
    e = enc_ref[...].reshape(B * Se, H)
    kv = (jnp.dot(e, wkv_ref[...], preferred_element_type=jnp.float32)
          + bkv_ref[...]).reshape(B, Se, 2 * n_dec * H)

    emb = emb_ref[...]                                              # (V, H)
    fcw = fcw_ref[...]
    fcb = fcb_ref[...]
    vocab_iota = jax.lax.broadcasted_iota(jnp.int32, (B, V), 1)

    def step(t, carry):
        tokens, done = carry                                        # (B,1) i32, () i32
        active = done == 0

        # Embedding lookup via one-hot matmul (MXU-friendly in-kernel gather).
        onehot = (tokens == vocab_iota).astype(jnp.float32)         # (B, V)
        x = jnp.dot(onehot, emb, preferred_element_type=jnp.float32)  # (B, H)

        for l in range(n_dec):
            # Self-attention over a length-1 target: softmax of a single score
            # is exactly 1, so it reduces to V-projection + output projection.
            sa = jnp.dot(x, w_sq_ref[0, l], preferred_element_type=jnp.float32) + b_sq_ref[0, l]
            sa = jnp.dot(sa, w_sq_ref[1, l], preferred_element_type=jnp.float32) + b_sq_ref[1, l]
            h = _layernorm(sa + x, ln_ref[0, l], ln_ref[1, l])
            # Cross-attention with the resident pre-computed K/V.
            q = jnp.dot(h, w_sq_ref[2, l], preferred_element_type=jnp.float32) + b_sq_ref[2, l]
            k_l = kv[:, :, (2 * l) * H:(2 * l + 1) * H]              # (B, Se, H)
            v_l = kv[:, :, (2 * l + 1) * H:(2 * l + 2) * H]
            s = jnp.einsum("bqh,bkh->bqk", q[:, None, :], k_l,
                           preferred_element_type=jnp.float32) * scale   # (B,1,Se)
            p = _softmax_last(s)
            ctx = jnp.einsum("bqk,bkh->bqh", p, v_l,
                             preferred_element_type=jnp.float32)[:, 0, :]  # (B, H)
            ca = jnp.dot(ctx, w_sq_ref[3, l], preferred_element_type=jnp.float32) + b_sq_ref[3, l]
            h = _layernorm(ca + h, ln_ref[2, l], ln_ref[3, l])
            # FFN
            f = jnp.maximum(jnp.dot(h, w1_ref[l], preferred_element_type=jnp.float32)
                            + b1_ref[l], 0.0)
            f = jnp.dot(f, w2_ref[l], preferred_element_type=jnp.float32) + b2_ref[l]
            x = _layernorm(f + h, ln_ref[4, l], ln_ref[5, l])

        pred = jnp.dot(x, fcw, preferred_element_type=jnp.float32) + fcb   # (B, V)

        # outputs[:, t] = prediction   (only while the loop has not broken)
        out_ref[t] = jnp.where(active, pred, jnp.zeros_like(pred))

        # Greedy argmax (first maximal index, matching torch/jnp argmax).
        maxv = jnp.max(pred, axis=1, keepdims=True)
        picked = jnp.min(jnp.where(pred == maxv, vocab_iota, V),
                         axis=1, keepdims=True)                     # (B, 1) int32

        new_tokens = jnp.where(active, picked, tokens)
        n_eos = jnp.sum((picked == eos_idx).astype(jnp.int32))
        new_done = jnp.where(jnp.logical_and(active, n_eos == B), jnp.int32(1), done)
        return new_tokens, new_done

    tokens0 = jnp.full((B, 1), sos_idx, dtype=jnp.int32)
    jax.lax.fori_loop(1, max_len, step, (tokens0, jnp.int32(0)))


def greedy_decode(enc_out, params, *, sos_idx, eos_idx, max_len, scale):
    B, Se, H = enc_out.shape
    dp = params["decoder"]
    V = params["fc_out_w"].shape[1]
    n_dec = dp["w1"].shape[0]
    args = (enc_out, params["embedding"], dp["wkv_c"], dp["bkv_c"],
            dp["w_sq"], dp["b_sq"], dp["ln"], dp["w1"], dp["b1"],
            dp["w2"], dp["b2"], params["fc_out_w"], params["fc_out_b"])
    out_tmb = pl.pallas_call(
        functools.partial(_decode_kernel, n_dec=n_dec, scale=scale,
                          sos_idx=sos_idx, eos_idx=eos_idx, max_len=max_len),
        out_shape=jax.ShapeDtypeStruct((max_len, B, V), jnp.float32),
        grid=(1,),
        in_specs=[_rep_spec(a) for a in args],
        out_specs=pl.BlockSpec((max_len, B, V), lambda i: (0, 0, 0)),
        compiler_params=pltpu.CompilerParams(dimension_semantics=("arbitrary",)),
    )(*args)
    return jnp.transpose(out_tmb, (1, 0, 2))                        # (B, max_len, V)


# ----------------------------------------------------------------------------
# Parameter construction (deterministic, synthetic, pre-stacked / concatenated)
# ----------------------------------------------------------------------------

def make_params(key, vocab, H, n_enc, n_dec):
    F = 4 * H
    keys = iter(jax.random.split(key, 64))
    nk = lambda: next(keys)

    def xavier(shape):
        fan_in, fan_out = shape[-2], shape[-1]
        bound = math.sqrt(6.0 / (fan_in + fan_out))
        return jax.random.uniform(nk(), shape, jnp.float32, -bound, bound)

    ones = lambda s: jnp.ones(s, jnp.float32)
    zeros = lambda s: jnp.zeros(s, jnp.float32)

    encoder = {
        "wqkv": xavier((n_enc, H, 3 * H)),           # merged Q/K/V
        "bqkv": zeros((n_enc, 1, 3 * H)),
        "wo": xavier((n_enc, H, H)), "bo": zeros((n_enc, 1, H)),
        # [ln1_g, ln1_b, ln2_g, ln2_b]
        "ln": jnp.stack([ones((n_enc, 1, H)), zeros((n_enc, 1, H)),
                         ones((n_enc, 1, H)), zeros((n_enc, 1, H))]),
        "w1": xavier((n_enc, H, F)), "b1": zeros((n_enc, 1, F)),
        "w2": xavier((n_enc, F, H)), "b2": zeros((n_enc, 1, H)),
    }

    # Decoder self-attention q/k projections are omitted: the greedy path always
    # decodes a length-1 target, so the self-attn softmax is identically 1 and
    # q/k cannot influence the output on this path.
    decoder = {
        # stacked square weights [wv_self, wo_self, wq_cross, wo_cross]
        "w_sq": xavier((4, n_dec, H, H)),
        "b_sq": zeros((4, n_dec, 1, H)),
        # [ln1_g, ln1_b, ln2_g, ln2_b, ln3_g, ln3_b]
        "ln": jnp.stack([ones((n_dec, 1, H)), zeros((n_dec, 1, H)),
                         ones((n_dec, 1, H)), zeros((n_dec, 1, H)),
                         ones((n_dec, 1, H)), zeros((n_dec, 1, H))]),
        # cross-attention K/V weights for all layers concatenated lane-wise:
        # columns [K_0 | V_0 | K_1 | V_1 | ...] -> (H, 2*n_dec*H) (=128 lanes here)
        "wkv_c": xavier((H, 2 * n_dec * H)),
        "bkv_c": zeros((1, 2 * n_dec * H)),
        "w1": xavier((n_dec, H, F)), "b1": zeros((n_dec, 1, F)),
        "w2": xavier((n_dec, F, H)), "b2": zeros((n_dec, 1, H)),
    }

    return {
        "embedding": jax.random.uniform(nk(), (vocab, H), jnp.float32, -0.1, 0.1),
        "fc_out_w": xavier((H, vocab)),
        "fc_out_b": zeros((1, vocab)),
        "encoder": encoder,
        "decoder": decoder,
    }


# ----------------------------------------------------------------------------
# Model forward (jitted; greedy tgt=None path of Transformer.forward)
# ----------------------------------------------------------------------------

def transformer_forward(params, src, *, sos_idx, eos_idx, pad_idx, max_len):
    H = params["embedding"].shape[1]
    scale = 1.0 / math.sqrt(H)

    # Embedding lookup for the source stays in XLA glue (single gather).
    src_emb = params["embedding"][src]                              # (B, S, H)
    # src pad mask as an additive (B, 1, S) mask, broadcast inside the kernel.
    mask_add = jnp.where((src == pad_idx)[:, None, :], -1e9, 0.0).astype(jnp.float32)

    enc_out = encode(src_emb, mask_add, params["encoder"], scale=scale)
    return greedy_decode(enc_out, params, sos_idx=sos_idx, eos_idx=eos_idx,
                         max_len=max_len, scale=scale)


# ----------------------------------------------------------------------------
# Main
# ----------------------------------------------------------------------------

if __name__ == "__main__":
    VOCAB = 32
    HIDDEN = 32
    N_ENC = 2
    N_DEC = 2
    SOS, EOS, PAD = 1, 2, 0
    B, S_ENC = 2, 8
    MAX_DEC_LEN = 8

    root = jax.random.PRNGKey(0)
    k_params, k_src = jax.random.split(root)
    params = make_params(k_params, VOCAB, HIDDEN, N_ENC, N_DEC)

    # Source token ids; pad the last two positions so the mask is non-trivial.
    src = jax.random.randint(k_src, (B, S_ENC), 3, VOCAB, dtype=jnp.int32)
    src = src.at[:, -2:].set(PAD)

    fwd = jax.jit(functools.partial(
        transformer_forward,
        sos_idx=SOS, eos_idx=EOS, pad_idx=PAD, max_len=MAX_DEC_LEN))

    out = jax.block_until_ready(fwd(params, src))
    assert out.shape == (B, MAX_DEC_LEN, VOCAB)
    assert bool(jnp.all(jnp.isfinite(out)))
    # TODO(synk): teacher-forcing path (tgt is not None) of the reference is not
    # exercised here; only the greedy tgt=None path is implemented.
    print("KERNEL_OK")
</pallas_src>

<mosaic_0001>
module attributes {stable_mosaic.version = 11 : i64} {
  func.func @_encoder_kernel(%arg0: i32, %arg1: memref<1x8x32xf32, #tpu.memory_space<vmem>>, %arg2: memref<1x1x8xf32, #tpu.memory_space<vmem>>, %arg3: memref<2x32x96xf32, #tpu.memory_space<vmem>>, %arg4: memref<2x1x96xf32, #tpu.memory_space<vmem>>, %arg5: memref<2x32x32xf32, #tpu.memory_space<vmem>>, %arg6: memref<2x1x32xf32, #tpu.memory_space<vmem>>, %arg7: memref<4x2x1x32xf32, #tpu.memory_space<vmem>>, %arg8: memref<2x32x128xf32, #tpu.memory_space<vmem>>, %arg9: memref<2x1x128xf32, #tpu.memory_space<vmem>>, %arg10: memref<2x128x32xf32, #tpu.memory_space<vmem>>, %arg11: memref<2x1x32xf32, #tpu.memory_space<vmem>>, %arg12: memref<1x8x32xf32, #tpu.memory_space<vmem>>) attributes {dimension_semantics = [#tpu.dimension_semantics<parallel>], iteration_bounds = array<i64: 2>, scalar_prefetch = 0 : i64, scratch_operands = 0 : i64, tpu.core_type = #tpu.core_type<tc>, window_params = [{transform_indices = @transform_0, window_bounds = array<i64: 1, 8, 32>}, {transform_indices = @transform_1, window_bounds = array<i64: 1, 1, 8>}, {pipeline_mode = #tpu.pipeline_mode<synchronous>, transform_indices = @transform_2, window_bounds = array<i64: 2, 32, 96>}, {pipeline_mode = #tpu.pipeline_mode<synchronous>, transform_indices = @transform_3, window_bounds = array<i64: 2, 1, 96>}, {pipeline_mode = #tpu.pipeline_mode<synchronous>, transform_indices = @transform_4, window_bounds = array<i64: 2, 32, 32>}, {pipeline_mode = #tpu.pipeline_mode<synchronous>, transform_indices = @transform_5, window_bounds = array<i64: 2, 1, 32>}, {pipeline_mode = #tpu.pipeline_mode<synchronous>, transform_indices = @transform_6, window_bounds = array<i64: 4, 2, 1, 32>}, {pipeline_mode = #tpu.pipeline_mode<synchronous>, transform_indices = @transform_7, window_bounds = array<i64: 2, 32, 128>}, {pipeline_mode = #tpu.pipeline_mode<synchronous>, transform_indices = @transform_8, window_bounds = array<i64: 2, 1, 128>}, {pipeline_mode = #tpu.pipeline_mode<synchronous>, transform_indices = @transform_9, window_bounds = array<i64: 2, 128, 32>}, {pipeline_mode = #tpu.pipeline_mode<synchronous>, transform_indices = @transform_10, window_bounds = array<i64: 2, 1, 32>}, {transform_indices = @transform_11, window_bounds = array<i64: 1, 8, 32>}]} {
    %c0 = arith.constant 0 : index
    %c0_0 = arith.constant 0 : index
    %c0_1 = arith.constant 0 : index
    %0 = vector.load %arg1[%c0, %c0_0, %c0_1] : memref<1x8x32xf32, #tpu.memory_space<vmem>>, vector<1x8x32xf32>
    %1 = vector.shape_cast %0 : vector<1x8x32xf32> to vector<8x32xf32>
    %c0_2 = arith.constant 0 : index
    %c0_3 = arith.constant 0 : index
    %c0_4 = arith.constant 0 : index
    %2 = vector.load %arg2[%c0_2, %c0_3, %c0_4] : memref<1x1x8xf32, #tpu.memory_space<vmem>>, vector<1x1x8xf32>
    %3 = vector.shape_cast %2 : vector<1x1x8xf32> to vector<1x8xf32>
    %c0_5 = arith.constant 0 : index
    %c0_6 = arith.constant 0 : index
    %c0_7 = arith.constant 0 : index
    %4 = vector.load %arg3[%c0_5, %c0_6, %c0_7] : memref<2x32x96xf32, #tpu.memory_space<vmem>>, vector<1x32x96xf32>
    %5 = vector.shape_cast %4 : vector<1x32x96xf32> to vector<32x96xf32>
    %cst = arith.constant dense<0.000000e+00> : vector<8x96xf32>
    %6 = tpu.matmul %1, %5, %cst {dimension_numbers = #tpu.dot_dimension_numbers<[1], [0], [0], [1], [0, 0, 1, 1], [], []>} : vector<8x32xf32>, vector<32x96xf32>, vector<8x96xf32> -> vector<8x96xf32>
    %c0_8 = arith.constant 0 : index
    %c0_9 = arith.constant 0 : index
    %c0_10 = arith.constant 0 : index
    %7 = vector.load %arg4[%c0_8, %c0_9, %c0_10] : memref<2x1x96xf32, #tpu.memory_space<vmem>>, vector<1x1x96xf32>
    %8 = vector.shape_cast %7 : vector<1x1x96xf32> to vector<1x96xf32>
    %9 = vector.broadcast %8 : vector<1x96xf32> to vector<8x96xf32>
    %10 = arith.addf %6, %9 : vector<8x96xf32>
    %11 = vector.extract_strided_slice %10 {offsets = [0, 0], sizes = [8, 32], strides = [1, 1]} : vector<8x96xf32> to vector<8x32xf32>
    %12 = vector.extract_strided_slice %10 {offsets = [0, 32], sizes = [8, 32], strides = [1, 1]} : vector<8x96xf32> to vector<8x32xf32>
    %13 = vector.extract_strided_slice %10 {offsets = [0, 64], sizes = [8, 32], strides = [1, 1]} : vector<8x96xf32> to vector<8x32xf32>
    %cst_11 = arith.constant dense<0.000000e+00> : vector<8x8xf32>
    %14 = tpu.matmul %11, %12, %cst_11 {dimension_numbers = #tpu.dot_dimension_numbers<[1], [1], [0], [0], [0, 0, 1, 0], [], []>} : vector<8x32xf32>, vector<8x32xf32>, vector<8x8xf32> -> vector<8x8xf32>
    %cst_12 = arith.constant 0.176776692 : f32
    %15 = vector.broadcast %cst_12 : f32 to vector<8x8xf32>
    %16 = arith.mulf %14, %15 : vector<8x8xf32>
    %17 = vector.broadcast %3 : vector<1x8xf32> to vector<8x8xf32>
    %18 = arith.addf %16, %17 : vector<8x8xf32>
    %cst_13 = arith.constant dense<0xFF800000> : vector<8xf32>
    %19 = vector.multi_reduction <maximumf>, %18, %cst_13 [1] : vector<8x8xf32> to vector<8xf32>
    %20 = vector.shape_cast %19 : vector<8xf32> to vector<8x1xf32>
    %21 = vector.broadcast %20 : vector<8x1xf32> to vector<8x8xf32>
    %22 = arith.subf %18, %21 : vector<8x8xf32>
    %23 = math.exp %22 : vector<8x8xf32>
    %cst_14 = arith.constant dense<0.000000e+00> : vector<8xf32>
    %24 = vector.multi_reduction <add>, %23, %cst_14 [1] : vector<8x8xf32> to vector<8xf32>
    %25 = vector.shape_cast %24 : vector<8xf32> to vector<8x1xf32>
    %26 = vector.broadcast %25 : vector<8x1xf32> to vector<8x8xf32>
    %27 = arith.divf %23, %26 : vector<8x8xf32>
    %cst_15 = arith.constant dense<0.000000e+00> : vector<8x32xf32>
    %28 = tpu.matmul %27, %13, %cst_15 {dimension_numbers = #tpu.dot_dimension_numbers<[1], [0], [0], [1], [0, 0, 1, 1], [], []>} : vector<8x8xf32>, vector<8x32xf32>, vector<8x32xf32> -> vector<8x32xf32>
    %c0_16 = arith.constant 0 : index
    %c0_17 = arith.constant 0 : index
    %c0_18 = arith.constant 0 : index
    %29 = vector.load %arg5[%c0_16, %c0_17, %c0_18] : memref<2x32x32xf32, #tpu.memory_space<vmem>>, vector<1x32x32xf32>
    %30 = vector.shape_cast %29 : vector<1x32x32xf32> to vector<32x32xf32>
    %cst_19 = arith.constant dense<0.000000e+00> : vector<8x32xf32>
    %31 = tpu.matmul %28, %30, %cst_19 {dimension_numbers = #tpu.dot_dimension_numbers<[1], [0], [0], [1], [0, 0, 1, 1], [], []>} : vector<8x32xf32>, vector<32x32xf32>, vector<8x32xf32> -> vector<8x32xf32>
    %c0_20 = arith.constant 0 : index
    %c0_21 = arith.constant 0 : index
    %c0_22 = arith.constant 0 : index
    %32 = vector.load %arg6[%c0_20, %c0_21, %c0_22] : memref<2x1x32xf32, #tpu.memory_space<vmem>>, vector<1x1x32xf32>
    %33 = vector.shape_cast %32 : vector<1x1x32xf32> to vector<1x32xf32>
    %34 = vector.broadcast %33 : vector<1x32xf32> to vector<8x32xf32>
    %35 = arith.addf %31, %34 : vector<8x32xf32>
    %36 = arith.addf %35, %1 : vector<8x32xf32>
    %c0_23 = arith.constant 0 : index
    %c0_24 = arith.constant 0 : index
    %c0_25 = arith.constant 0 : index
    %c0_26 = arith.constant 0 : index
    %37 = vector.load %arg7[%c0_23, %c0_24, %c0_25, %c0_26] : memref<4x2x1x32xf32, #tpu.memory_space<vmem>>, vector<1x1x1x32xf32>
    %38 = vector.shape_cast %37 : vector<1x1x1x32xf32> to vector<1x32xf32>
    %c1 = arith.constant 1 : index
    %c0_27 = arith.constant 0 : index
    %c0_28 = arith.constant 0 : index
    %c0_29 = arith.constant 0 : index
    %39 = vector.load %arg7[%c1, %c0_27, %c0_28, %c0_29] : memref<4x2x1x32xf32, #tpu.memory_space<vmem>>, vector<1x1x1x32xf32>
    %40 = vector.shape_cast %39 : vector<1x1x1x32xf32> to vector<1x32xf32>
    %cst_30 = arith.constant dense<0.000000e+00> : vector<8xf32>
    %41 = vector.multi_reduction <add>, %36, %cst_30 [1] : vector<8x32xf32> to vector<8xf32>
    %42 = vector.shape_cast %41 : vector<8xf32> to vector<8x1xf32>
    %cst_31 = arith.constant 3.200000e+01 : f32
    %43 = vector.broadcast %cst_31 : f32 to vector<8x1xf32>
    %44 = arith.divf %42, %43 : vector<8x1xf32>
    %45 = vector.broadcast %44 : vector<8x1xf32> to vector<8x32xf32>
    %46 = arith.subf %36, %45 : vector<8x32xf32>
    %47 = arith.mulf %46, %46 : vector<8x32xf32>
    %cst_32 = arith.constant dense<0.000000e+00> : vector<8xf32>
    %48 = vector.multi_reduction <add>, %47, %cst_32 [1] : vector<8x32xf32> to vector<8xf32>
    %49 = vector.shape_cast %48 : vector<8xf32> to vector<8x1xf32>
    %cst_33 = arith.constant 3.200000e+01 : f32
    %50 = vector.broadcast %cst_33 : f32 to vector<8x1xf32>
    %51 = arith.divf %49, %50 : vector<8x1xf32>
    %52 = vector.broadcast %44 : vector<8x1xf32> to vector<8x32xf32>
    %53 = arith.subf %36, %52 : vector<8x32xf32>
    %cst_34 = arith.constant 9.99999974E-6 : f32
    %54 = vector.broadcast %cst_34 : f32 to vector<8x1xf32>
    %55 = arith.addf %51, %54 : vector<8x1xf32>
    %56 = math.rsqrt %55 : vector<8x1xf32>
    %57 = vector.broadcast %56 : vector<8x1xf32> to vector<8x32xf32>
    %58 = arith.mulf %53, %57 : vector<8x32xf32>
    %59 = vector.broadcast %38 : vector<1x32xf32> to vector<8x32xf32>
    %60 = arith.mulf %58, %59 : vector<8x32xf32>
    %61 = vector.broadcast %40 : vector<1x32xf32> to vector<8x32xf32>
    %62 = arith.addf %60, %61 : vector<8x32xf32>
    %c0_35 = arith.constant 0 : index
    %c0_36 = arith.constant 0 : index
    %c0_37 = arith.constant 0 : index
    %63 = vector.load %arg8[%c0_35, %c0_36, %c0_37] : memref<2x32x128xf32, #tpu.memory_space<vmem>>, vector<1x32x128xf32>
    %64 = vector.shape_cast %63 : vector<1x32x128xf32> to vector<32x128xf32>
    %cst_38 = arith.constant dense<0.000000e+00> : vector<8x128xf32>
    %65 = tpu.matmul %62, %64, %cst_38 {dimension_numbers = #tpu.dot_dimension_numbers<[1], [0], [0], [1], [0, 0, 1, 1], [], []>} : vector<8x32xf32>, vector<32x128xf32>, vector<8x128xf32> -> vector<8x128xf32>
    %c0_39 = arith.constant 0 : index
    %c0_40 = arith.constant 0 : index
    %c0_41 = arith.constant 0 : index
    %66 = vector.load %arg9[%c0_39, %c0_40, %c0_41] : memref<2x1x128xf32, #tpu.memory_space<vmem>>, vector<1x1x128xf32>
    %67 = vector.shape_cast %66 : vector<1x1x128xf32> to vector<1x128xf32>
    %68 = vector.broadcast %67 : vector<1x128xf32> to vector<8x128xf32>
    %69 = arith.addf %65, %68 : vector<8x128xf32>
    %cst_42 = arith.constant 0.000000e+00 : f32
    %70 = vector.broadcast %cst_42 : f32 to vector<8x128xf32>
    %71 = arith.maximumf %69, %70 : vector<8x128xf32>
    %c0_43 = arith.constant 0 : index
    %c0_44 = arith.constant 0 : index
    %c0_45 = arith.constant 0 : index
    %72 = vector.load %arg10[%c0_43, %c0_44, %c0_45] : memref<2x128x32xf32, #tpu.memory_space<vmem>>, vector<1x128x32xf32>
    %73 = vector.shape_cast %72 : vector<1x128x32xf32> to vector<128x32xf32>
    %cst_46 = arith.constant dense<0.000000e+00> : vector<8x32xf32>
    %74 = tpu.matmul %71, %73, %cst_46 {dimension_numbers = #tpu.dot_dimension_numbers<[1], [0], [0], [1], [0, 0, 1, 1], [], []>} : vector<8x128xf32>, vector<128x32xf32>, vector<8x32xf32> -> vector<8x32xf32>
    %c0_47 = arith.constant 0 : index
    %c0_48 = arith.constant 0 : index
    %c0_49 = arith.constant 0 : index
    %75 = vector.load %arg11[%c0_47, %c0_48, %c0_49] : memref<2x1x32xf32, #tpu.memory_space<vmem>>, vector<1x1x32xf32>
    %76 = vector.shape_cast %75 : vector<1x1x32xf32> to vector<1x32xf32>
    %77 = vector.broadcast %76 : vector<1x32xf32> to vector<8x32xf32>
    %78 = arith.addf %74, %77 : vector<8x32xf32>
    %79 = arith.addf %78, %62 : vector<8x32xf32>
    %c2 = arith.constant 2 : index
    %c0_50 = arith.constant 0 : index
    %c0_51 = arith.constant 0 : index
    %c0_52 = arith.constant 0 : index
    %80 = vector.load %arg7[%c2, %c0_50, %c0_51, %c0_52] : memref<4x2x1x32xf32, #tpu.memory_space<vmem>>, vector<1x1x1x32xf32>
    %81 = vector.shape_cast %80 : vector<1x1x1x32xf32> to vector<1x32xf32>
    %c3 = arith.constant 3 : index
    %c0_53 = arith.constant 0 : index
    %c0_54 = arith.constant 0 : index
    %c0_55 = arith.constant 0 : index
    %82 = vector.load %arg7[%c3, %c0_53, %c0_54, %c0_55] : memref<4x2x1x32xf32, #tpu.memory_space<vmem>>, vector<1x1x1x32xf32>
    %83 = vector.shape_cast %82 : vector<1x1x1x32xf32> to vector<1x32xf32>
    %cst_56 = arith.constant dense<0.000000e+00> : vector<8xf32>
    %84 = vector.multi_reduction <add>, %79, %cst_56 [1] : vector<8x32xf32> to vector<8xf32>
    %85 = vector.shape_cast %84 : vector<8xf32> to vector<8x1xf32>
    %cst_57 = arith.constant 3.200000e+01 : f32
    %86 = vector.broadcast %cst_57 : f32 to vector<8x1xf32>
    %87 = arith.divf %85, %86 : vector<8x1xf32>
    %88 = vector.broadcast %87 : vector<8x1xf32> to vector<8x32xf32>
    %89 = arith.subf %79, %88 : vector<8x32xf32>
    %90 = arith.mulf %89, %89 : vector<8x32xf32>
    %cst_58 = arith.constant dense<0.000000e+00> : vector<8xf32>
    %91 = vector.multi_reduction <add>, %90, %cst_58 [1] : vector<8x32xf32> to vector<8xf32>
    %92 = vector.shape_cast %91 : vector<8xf32> to vector<8x1xf32>
    %cst_59 = arith.constant 3.200000e+01 : f32
    %93 = vector.broadcast %cst_59 : f32 to vector<8x1xf32>
    %94 = arith.divf %92, %93 : vector<8x1xf32>
    %95 = vector.broadcast %87 : vector<8x1xf32> to vector<8x32xf32>
    %96 = arith.subf %79, %95 : vector<8x32xf32>
    %cst_60 = arith.constant 9.99999974E-6 : f32
    %97 = vector.broadcast %cst_60 : f32 to vector<8x1xf32>
    %98 = arith.addf %94, %97 : vector<8x1xf32>
    %99 = math.rsqrt %98 : vector<8x1xf32>
    %100 = vector.broadcast %99 : vector<8x1xf32> to vector<8x32xf32>
    %101 = arith.mulf %96, %100 : vector<8x32xf32>
    %102 = vector.broadcast %81 : vector<1x32xf32> to vector<8x32xf32>
    %103 = arith.mulf %101, %102 : vector<8x32xf32>
    %104 = vector.broadcast %83 : vector<1x32xf32> to vector<8x32xf32>
    %105 = arith.addf %103, %104 : vector<8x32xf32>
    %c1_61 = arith.constant 1 : index
    %c0_62 = arith.constant 0 : index
    %c0_63 = arith.constant 0 : index
    %106 = vector.load %arg3[%c1_61, %c0_62, %c0_63] : memref<2x32x96xf32, #tpu.memory_space<vmem>>, vector<1x32x96xf32>
    %107 = vector.shape_cast %106 : vector<1x32x96xf32> to vector<32x96xf32>
    %cst_64 = arith.constant dense<0.000000e+00> : vector<8x96xf32>
    %108 = tpu.matmul %105, %107, %cst_64 {dimension_numbers = #tpu.dot_dimension_numbers<[1], [0], [0], [1], [0, 0, 1, 1], [], []>} : vector<8x32xf32>, vector<32x96xf32>, vector<8x96xf32> -> vector<8x96xf32>
    %c1_65 = arith.constant 1 : index
    %c0_66 = arith.constant 0 : index
    %c0_67 = arith.constant 0 : index
    %109 = vector.load %arg4[%c1_65, %c0_66, %c0_67] : memref<2x1x96xf32, #tpu.memory_space<vmem>>, vector<1x1x96xf32>
    %110 = vector.shape_cast %109 : vector<1x1x96xf32> to vector<1x96xf32>
    %111 = vector.broadcast %110 : vector<1x96xf32> to vector<8x96xf32>
    %112 = arith.addf %108, %111 : vector<8x96xf32>
    %113 = vector.extract_strided_slice %112 {offsets = [0, 0], sizes = [8, 32], strides = [1, 1]} : vector<8x96xf32> to vector<8x32xf32>
    %114 = vector.extract_strided_slice %112 {offsets = [0, 32], sizes = [8, 32], strides = [1, 1]} : vector<8x96xf32> to vector<8x32xf32>
    %115 = vector.extract_strided_slice %112 {offsets = [0, 64], sizes = [8, 32], strides = [1, 1]} : vector<8x96xf32> to vector<8x32xf32>
    %cst_68 = arith.constant dense<0.000000e+00> : vector<8x8xf32>
    %116 = tpu.matmul %113, %114, %cst_68 {dimension_numbers = #tpu.dot_dimension_numbers<[1], [1], [0], [0], [0, 0, 1, 0], [], []>} : vector<8x32xf32>, vector<8x32xf32>, vector<8x8xf32> -> vector<8x8xf32>
    %cst_69 = arith.constant 0.176776692 : f32
    %117 = vector.broadcast %cst_69 : f32 to vector<8x8xf32>
    %118 = arith.mulf %116, %117 : vector<8x8xf32>
    %119 = vector.broadcast %3 : vector<1x8xf32> to vector<8x8xf32>
    %120 = arith.addf %118, %119 : vector<8x8xf32>
    %cst_70 = arith.constant dense<0xFF800000> : vector<8xf32>
    %121 = vector.multi_reduction <maximumf>, %120, %cst_70 [1] : vector<8x8xf32> to vector<8xf32>
    %122 = vector.shape_cast %121 : vector<8xf32> to vector<8x1xf32>
    %123 = vector.broadcast %122 : vector<8x1xf32> to vector<8x8xf32>
    %124 = arith.subf %120, %123 : vector<8x8xf32>
    %125 = math.exp %124 : vector<8x8xf32>
    %cst_71 = arith.constant dense<0.000000e+00> : vector<8xf32>
    %126 = vector.multi_reduction <add>, %125, %cst_71 [1] : vector<8x8xf32> to vector<8xf32>
    %127 = vector.shape_cast %126 : vector<8xf32> to vector<8x1xf32>
    %128 = vector.broadcast %127 : vector<8x1xf32> to vector<8x8xf32>
    %129 = arith.divf %125, %128 : vector<8x8xf32>
    %cst_72 = arith.constant dense<0.000000e+00> : vector<8x32xf32>
    %130 = tpu.matmul %129, %115, %cst_72 {dimension_numbers = #tpu.dot_dimension_numbers<[1], [0], [0], [1], [0, 0, 1, 1], [], []>} : vector<8x8xf32>, vector<8x32xf32>, vector<8x32xf32> -> vector<8x32xf32>
    %c1_73 = arith.constant 1 : index
    %c0_74 = arith.constant 0 : index
    %c0_75 = arith.constant 0 : index
    %131 = vector.load %arg5[%c1_73, %c0_74, %c0_75] : memref<2x32x32xf32, #tpu.memory_space<vmem>>, vector<1x32x32xf32>
    %132 = vector.shape_cast %131 : vector<1x32x32xf32> to vector<32x32xf32>
    %cst_76 = arith.constant dense<0.000000e+00> : vector<8x32xf32>
    %133 = tpu.matmul %130, %132, %cst_76 {dimension_numbers = #tpu.dot_dimension_numbers<[1], [0], [0], [1], [0, 0, 1, 1], [], []>} : vector<8x32xf32>, vector<32x32xf32>, vector<8x32xf32> -> vector<8x32xf32>
    %c1_77 = arith.constant 1 : index
    %c0_78 = arith.constant 0 : index
    %c0_79 = arith.constant 0 : index
    %134 = vector.load %arg6[%c1_77, %c0_78, %c0_79] : memref<2x1x32xf32, #tpu.memory_space<vmem>>, vector<1x1x32xf32>
    %135 = vector.shape_cast %134 : vector<1x1x32xf32> to vector<1x32xf32>
    %136 = vector.broadcast %135 : vector<1x32xf32> to vector<8x32xf32>
    %137 = arith.addf %133, %136 : vector<8x32xf32>
    %138 = arith.addf %137, %105 : vector<8x32xf32>
    %c0_80 = arith.constant 0 : index
    %c1_81 = arith.constant 1 : index
    %c0_82 = arith.constant 0 : index
    %c0_83 = arith.constant 0 : index
    %139 = vector.load %arg7[%c0_80, %c1_81, %c0_82, %c0_83] : memref<4x2x1x32xf32, #tpu.memory_space<vmem>>, vector<1x1x1x32xf32>
    %140 = vector.shape_cast %139 : vector<1x1x1x32xf32> to vector<1x32xf32>
    %c1_84 = arith.constant 1 : index
    %c1_85 = arith.constant 1 : index
    %c0_86 = arith.constant 0 : index
    %c0_87 = arith.constant 0 : index
    %141 = vector.load %arg7[%c1_84, %c1_85, %c0_86, %c0_87] : memref<4x2x1x32xf32, #tpu.memory_space<vmem>>, vector<1x1x1x32xf32>
    %142 = vector.shape_cast %141 : vector<1x1x1x32xf32> to vector<1x32xf32>
    %cst_88 = arith.constant dense<0.000000e+00> : vector<8xf32>
    %143 = vector.multi_reduction <add>, %138, %cst_88 [1] : vector<8x32xf32> to vector<8xf32>
    %144 = vector.shape_cast %143 : vector<8xf32> to vector<8x1xf32>
    %cst_89 = arith.constant 3.200000e+01 : f32
    %145 = vector.broadcast %cst_89 : f32 to vector<8x1xf32>
    %146 = arith.divf %144, %145 : vector<8x1xf32>
    %147 = vector.broadcast %146 : vector<8x1xf32> to vector<8x32xf32>
    %148 = arith.subf %138, %147 : vector<8x32xf32>
    %149 = arith.mulf %148, %148 : vector<8x32xf32>
    %cst_90 = arith.constant dense<0.000000e+00> : vector<8xf32>
    %150 = vector.multi_reduction <add>, %149, %cst_90 [1] : vector<8x32xf32> to vector<8xf32>
    %151 = vector.shape_cast %150 : vector<8xf32> to vector<8x1xf32>
    %cst_91 = arith.constant 3.200000e+01 : f32
    %152 = vector.broadcast %cst_91 : f32 to vector<8x1xf32>
    %153 = arith.divf %151, %152 : vector<8x1xf32>
    %154 = vector.broadcast %146 : vector<8x1xf32> to vector<8x32xf32>
    %155 = arith.subf %138, %154 : vector<8x32xf32>
    %cst_92 = arith.constant 9.99999974E-6 : f32
    %156 = vector.broadcast %cst_92 : f32 to vector<8x1xf32>
    %157 = arith.addf %153, %156 : vector<8x1xf32>
    %158 = math.rsqrt %157 : vector<8x1xf32>
    %159 = vector.broadcast %158 : vector<8x1xf32> to vector<8x32xf32>
    %160 = arith.mulf %155, %159 : vector<8x32xf32>
    %161 = vector.broadcast %140 : vector<1x32xf32> to vector<8x32xf32>
    %162 = arith.mulf %160, %161 : vector<8x32xf32>
    %163 = vector.broadcast %142 : vector<1x32xf32> to vector<8x32xf32>
    %164 = arith.addf %162, %163 : vector<8x32xf32>
    %c1_93 = arith.constant 1 : index
    %c0_94 = arith.constant 0 : index
    %c0_95 = arith.constant 0 : index
    %165 = vector.load %arg8[%c1_93, %c0_94, %c0_95] : memref<2x32x128xf32, #tpu.memory_space<vmem>>, vector<1x32x128xf32>
    %166 = vector.shape_cast %165 : vector<1x32x128xf32> to vector<32x128xf32>
    %cst_96 = arith.constant dense<0.000000e+00> : vector<8x128xf32>
    %167 = tpu.matmul %164, %166, %cst_96 {dimension_numbers = #tpu.dot_dimension_numbers<[1], [0], [0], [1], [0, 0, 1, 1], [], []>} : vector<8x32xf32>, vector<32x128xf32>, vector<8x128xf32> -> vector<8x128xf32>
    %c1_97 = arith.constant 1 : index
    %c0_98 = arith.constant 0 : index
    %c0_99 = arith.constant 0 : index
    %168 = vector.load %arg9[%c1_97, %c0_98, %c0_99] : memref<2x1x128xf32, #tpu.memory_space<vmem>>, vector<1x1x128xf32>
    %169 = vector.shape_cast %168 : vector<1x1x128xf32> to vector<1x128xf32>
    %170 = vector.broadcast %169 : vector<1x128xf32> to vector<8x128xf32>
    %171 = arith.addf %167, %170 : vector<8x128xf32>
    %cst_100 = arith.constant 0.000000e+00 : f32
    %172 = vector.broadcast %cst_100 : f32 to vector<8x128xf32>
    %173 = arith.maximumf %171, %172 : vector<8x128xf32>
    %c1_101 = arith.constant 1 : index
    %c0_102 = arith.constant 0 : index
    %c0_103 = arith.constant 0 : index
    %174 = vector.load %arg10[%c1_101, %c0_102, %c0_103] : memref<2x128x32xf32, #tpu.memory_space<vmem>>, vector<1x128x32xf32>
    %175 = vector.shape_cast %174 : vector<1x128x32xf32> to vector<128x32xf32>
    %cst_104 = arith.constant dense<0.000000e+00> : vector<8x32xf32>
    %176 = tpu.matmul %173, %175, %cst_104 {dimension_numbers = #tpu.dot_dimension_numbers<[1], [0], [0], [1], [0, 0, 1, 1], [], []>} : vector<8x128xf32>, vector<128x32xf32>, vector<8x32xf32> -> vector<8x32xf32>
    %c1_105 = arith.constant 1 : index
    %c0_106 = arith.constant 0 : index
    %c0_107 = arith.constant 0 : index
    %177 = vector.load %arg11[%c1_105, %c0_106, %c0_107] : memref<2x1x32xf32, #tpu.memory_space<vmem>>, vector<1x1x32xf32>
    %178 = vector.shape_cast %177 : vector<1x1x32xf32> to vector<1x32xf32>
    %179 = vector.broadcast %178 : vector<1x32xf32> to vector<8x32xf32>
    %180 = arith.addf %176, %179 : vector<8x32xf32>
    %181 = arith.addf %180, %164 : vector<8x32xf32>
    %c2_108 = arith.constant 2 : index
    %c1_109 = arith.constant 1 : index
    %c0_110 = arith.constant 0 : index
    %c0_111 = arith.constant 0 : index
    %182 = vector.load %arg7[%c2_108, %c1_109, %c0_110, %c0_111] : memref<4x2x1x32xf32, #tpu.memory_space<vmem>>, vector<1x1x1x32xf32>
    %183 = vector.shape_cast %182 : vector<1x1x1x32xf32> to vector<1x32xf32>
    %c3_112 = arith.constant 3 : index
    %c1_113 = arith.constant 1 : index
    %c0_114 = arith.constant 0 : index
    %c0_115 = arith.constant 0 : index
    %184 = vector.load %arg7[%c3_112, %c1_113, %c0_114, %c0_115] : memref<4x2x1x32xf32, #tpu.memory_space<vmem>>, vector<1x1x1x32xf32>
    %185 = vector.shape_cast %184 : vector<1x1x1x32xf32> to vector<1x32xf32>
    %cst_116 = arith.constant dense<0.000000e+00> : vector<8xf32>
    %186 = vector.multi_reduction <add>, %181, %cst_116 [1] : vector<8x32xf32> to vector<8xf32>
    %187 = vector.shape_cast %186 : vector<8xf32> to vector<8x1xf32>
    %cst_117 = arith.constant 3.200000e+01 : f32
    %188 = vector.broadcast %cst_117 : f32 to vector<8x1xf32>
    %189 = arith.divf %187, %188 : vector<8x1xf32>
    %190 = vector.broadcast %189 : vector<8x1xf32> to vector<8x32xf32>
    %191 = arith.subf %181, %190 : vector<8x32xf32>
    %192 = arith.mulf %191, %191 : vector<8x32xf32>
    %cst_118 = arith.constant dense<0.000000e+00> : vector<8xf32>
    %193 = vector.multi_reduction <add>, %192, %cst_118 [1] : vector<8x32xf32> to vector<8xf32>
    %194 = vector.shape_cast %193 : vector<8xf32> to vector<8x1xf32>
    %cst_119 = arith.constant 3.200000e+01 : f32
    %195 = vector.broadcast %cst_119 : f32 to vector<8x1xf32>
    %196 = arith.divf %194, %195 : vector<8x1xf32>
    %197 = vector.broadcast %189 : vector<8x1xf32> to vector<8x32xf32>
    %198 = arith.subf %181, %197 : vector<8x32xf32>
    %cst_120 = arith.constant 9.99999974E-6 : f32
    %199 = vector.broadcast %cst_120 : f32 to vector<8x1xf32>
    %200 = arith.addf %196, %199 : vector<8x1xf32>
    %201 = math.rsqrt %200 : vector<8x1xf32>
    %202 = vector.broadcast %201 : vector<8x1xf32> to vector<8x32xf32>
    %203 = arith.mulf %198, %202 : vector<8x32xf32>
    %204 = vector.broadcast %183 : vector<1x32xf32> to vector<8x32xf32>
    %205 = arith.mulf %203, %204 : vector<8x32xf32>
    %206 = vector.broadcast %185 : vector<1x32xf32> to vector<8x32xf32>
    %207 = arith.addf %205, %206 : vector<8x32xf32>
    %c0_121 = arith.constant 0 : index
    %c0_122 = arith.constant 0 : index
    %c0_123 = arith.constant 0 : index
    %208 = vector.load %arg12[%c0_121, %c0_122, %c0_123] : memref<1x8x32xf32, #tpu.memory_space<vmem>>, vector<1x8x32xf32>
    %209 = vector.shape_cast %208 : vector<1x8x32xf32> to vector<8x32xf32>
    %210 = vector.shape_cast %207 : vector<8x32xf32> to vector<1x8x32xf32>
    tpu.vector_store %arg12[%c0_121, %c0_122, %c0_123], %210 {strides = array<i32>} : memref<1x8x32xf32, #tpu.memory_space<vmem>>, vector<1x8x32xf32>,
    return
  }
  func.func @transform_0(%arg0: i32) -> (i32, i32, i32) {
    %c0_i32 = arith.constant 0 : i32
    %c0_i32_0 = arith.constant 0 : i32
    %c0_i32_1 = arith.constant 0 : i32
    return %arg0, %c0_i32, %c0_i32_0 : i32, i32, i32
  }
  func.func @transform_1(%arg0: i32) -> (i32, i32, i32) {
    %c0_i32 = arith.constant 0 : i32
    %c0_i32_0 = arith.constant 0 : i32
    %c0_i32_1 = arith.constant 0 : i32
    return %arg0, %c0_i32, %c0_i32_0 : i32, i32, i32
  }
  func.func @transform_2(%arg0: i32) -> (i32, i32, i32) {
    %c0_i32 = arith.constant 0 : i32
    %c0_i32_0 = arith.constant 0 : i32
    %c0_i32_1 = arith.constant 0 : i32
    %c0_i32_2 = arith.constant 0 : i32
    return %c0_i32, %c0_i32_0, %c0_i32_1 : i32, i32, i32
  }
  func.func @transform_3(%arg0: i32) -> (i32, i32, i32) {
    %c0_i32 = arith.constant 0 : i32
    %c0_i32_0 = arith.constant 0 : i32
    %c0_i32_1 = arith.constant 0 : i32
    %c0_i32_2 = arith.constant 0 : i32
    return %c0_i32, %c0_i32_0, %c0_i32_1 : i32, i32, i32
  }
  func.func @transform_4(%arg0: i32) -> (i32, i32, i32) {
    %c0_i32 = arith.constant 0 : i32
    %c0_i32_0 = arith.constant 0 : i32
    %c0_i32_1 = arith.constant 0 : i32
    %c0_i32_2 = arith.constant 0 : i32
    return %c0_i32, %c0_i32_0, %c0_i32_1 : i32, i32, i32
  }
  func.func @transform_5(%arg0: i32) -> (i32, i32, i32) {
    %c0_i32 = arith.constant 0 : i32
    %c0_i32_0 = arith.constant 0 : i32
    %c0_i32_1 = arith.constant 0 : i32
    %c0_i32_2 = arith.constant 0 : i32
    return %c0_i32, %c0_i32_0, %c0_i32_1 : i32, i32, i32
  }
  func.func @transform_6(%arg0: i32) -> (i32, i32, i32, i32) {
    %c0_i32 = arith.constant 0 : i32
    %c0_i32_0 = arith.constant 0 : i32
    %c0_i32_1 = arith.constant 0 : i32
    %c0_i32_2 = arith.constant 0 : i32
    %c0_i32_3 = arith.constant 0 : i32
    return %c0_i32, %c0_i32_0, %c0_i32_1, %c0_i32_2 : i32, i32, i32, i32
  }
  func.func @transform_7(%arg0: i32) -> (i32, i32, i32) {
    %c0_i32 = arith.constant 0 : i32
    %c0_i32_0 = arith.constant 0 : i32
    %c0_i32_1 = arith.constant 0 : i32
    %c0_i32_2 = arith.constant 0 : i32
    return %c0_i32, %c0_i32_0, %c0_i32_1 : i32, i32, i32
  }
  func.func @transform_8(%arg0: i32) -> (i32, i32, i32) {
    %c0_i32 = arith.constant 0 : i32
    %c0_i32_0 = arith.constant 0 : i32
    %c0_i32_1 = arith.constant 0 : i32
    %c0_i32_2 = arith.constant 0 : i32
    return %c0_i32, %c0_i32_0, %c0_i32_1 : i32, i32, i32
  }
  func.func @transform_9(%arg0: i32) -> (i32, i32, i32) {
    %c0_i32 = arith.constant 0 : i32
    %c0_i32_0 = arith.constant 0 : i32
    %c0_i32_1 = arith.constant 0 : i32
    %c0_i32_2 = arith.constant 0 : i32
    return %c0_i32, %c0_i32_0, %c0_i32_1 : i32, i32, i32
  }
  func.func @transform_10(%arg0: i32) -> (i32, i32, i32) {
    %c0_i32 = arith.constant 0 : i32
    %c0_i32_0 = arith.constant 0 : i32
    %c0_i32_1 = arith.constant 0 : i32
    %c0_i32_2 = arith.constant 0 : i32
    return %c0_i32, %c0_i32_0, %c0_i32_1 : i32, i32, i32
  }
  func.func @transform_11(%arg0: i32) -> (i32, i32, i32) {
    %c0_i32 = arith.constant 0 : i32
    %c0_i32_0 = arith.constant 0 : i32
    %c0_i32_1 = arith.constant 0 : i32
    return %arg0, %c0_i32, %c0_i32_0 : i32, i32, i32
  }
}

module attributes {stable_mosaic.version = 11 : i64} {
  func.func @_decode_kernel(%arg0: i32, %arg1: memref<2x8x32xf32, #tpu.memory_space<vmem>>, %arg2: memref<32x32xf32, #tpu.memory_space<vmem>>, %arg3: memref<32x128xf32, #tpu.memory_space<vmem>>, %arg4: memref<1x128xf32, #tpu.memory_space<vmem>>, %arg5: memref<4x2x32x32xf32, #tpu.memory_space<vmem>>, %arg6: memref<4x2x1x32xf32, #tpu.memory_space<vmem>>, %arg7: memref<6x2x1x32xf32, #tpu.memory_space<vmem>>, %arg8: memref<2x32x128xf32, #tpu.memory_space<vmem>>, %arg9: memref<2x1x128xf32, #tpu.memory_space<vmem>>, %arg10: memref<2x128x32xf32, #tpu.memory_space<vmem>>, %arg11: memref<2x1x32xf32, #tpu.memory_space<vmem>>, %arg12: memref<32x32xf32, #tpu.memory_space<vmem>>, %arg13: memref<1x32xf32, #tpu.memory_space<vmem>>, %arg14: memref<8x2x32xf32, #tpu.memory_space<vmem>>) attributes {dimension_semantics = [#tpu.dimension_semantics<arbitrary>], iteration_bounds = array<i64: 1>, scalar_prefetch = 0 : i64, scratch_operands = 0 : i64, tpu.core_type = #tpu.core_type<tc>, window_params = [{pipeline_mode = #tpu.pipeline_mode<synchronous>, transform_indices = @transform_0, window_bounds = array<i64: 2, 8, 32>}, {pipeline_mode = #tpu.pipeline_mode<synchronous>, transform_indices = @transform_1, window_bounds = array<i64: 32, 32>}, {pipeline_mode = #tpu.pipeline_mode<synchronous>, transform_indices = @transform_2, window_bounds = array<i64: 32, 128>}, {pipeline_mode = #tpu.pipeline_mode<synchronous>, transform_indices = @transform_3, window_bounds = array<i64: 1, 128>}, {pipeline_mode = #tpu.pipeline_mode<synchronous>, transform_indices = @transform_4, window_bounds = array<i64: 4, 2, 32, 32>}, {pipeline_mode = #tpu.pipeline_mode<synchronous>, transform_indices = @transform_5, window_bounds = array<i64: 4, 2, 1, 32>}, {pipeline_mode = #tpu.pipeline_mode<synchronous>, transform_indices = @transform_6, window_bounds = array<i64: 6, 2, 1, 32>}, {pipeline_mode = #tpu.pipeline_mode<synchronous>, transform_indices = @transform_7, window_bounds = array<i64: 2, 32, 128>}, {pipeline_mode = #tpu.pipeline_mode<synchronous>, transform_indices = @transform_8, window_bounds = array<i64: 2, 1, 128>}, {pipeline_mode = #tpu.pipeline_mode<synchronous>, transform_indices = @transform_9, window_bounds = array<i64: 2, 128, 32>}, {pipeline_mode = #tpu.pipeline_mode<synchronous>, transform_indices = @transform_10, window_bounds = array<i64: 2, 1, 32>}, {pipeline_mode = #tpu.pipeline_mode<synchronous>, transform_indices = @transform_11, window_bounds = array<i64: 32, 32>}, {pipeline_mode = #tpu.pipeline_mode<synchronous>, transform_indices = @transform_12, window_bounds = array<i64: 1, 32>}, {pipeline_mode = #tpu.pipeline_mode<synchronous>, transform_indices = @transform_13, window_bounds = array<i64: 8, 2, 32>}]} {
    %cst = arith.constant 0.000000e+00 : f32
    %0 = vector.broadcast %cst : f32 to vector<8x2x32xf32>
    %c0 = arith.constant 0 : index
    %c0_0 = arith.constant 0 : index
    %c0_1 = arith.constant 0 : index
    %1 = vector.load %arg14[%c0, %c0_0, %c0_1] : memref<8x2x32xf32, #tpu.memory_space<vmem>>, vector<8x2x32xf32>
    tpu.vector_store %arg14[%c0, %c0_0, %c0_1], %0 {strides = array<i32>} : memref<8x2x32xf32, #tpu.memory_space<vmem>>, vector<8x2x32xf32>,
    %c0_2 = arith.constant 0 : index
    %c0_3 = arith.constant 0 : index
    %c0_4 = arith.constant 0 : index
    %2 = vector.load %arg1[%c0_2, %c0_3, %c0_4] : memref<2x8x32xf32, #tpu.memory_space<vmem>>, vector<2x8x32xf32>
    %3 = vector.shape_cast %2 : vector<2x8x32xf32> to vector<16x32xf32>
    %c0_5 = arith.constant 0 : index
    %c0_6 = arith.constant 0 : index
    %4 = vector.load %arg3[%c0_5, %c0_6] : memref<32x128xf32, #tpu.memory_space<vmem>>, vector<32x128xf32>
    %cst_7 = arith.constant dense<0.000000e+00> : vector<16x128xf32>
    %5 = tpu.matmul %3, %4, %cst_7 {dimension_numbers = #tpu.dot_dimension_numbers<[1], [0], [0], [1], [0, 0, 1, 1], [], []>} : vector<16x32xf32>, vector<32x128xf32>, vector<16x128xf32> -> vector<16x128xf32>
    %c0_8 = arith.constant 0 : index
    %c0_9 = arith.constant 0 : index
    %6 = vector.load %arg4[%c0_8, %c0_9] : memref<1x128xf32, #tpu.memory_space<vmem>>, vector<1x128xf32>
    %7 = vector.broadcast %6 : vector<1x128xf32> to vector<16x128xf32>
    %8 = arith.addf %5, %7 : vector<16x128xf32>
    %9 = vector.shape_cast %8 : vector<16x128xf32> to vector<2x8x128xf32>
    %c0_10 = arith.constant 0 : index
    %c0_11 = arith.constant 0 : index
    %10 = vector.load %arg2[%c0_10, %c0_11] : memref<32x32xf32, #tpu.memory_space<vmem>>, vector<32x32xf32>
    %c0_12 = arith.constant 0 : index
    %c0_13 = arith.constant 0 : index
    %11 = vector.load %arg12[%c0_12, %c0_13] : memref<32x32xf32, #tpu.memory_space<vmem>>, vector<32x32xf32>
    %c0_14 = arith.constant 0 : index
    %c0_15 = arith.constant 0 : index
    %12 = vector.load %arg13[%c0_14, %c0_15] : memref<1x32xf32, #tpu.memory_space<vmem>>, vector<1x32xf32>
    %13 = tpu.iota {dimensions = array<i32: 1>} : vector<2x32xi32>
    %c1_i32 = arith.constant 1 : i32
    %14 = vector.broadcast %c1_i32 : i32 to vector<2x1xi32>
    %c0_i32 = arith.constant 0 : i32
    %c1_i32_16 = arith.constant 1 : i32
    %c7_i32 = arith.constant 7 : i32
    %15 = arith.addi %c1_i32_16, %c7_i32 : i32
    %c1_i32_17 = arith.constant 1 : i32
    %16:2 = scf.for %arg15 = %c1_i32_16 to %15 step %c1_i32_17 iter_args(%arg16 = %14, %arg17 = %c0_i32) -> (vector<2x1xi32>, i32)  : i32 {
      %c0_i32_19 = arith.constant 0 : i32
      %17 = arith.cmpi eq, %arg17, %c0_i32_19 : i32
      %18 = vector.broadcast %arg16 : vector<2x1xi32> to vector<2x32xi32>
      %19 = arith.cmpi eq, %18, %13 : vector<2x32xi32>
      %20 = arith.extui %19 : vector<2x32xi1> to vector<2x32xi32>
      %21 = arith.sitofp %20 : vector<2x32xi32> to vector<2x32xf32>
      %cst_20 = arith.constant dense<0.000000e+00> : vector<2x32xf32>
      %22 = tpu.matmul %21, %10, %cst_20 {dimension_numbers = #tpu.dot_dimension_numbers<[1], [0], [0], [1], [0, 0, 1, 1], [], []>} : vector<2x32xf32>, vector<32x32xf32>, vector<2x32xf32> -> vector<2x32xf32>
      %c0_21 = arith.constant 0 : index
      %c0_22 = arith.constant 0 : index
      %c0_23 = arith.constant 0 : index
      %c0_24 = arith.constant 0 : index
      %23 = vector.load %arg5[%c0_21, %c0_22, %c0_23, %c0_24] : memref<4x2x32x32xf32, #tpu.memory_space<vmem>>, vector<1x1x32x32xf32>
      %24 = vector.shape_cast %23 : vector<1x1x32x32xf32> to vector<32x32xf32>
      %cst_25 = arith.constant dense<0.000000e+00> : vector<2x32xf32>
      %25 = tpu.matmul %22, %24, %cst_25 {dimension_numbers = #tpu.dot_dimension_numbers<[1], [0], [0], [1], [0, 0, 1, 1], [], []>} : vector<2x32xf32>, vector<32x32xf32>, vector<2x32xf32> -> vector<2x32xf32>
      %c0_26 = arith.constant 0 : index
      %c0_27 = arith.constant 0 : index
      %c0_28 = arith.constant 0 : index
      %c0_29 = arith.constant 0 : index
      %26 = vector.load %arg6[%c0_26, %c0_27, %c0_28, %c0_29] : memref<4x2x1x32xf32, #tpu.memory_space<vmem>>, vector<1x1x1x32xf32>
      %27 = vector.shape_cast %26 : vector<1x1x1x32xf32> to vector<1x32xf32>
      %28 = vector.broadcast %27 : vector<1x32xf32> to vector<2x32xf32>
      %29 = arith.addf %25, %28 : vector<2x32xf32>
      %c1 = arith.constant 1 : index
      %c0_30 = arith.constant 0 : index
      %c0_31 = arith.constant 0 : index
      %c0_32 = arith.constant 0 : index
      %30 = vector.load %arg5[%c1, %c0_30, %c0_31, %c0_32] : memref<4x2x32x32xf32, #tpu.memory_space<vmem>>, vector<1x1x32x32xf32>
      %31 = vector.shape_cast %30 : vector<1x1x32x32xf32> to vector<32x32xf32>
      %cst_33 = arith.constant dense<0.000000e+00> : vector<2x32xf32>
      %32 = tpu.matmul %29, %31, %cst_33 {dimension_numbers = #tpu.dot_dimension_numbers<[1], [0], [0], [1], [0, 0, 1, 1], [], []>} : vector<2x32xf32>, vector<32x32xf32>, vector<2x32xf32> -> vector<2x32xf32>
      %c1_34 = arith.constant 1 : index
      %c0_35 = arith.constant 0 : index
      %c0_36 = arith.constant 0 : index
      %c0_37 = arith.constant 0 : index
      %33 = vector.load %arg6[%c1_34, %c0_35, %c0_36, %c0_37] : memref<4x2x1x32xf32, #tpu.memory_space<vmem>>, vector<1x1x1x32xf32>
      %34 = vector.shape_cast %33 : vector<1x1x1x32xf32> to vector<1x32xf32>
      %35 = vector.broadcast %34 : vector<1x32xf32> to vector<2x32xf32>
      %36 = arith.addf %32, %35 : vector<2x32xf32>
      %37 = arith.addf %36, %22 : vector<2x32xf32>
      %c0_38 = arith.constant 0 : index
      %c0_39 = arith.constant 0 : index
      %c0_40 = arith.constant 0 : index
      %c0_41 = arith.constant 0 : index
      %38 = vector.load %arg7[%c0_38, %c0_39, %c0_40, %c0_41] : memref<6x2x1x32xf32, #tpu.memory_space<vmem>>, vector<1x1x1x32xf32>
      %39 = vector.shape_cast %38 : vector<1x1x1x32xf32> to vector<1x32xf32>
      %c1_42 = arith.constant 1 : index
      %c0_43 = arith.constant 0 : index
      %c0_44 = arith.constant 0 : index
      %c0_45 = arith.constant 0 : index
      %40 = vector.load %arg7[%c1_42, %c0_43, %c0_44, %c0_45] : memref<6x2x1x32xf32, #tpu.memory_space<vmem>>, vector<1x1x1x32xf32>
      %41 = vector.shape_cast %40 : vector<1x1x1x32xf32> to vector<1x32xf32>
      %cst_46 = arith.constant dense<0.000000e+00> : vector<2xf32>
      %42 = vector.multi_reduction <add>, %37, %cst_46 [1] : vector<2x32xf32> to vector<2xf32>
      %43 = vector.shape_cast %42 : vector<2xf32> to vector<2x1xf32>
      %cst_47 = arith.constant 3.200000e+01 : f32
      %44 = vector.broadcast %cst_47 : f32 to vector<2x1xf32>
      %45 = arith.divf %43, %44 : vector<2x1xf32>
      %46 = vector.broadcast %45 : vector<2x1xf32> to vector<2x32xf32>
      %47 = arith.subf %37, %46 : vector<2x32xf32>
      %48 = arith.mulf %47, %47 : vector<2x32xf32>
      %cst_48 = arith.constant dense<0.000000e+00> : vector<2xf32>
      %49 = vector.multi_reduction <add>, %48, %cst_48 [1] : vector<2x32xf32> to vector<2xf32>
      %50 = vector.shape_cast %49 : vector<2xf32> to vector<2x1xf32>
      %cst_49 = arith.constant 3.200000e+01 : f32
      %51 = vector.broadcast %cst_49 : f32 to vector<2x1xf32>
      %52 = arith.divf %50, %51 : vector<2x1xf32>
      %53 = vector.broadcast %45 : vector<2x1xf32> to vector<2x32xf32>
      %54 = arith.subf %37, %53 : vector<2x32xf32>
      %cst_50 = arith.constant 9.99999974E-6 : f32
      %55 = vector.broadcast %cst_50 : f32 to vector<2x1xf32>
      %56 = arith.addf %52, %55 : vector<2x1xf32>
      %57 = math.rsqrt %56 : vector<2x1xf32>
      %58 = vector.broadcast %57 : vector<2x1xf32> to vector<2x32xf32>
      %59 = arith.mulf %54, %58 : vector<2x32xf32>
      %60 = vector.broadcast %39 : vector<1x32xf32> to vector<2x32xf32>
      %61 = arith.mulf %59, %60 : vector<2x32xf32>
      %62 = vector.broadcast %41 : vector<1x32xf32> to vector<2x32xf32>
      %63 = arith.addf %61, %62 : vector<2x32xf32>
      %c2 = arith.constant 2 : index
      %c0_51 = arith.constant 0 : index
      %c0_52 = arith.constant 0 : index
      %c0_53 = arith.constant 0 : index
      %64 = vector.load %arg5[%c2, %c0_51, %c0_52, %c0_53] : memref<4x2x32x32xf32, #tpu.memory_space<vmem>>, vector<1x1x32x32xf32>
      %65 = vector.shape_cast %64 : vector<1x1x32x32xf32> to vector<32x32xf32>
      %cst_54 = arith.constant dense<0.000000e+00> : vector<2x32xf32>
      %66 = tpu.matmul %63, %65, %cst_54 {dimension_numbers = #tpu.dot_dimension_numbers<[1], [0], [0], [1], [0, 0, 1, 1], [], []>} : vector<2x32xf32>, vector<32x32xf32>, vector<2x32xf32> -> vector<2x32xf32>
      %c2_55 = arith.constant 2 : index
      %c0_56 = arith.constant 0 : index
      %c0_57 = arith.constant 0 : index
      %c0_58 = arith.constant 0 : index
      %67 = vector.load %arg6[%c2_55, %c0_56, %c0_57, %c0_58] : memref<4x2x1x32xf32, #tpu.memory_space<vmem>>, vector<1x1x1x32xf32>
      %68 = vector.shape_cast %67 : vector<1x1x1x32xf32> to vector<1x32xf32>
      %69 = vector.broadcast %68 : vector<1x32xf32> to vector<2x32xf32>
      %70 = arith.addf %66, %69 : vector<2x32xf32>
      %71 = vector.extract_strided_slice %9 {offsets = [0, 0, 0], sizes = [2, 8, 32], strides = [1, 1, 1]} : vector<2x8x128xf32> to vector<2x8x32xf32>
      %72 = vector.extract_strided_slice %9 {offsets = [0, 0, 32], sizes = [2, 8, 32], strides = [1, 1, 1]} : vector<2x8x128xf32> to vector<2x8x32xf32>
      %73 = vector.shape_cast %70 : vector<2x32xf32> to vector<2x1x32xf32>
      "tpu.trace_start"() <{level = 10 : i32, message = "bqh,bkh->bqk"}> : () -> ()
      %cst_59 = arith.constant dense<0.000000e+00> : vector<2x1x8xf32>
      %74 = tpu.matmul %73, %71, %cst_59 {dimension_numbers = #tpu.dot_dimension_numbers<[2], [2], [1], [1], [0, 0, 0, 1, 1, 1], [0], [0]>} : vector<2x1x32xf32>, vector<2x8x32xf32>, vector<2x1x8xf32> -> vector<2x1x8xf32>
      "tpu.trace_stop"() : () -> ()
      %cst_60 = arith.constant 0.176776692 : f32
      %75 = vector.broadcast %cst_60 : f32 to vector<2x1x8xf32>
      %76 = arith.mulf %74, %75 : vector<2x1x8xf32>
      %cst_61 = arith.constant dense<0xFF800000> : vector<2x1xf32>
      %77 = vector.multi_reduction <maximumf>, %76, %cst_61 [2] : vector<2x1x8xf32> to vector<2x1xf32>
      %78 = vector.shape_cast %77 : vector<2x1xf32> to vector<2x1x1xf32>
      %79 = vector.broadcast %78 : vector<2x1x1xf32> to vector<2x1x8xf32>
      %80 = arith.subf %76, %79 : vector<2x1x8xf32>
      %81 = math.exp %80 : vector<2x1x8xf32>
      %cst_62 = arith.constant dense<0.000000e+00> : vector<2x1xf32>
      %82 = vector.multi_reduction <add>, %81, %cst_62 [2] : vector<2x1x8xf32> to vector<2x1xf32>
      %83 = vector.shape_cast %82 : vector<2x1xf32> to vector<2x1x1xf32>
      %84 = vector.broadcast %83 : vector<2x1x1xf32> to vector<2x1x8xf32>
      %85 = arith.divf %81, %84 : vector<2x1x8xf32>
      "tpu.trace_start"() <{level = 10 : i32, message = "bqk,bkh->bqh"}> : () -> ()
      %cst_63 = arith.constant dense<0.000000e+00> : vector<2x1x32xf32>
      %86 = tpu.matmul %85, %72, %cst_63 {dimension_numbers = #tpu.dot_dimension_numbers<[2], [1], [1], [2], [0, 0, 0, 1, 1, 2], [0], [0]>} : vector<2x1x8xf32>, vector<2x8x32xf32>, vector<2x1x32xf32> -> vector<2x1x32xf32>
      "tpu.trace_stop"() : () -> ()
      %87 = vector.shape_cast %86 : vector<2x1x32xf32> to vector<2x32xf32>
      %c3 = arith.constant 3 : index
      %c0_64 = arith.constant 0 : index
      %c0_65 = arith.constant 0 : index
      %c0_66 = arith.constant 0 : index
      %88 = vector.load %arg5[%c3, %c0_64, %c0_65, %c0_66] : memref<4x2x32x32xf32, #tpu.memory_space<vmem>>, vector<1x1x32x32xf32>
      %89 = vector.shape_cast %88 : vector<1x1x32x32xf32> to vector<32x32xf32>
      %cst_67 = arith.constant dense<0.000000e+00> : vector<2x32xf32>
      %90 = tpu.matmul %87, %89, %cst_67 {dimension_numbers = #tpu.dot_dimension_numbers<[1], [0], [0], [1], [0, 0, 1, 1], [], []>} : vector<2x32xf32>, vector<32x32xf32>, vector<2x32xf32> -> vector<2x32xf32>
      %c3_68 = arith.constant 3 : index
      %c0_69 = arith.constant 0 : index
      %c0_70 = arith.constant 0 : index
      %c0_71 = arith.constant 0 : index
      %91 = vector.load %arg6[%c3_68, %c0_69, %c0_70, %c0_71] : memref<4x2x1x32xf32, #tpu.memory_space<vmem>>, vector<1x1x1x32xf32>
      %92 = vector.shape_cast %91 : vector<1x1x1x32xf32> to vector<1x32xf32>
      %93 = vector.broadcast %92 : vector<1x32xf32> to vector<2x32xf32>
      %94 = arith.addf %90, %93 : vector<2x32xf32>
      %95 = arith.addf %94, %63 : vector<2x32xf32>
      %c2_72 = arith.constant 2 : index
      %c0_73 = arith.constant 0 : index
      %c0_74 = arith.constant 0 : index
      %c0_75 = arith.constant 0 : index
      %96 = vector.load %arg7[%c2_72, %c0_73, %c0_74, %c0_75] : memref<6x2x1x32xf32, #tpu.memory_space<vmem>>, vector<1x1x1x32xf32>
      %97 = vector.shape_cast %96 : vector<1x1x1x32xf32> to vector<1x32xf32>
      %c3_76 = arith.constant 3 : index
      %c0_77 = arith.constant 0 : index
      %c0_78 = arith.constant 0 : index
      %c0_79 = arith.constant 0 : index
      %98 = vector.load %arg7[%c3_76, %c0_77, %c0_78, %c0_79] : memref<6x2x1x32xf32, #tpu.memory_space<vmem>>, vector<1x1x1x32xf32>
      %99 = vector.shape_cast %98 : vector<1x1x1x32xf32> to vector<1x32xf32>
      %cst_80 = arith.constant dense<0.000000e+00> : vector<2xf32>
      %100 = vector.multi_reduction <add>, %95, %cst_80 [1] : vector<2x32xf32> to vector<2xf32>
      %101 = vector.shape_cast %100 : vector<2xf32> to vector<2x1xf32>
      %cst_81 = arith.constant 3.200000e+01 : f32
      %102 = vector.broadcast %cst_81 : f32 to vector<2x1xf32>
      %103 = arith.divf %101, %102 : vector<2x1xf32>
      %104 = vector.broadcast %103 : vector<2x1xf32> to vector<2x32xf32>
      %105 = arith.subf %95, %104 : vector<2x32xf32>
      %106 = arith.mulf %105, %105 : vector<2x32xf32>
      %cst_82 = arith.constant dense<0.000000e+00> : vector<2xf32>
      %107 = vector.multi_reduction <add>, %106, %cst_82 [1] : vector<2x32xf32> to vector<2xf32>
      %108 = vector.shape_cast %107 : vector<2xf32> to vector<2x1xf32>
      %cst_83 = arith.constant 3.200000e+01 : f32
      %109 = vector.broadcast %cst_83 : f32 to vector<2x1xf32>
      %110 = arith.divf %108, %109 : vector<2x1xf32>
      %111 = vector.broadcast %103 : vector<2x1xf32> to vector<2x32xf32>
      %112 = arith.subf %95, %111 : vector<2x32xf32>
      %cst_84 = arith.constant 9.99999974E-6 : f32
      %113 = vector.broadcast %cst_84 : f32 to vector<2x1xf32>
      %114 = arith.addf %110, %113 : vector<2x1xf32>
      %115 = math.rsqrt %114 : vector<2x1xf32>
      %116 = vector.broadcast %115 : vector<2x1xf32> to vector<2x32xf32>
      %117 = arith.mulf %112, %116 : vector<2x32xf32>
      %118 = vector.broadcast %97 : vector<1x32xf32> to vector<2x32xf32>
      %119 = arith.mulf %117, %118 : vector<2x32xf32>
      %120 = vector.broadcast %99 : vector<1x32xf32> to vector<2x32xf32>
      %121 = arith.addf %119, %120 : vector<2x32xf32>
      %c0_85 = arith.constant 0 : index
      %c0_86 = arith.constant 0 : index
      %c0_87 = arith.constant 0 : index
      %122 = vector.load %arg8[%c0_85, %c0_86, %c0_87] : memref<2x32x128xf32, #tpu.memory_space<vmem>>, vector<1x32x128xf32>
      %123 = vector.shape_cast %122 : vector<1x32x128xf32> to vector<32x128xf32>
      %cst_88 = arith.constant dense<0.000000e+00> : vector<2x128xf32>
      %124 = tpu.matmul %121, %123, %cst_88 {dimension_numbers = #tpu.dot_dimension_numbers<[1], [0], [0], [1], [0, 0, 1, 1], [], []>} : vector<2x32xf32>, vector<32x128xf32>, vector<2x128xf32> -> vector<2x128xf32>
      %c0_89 = arith.constant 0 : index
      %c0_90 = arith.constant 0 : index
      %c0_91 = arith.constant 0 : index
      %125 = vector.load %arg9[%c0_89, %c0_90, %c0_91] : memref<2x1x128xf32, #tpu.memory_space<vmem>>, vector<1x1x128xf32>
      %126 = vector.shape_cast %125 : vector<1x1x128xf32> to vector<1x128xf32>
      %127 = vector.broadcast %126 : vector<1x128xf32> to vector<2x128xf32>
      %128 = arith.addf %124, %127 : vector<2x128xf32>
      %cst_92 = arith.constant 0.000000e+00 : f32
      %129 = vector.broadcast %cst_92 : f32 to vector<2x128xf32>
      %130 = arith.maximumf %128, %129 : vector<2x128xf32>
      %c0_93 = arith.constant 0 : index
      %c0_94 = arith.constant 0 : index
      %c0_95 = arith.constant 0 : index
      %131 = vector.load %arg10[%c0_93, %c0_94, %c0_95] : memref<2x128x32xf32, #tpu.memory_space<vmem>>, vector<1x128x32xf32>
      %132 = vector.shape_cast %131 : vector<1x128x32xf32> to vector<128x32xf32>
      %cst_96 = arith.constant dense<0.000000e+00> : vector<2x32xf32>
      %133 = tpu.matmul %130, %132, %cst_96 {dimension_numbers = #tpu.dot_dimension_numbers<[1], [0], [0], [1], [0, 0, 1, 1], [], []>} : vector<2x128xf32>, vector<128x32xf32>, vector<2x32xf32> -> vector<2x32xf32>
      %c0_97 = arith.constant 0 : index
      %c0_98 = arith.constant 0 : index
      %c0_99 = arith.constant 0 : index
      %134 = vector.load %arg11[%c0_97, %c0_98, %c0_99] : memref<2x1x32xf32, #tpu.memory_space<vmem>>, vector<1x1x32xf32>
      %135 = vector.shape_cast %134 : vector<1x1x32xf32> to vector<1x32xf32>
      %136 = vector.broadcast %135 : vector<1x32xf32> to vector<2x32xf32>
      %137 = arith.addf %133, %136 : vector<2x32xf32>
      %138 = arith.addf %137, %121 : vector<2x32xf32>
      %c4 = arith.constant 4 : index
      %c0_100 = arith.constant 0 : index
      %c0_101 = arith.constant 0 : index
      %c0_102 = arith.constant 0 : index
      %139 = vector.load %arg7[%c4, %c0_100, %c0_101, %c0_102] : memref<6x2x1x32xf32, #tpu.memory_space<vmem>>, vector<1x1x1x32xf32>
      %140 = vector.shape_cast %139 : vector<1x1x1x32xf32> to vector<1x32xf32>
      %c5 = arith.constant 5 : index
      %c0_103 = arith.constant 0 : index
      %c0_104 = arith.constant 0 : index
      %c0_105 = arith.constant 0 : index
      %141 = vector.load %arg7[%c5, %c0_103, %c0_104, %c0_105] : memref<6x2x1x32xf32, #tpu.memory_space<vmem>>, vector<1x1x1x32xf32>
      %142 = vector.shape_cast %141 : vector<1x1x1x32xf32> to vector<1x32xf32>
      %cst_106 = arith.constant dense<0.000000e+00> : vector<2xf32>
      %143 = vector.multi_reduction <add>, %138, %cst_106 [1] : vector<2x32xf32> to vector<2xf32>
      %144 = vector.shape_cast %143 : vector<2xf32> to vector<2x1xf32>
      %cst_107 = arith.constant 3.200000e+01 : f32
      %145 = vector.broadcast %cst_107 : f32 to vector<2x1xf32>
      %146 = arith.divf %144, %145 : vector<2x1xf32>
      %147 = vector.broadcast %146 : vector<2x1xf32> to vector<2x32xf32>
      %148 = arith.subf %138, %147 : vector<2x32xf32>
      %149 = arith.mulf %148, %148 : vector<2x32xf32>
      %cst_108 = arith.constant dense<0.000000e+00> : vector<2xf32>
      %150 = vector.multi_reduction <add>, %149, %cst_108 [1] : vector<2x32xf32> to vector<2xf32>
      %151 = vector.shape_cast %150 : vector<2xf32> to vector<2x1xf32>
      %cst_109 = arith.constant 3.200000e+01 : f32
      %152 = vector.broadcast %cst_109 : f32 to vector<2x1xf32>
      %153 = arith.divf %151, %152 : vector<2x1xf32>
      %154 = vector.broadcast %146 : vector<2x1xf32> to vector<2x32xf32>
      %155 = arith.subf %138, %154 : vector<2x32xf32>
      %cst_110 = arith.constant 9.99999974E-6 : f32
      %156 = vector.broadcast %cst_110 : f32 to vector<2x1xf32>
      %157 = arith.addf %153, %156 : vector<2x1xf32>
      %158 = math.rsqrt %157 : vector<2x1xf32>
      %159 = vector.broadcast %158 : vector<2x1xf32> to vector<2x32xf32>
      %160 = arith.mulf %155, %159 : vector<2x32xf32>
      %161 = vector.broadcast %140 : vector<1x32xf32> to vector<2x32xf32>
      %162 = arith.mulf %160, %161 : vector<2x32xf32>
      %163 = vector.broadcast %142 : vector<1x32xf32> to vector<2x32xf32>
      %164 = arith.addf %162, %163 : vector<2x32xf32>
      %c0_111 = arith.constant 0 : index
      %c1_112 = arith.constant 1 : index
      %c0_113 = arith.constant 0 : index
      %c0_114 = arith.constant 0 : index
      %165 = vector.load %arg5[%c0_111, %c1_112, %c0_113, %c0_114] : memref<4x2x32x32xf32, #tpu.memory_space<vmem>>, vector<1x1x32x32xf32>
      %166 = vector.shape_cast %165 : vector<1x1x32x32xf32> to vector<32x32xf32>
      %cst_115 = arith.constant dense<0.000000e+00> : vector<2x32xf32>
      %167 = tpu.matmul %164, %166, %cst_115 {dimension_numbers = #tpu.dot_dimension_numbers<[1], [0], [0], [1], [0, 0, 1, 1], [], []>} : vector<2x32xf32>, vector<32x32xf32>, vector<2x32xf32> -> vector<2x32xf32>
      %c0_116 = arith.constant 0 : index
      %c1_117 = arith.constant 1 : index
      %c0_118 = arith.constant 0 : index
      %c0_119 = arith.constant 0 : index
      %168 = vector.load %arg6[%c0_116, %c1_117, %c0_118, %c0_119] : memref<4x2x1x32xf32, #tpu.memory_space<vmem>>, vector<1x1x1x32xf32>
      %169 = vector.shape_cast %168 : vector<1x1x1x32xf32> to vector<1x32xf32>
      %170 = vector.broadcast %169 : vector<1x32xf32> to vector<2x32xf32>
      %171 = arith.addf %167, %170 : vector<2x32xf32>
      %c1_120 = arith.constant 1 : index
      %c1_121 = arith.constant 1 : index
      %c0_122 = arith.constant 0 : index
      %c0_123 = arith.constant 0 : index
      %172 = vector.load %arg5[%c1_120, %c1_121, %c0_122, %c0_123] : memref<4x2x32x32xf32, #tpu.memory_space<vmem>>, vector<1x1x32x32xf32>
      %173 = vector.shape_cast %172 : vector<1x1x32x32xf32> to vector<32x32xf32>
      %cst_124 = arith.constant dense<0.000000e+00> : vector<2x32xf32>
      %174 = tpu.matmul %171, %173, %cst_124 {dimension_numbers = #tpu.dot_dimension_numbers<[1], [0], [0], [1], [0, 0, 1, 1], [], []>} : vector<2x32xf32>, vector<32x32xf32>, vector<2x32xf32> -> vector<2x32xf32>
      %c1_125 = arith.constant 1 : index
      %c1_126 = arith.constant 1 : index
      %c0_127 = arith.constant 0 : index
      %c0_128 = arith.constant 0 : index
      %175 = vector.load %arg6[%c1_125, %c1_126, %c0_127, %c0_128] : memref<4x2x1x32xf32, #tpu.memory_space<vmem>>, vector<1x1x1x32xf32>
      %176 = vector.shape_cast %175 : vector<1x1x1x32xf32> to vector<1x32xf32>
      %177 = vector.broadcast %176 : vector<1x32xf32> to vector<2x32xf32>
      %178 = arith.addf %174, %177 : vector<2x32xf32>
      %179 = arith.addf %178, %164 : vector<2x32xf32>
      %c0_129 = arith.constant 0 : index
      %c1_130 = arith.constant 1 : index
      %c0_131 = arith.constant 0 : index
      %c0_132 = arith.constant 0 : index
      %180 = vector.load %arg7[%c0_129, %c1_130, %c0_131, %c0_132] : memref<6x2x1x32xf32, #tpu.memory_space<vmem>>, vector<1x1x1x32xf32>
      %181 = vector.shape_cast %180 : vector<1x1x1x32xf32> to vector<1x32xf32>
      %c1_133 = arith.constant 1 : index
      %c1_134 = arith.constant 1 : index
      %c0_135 = arith.constant 0 : index
      %c0_136 = arith.constant 0 : index
      %182 = vector.load %arg7[%c1_133, %c1_134, %c0_135, %c0_136] : memref<6x2x1x32xf32, #tpu.memory_space<vmem>>, vector<1x1x1x32xf32>
      %183 = vector.shape_cast %182 : vector<1x1x1x32xf32> to vector<1x32xf32>
      %cst_137 = arith.constant dense<0.000000e+00> : vector<2xf32>
      %184 = vector.multi_reduction <add>, %179, %cst_137 [1] : vector<2x32xf32> to vector<2xf32>
      %185 = vector.shape_cast %184 : vector<2xf32> to vector<2x1xf32>
      %cst_138 = arith.constant 3.200000e+01 : f32
      %186 = vector.broadcast %cst_138 : f32 to vector<2x1xf32>
      %187 = arith.divf %185, %186 : vector<2x1xf32>
      %188 = vector.broadcast %187 : vector<2x1xf32> to vector<2x32xf32>
      %189 = arith.subf %179, %188 : vector<2x32xf32>
      %190 = arith.mulf %189, %189 : vector<2x32xf32>
      %cst_139 = arith.constant dense<0.000000e+00> : vector<2xf32>
      %191 = vector.multi_reduction <add>, %190, %cst_139 [1] : vector<2x32xf32> to vector<2xf32>
      %192 = vector.shape_cast %191 : vector<2xf32> to vector<2x1xf32>
      %cst_140 = arith.constant 3.200000e+01 : f32
      %193 = vector.broadcast %cst_140 : f32 to vector<2x1xf32>
      %194 = arith.divf %192, %193 : vector<2x1xf32>
      %195 = vector.broadcast %187 : vector<2x1xf32> to vector<2x32xf32>
      %196 = arith.subf %179, %195 : vector<2x32xf32>
      %cst_141 = arith.constant 9.99999974E-6 : f32
      %197 = vector.broadcast %cst_141 : f32 to vector<2x1xf32>
      %198 = arith.addf %194, %197 : vector<2x1xf32>
      %199 = math.rsqrt %198 : vector<2x1xf32>
      %200 = vector.broadcast %199 : vector<2x1xf32> to vector<2x32xf32>
      %201 = arith.mulf %196, %200 : vector<2x32xf32>
      %202 = vector.broadcast %181 : vector<1x32xf32> to vector<2x32xf32>
      %203 = arith.mulf %201, %202 : vector<2x32xf32>
      %204 = vector.broadcast %183 : vector<1x32xf32> to vector<2x32xf32>
      %205 = arith.addf %203, %204 : vector<2x32xf32>
      %c2_142 = arith.constant 2 : index
      %c1_143 = arith.constant 1 : index
      %c0_144 = arith.constant 0 : index
      %c0_145 = arith.constant 0 : index
      %206 = vector.load %arg5[%c2_142, %c1_143, %c0_144, %c0_145] : memref<4x2x32x32xf32, #tpu.memory_space<vmem>>, vector<1x1x32x32xf32>
      %207 = vector.shape_cast %206 : vector<1x1x32x32xf32> to vector<32x32xf32>
      %cst_146 = arith.constant dense<0.000000e+00> : vector<2x32xf32>
      %208 = tpu.matmul %205, %207, %cst_146 {dimension_numbers = #tpu.dot_dimension_numbers<[1], [0], [0], [1], [0, 0, 1, 1], [], []>} : vector<2x32xf32>, vector<32x32xf32>, vector<2x32xf32> -> vector<2x32xf32>
      %c2_147 = arith.constant 2 : index
      %c1_148 = arith.constant 1 : index
      %c0_149 = arith.constant 0 : index
      %c0_150 = arith.constant 0 : index
      %209 = vector.load %arg6[%c2_147, %c1_148, %c0_149, %c0_150] : memref<4x2x1x32xf32, #tpu.memory_space<vmem>>, vector<1x1x1x32xf32>
      %210 = vector.shape_cast %209 : vector<1x1x1x32xf32> to vector<1x32xf32>
      %211 = vector.broadcast %210 : vector<1x32xf32> to vector<2x32xf32>
      %212 = arith.addf %208, %211 : vector<2x32xf32>
      %213 = vector.extract_strided_slice %9 {offsets = [0, 0, 64], sizes = [2, 8, 32], strides = [1, 1, 1]} : vector<2x8x128xf32> to vector<2x8x32xf32>
      %214 = vector.extract_strided_slice %9 {offsets = [0, 0, 96], sizes = [2, 8, 32], strides = [1, 1, 1]} : vector<2x8x128xf32> to vector<2x8x32xf32>
      %215 = vector.shape_cast %212 : vector<2x32xf32> to vector<2x1x32xf32>
      "tpu.trace_start"() <{level = 10 : i32, message = "bqh,bkh->bqk"}> : () -> ()
      %cst_151 = arith.constant dense<0.000000e+00> : vector<2x1x8xf32>
      %216 = tpu.matmul %215, %213, %cst_151 {dimension_numbers = #tpu.dot_dimension_numbers<[2], [2], [1], [1], [0, 0, 0, 1, 1, 1], [0], [0]>} : vector<2x1x32xf32>, vector<2x8x32xf32>, vector<2x1x8xf32> -> vector<2x1x8xf32>
      "tpu.trace_stop"() : () -> ()
      %cst_152 = arith.constant 0.176776692 : f32
      %217 = vector.broadcast %cst_152 : f32 to vector<2x1x8xf32>
      %218 = arith.mulf %216, %217 : vector<2x1x8xf32>
      %cst_153 = arith.constant dense<0xFF800000> : vector<2x1xf32>
      %219 = vector.multi_reduction <maximumf>, %218, %cst_153 [2] : vector<2x1x8xf32> to vector<2x1xf32>
      %220 = vector.shape_cast %219 : vector<2x1xf32> to vector<2x1x1xf32>
      %221 = vector.broadcast %220 : vector<2x1x1xf32> to vector<2x1x8xf32>
      %222 = arith.subf %218, %221 : vector<2x1x8xf32>
      %223 = math.exp %222 : vector<2x1x8xf32>
      %cst_154 = arith.constant dense<0.000000e+00> : vector<2x1xf32>
      %224 = vector.multi_reduction <add>, %223, %cst_154 [2] : vector<2x1x8xf32> to vector<2x1xf32>
      %225 = vector.shape_cast %224 : vector<2x1xf32> to vector<2x1x1xf32>
      %226 = vector.broadcast %225 : vector<2x1x1xf32> to vector<2x1x8xf32>
      %227 = arith.divf %223, %226 : vector<2x1x8xf32>
      "tpu.trace_start"() <{level = 10 : i32, message = "bqk,bkh->bqh"}> : () -> ()
      %cst_155 = arith.constant dense<0.000000e+00> : vector<2x1x32xf32>
      %228 = tpu.matmul %227, %214, %cst_155 {dimension_numbers = #tpu.dot_dimension_numbers<[2], [1], [1], [2], [0, 0, 0, 1, 1, 2], [0], [0]>} : vector<2x1x8xf32>, vector<2x8x32xf32>, vector<2x1x32xf32> -> vector<2x1x32xf32>
      "tpu.trace_stop"() : () -> ()
      %229 = vector.shape_cast %228 : vector<2x1x32xf32> to vector<2x32xf32>
      %c3_156 = arith.constant 3 : index
      %c1_157 = arith.constant 1 : index
      %c0_158 = arith.constant 0 : index
      %c0_159 = arith.constant 0 : index
      %230 = vector.load %arg5[%c3_156, %c1_157, %c0_158, %c0_159] : memref<4x2x32x32xf32, #tpu.memory_space<vmem>>, vector<1x1x32x32xf32>
      %231 = vector.shape_cast %230 : vector<1x1x32x32xf32> to vector<32x32xf32>
      %cst_160 = arith.constant dense<0.000000e+00> : vector<2x32xf32>
      %232 = tpu.matmul %229, %231, %cst_160 {dimension_numbers = #tpu.dot_dimension_numbers<[1], [0], [0], [1], [0, 0, 1, 1], [], []>} : vector<2x32xf32>, vector<32x32xf32>, vector<2x32xf32> -> vector<2x32xf32>
      %c3_161 = arith.constant 3 : index
      %c1_162 = arith.constant 1 : index
      %c0_163 = arith.constant 0 : index
      %c0_164 = arith.constant 0 : index
      %233 = vector.load %arg6[%c3_161, %c1_162, %c0_163, %c0_164] : memref<4x2x1x32xf32, #tpu.memory_space<vmem>>, vector<1x1x1x32xf32>
      %234 = vector.shape_cast %233 : vector<1x1x1x32xf32> to vector<1x32xf32>
      %235 = vector.broadcast %234 : vector<1x32xf32> to vector<2x32xf32>
      %236 = arith.addf %232, %235 : vector<2x32xf32>
      %237 = arith.addf %236, %205 : vector<2x32xf32>
      %c2_165 = arith.constant 2 : index
      %c1_166 = arith.constant 1 : index
      %c0_167 = arith.constant 0 : index
      %c0_168 = arith.constant 0 : index
      %238 = vector.load %arg7[%c2_165, %c1_166, %c0_167, %c0_168] : memref<6x2x1x32xf32, #tpu.memory_space<vmem>>, vector<1x1x1x32xf32>
      %239 = vector.shape_cast %238 : vector<1x1x1x32xf32> to vector<1x32xf32>
      %c3_169 = arith.constant 3 : index
      %c1_170 = arith.constant 1 : index
      %c0_171 = arith.constant 0 : index
      %c0_172 = arith.constant 0 : index
      %240 = vector.load %arg7[%c3_169, %c1_170, %c0_171, %c0_172] : memref<6x2x1x32xf32, #tpu.memory_space<vmem>>, vector<1x1x1x32xf32>
      %241 = vector.shape_cast %240 : vector<1x1x1x32xf32> to vector<1x32xf32>
      %cst_173 = arith.constant dense<0.000000e+00> : vector<2xf32>
      %242 = vector.multi_reduction <add>, %237, %cst_173 [1] : vector<2x32xf32> to vector<2xf32>
      %243 = vector.shape_cast %242 : vector<2xf32> to vector<2x1xf32>
      %cst_174 = arith.constant 3.200000e+01 : f32
      %244 = vector.broadcast %cst_174 : f32 to vector<2x1xf32>
      %245 = arith.divf %243, %244 : vector<2x1xf32>
      %246 = vector.broadcast %245 : vector<2x1xf32> to vector<2x32xf32>
      %247 = arith.subf %237, %246 : vector<2x32xf32>
      %248 = arith.mulf %247, %247 : vector<2x32xf32>
      %cst_175 = arith.constant dense<0.000000e+00> : vector<2xf32>
      %249 = vector.multi_reduction <add>, %248, %cst_175 [1] : vector<2x32xf32> to vector<2xf32>
      %250 = vector.shape_cast %249 : vector<2xf32> to vector<2x1xf32>
      %cst_176 = arith.constant 3.200000e+01 : f32
      %251 = vector.broadcast %cst_176 : f32 to vector<2x1xf32>
      %252 = arith.divf %250, %251 : vector<2x1xf32>
      %253 = vector.broadcast %245 : vector<2x1xf32> to vector<2x32xf32>
      %254 = arith.subf %237, %253 : vector<2x32xf32>
      %cst_177 = arith.constant 9.99999974E-6 : f32
      %255 = vector.broadcast %cst_177 : f32 to vector<2x1xf32>
      %256 = arith.addf %252, %255 : vector<2x1xf32>
      %257 = math.rsqrt %256 : vector<2x1xf32>
      %258 = vector.broadcast %257 : vector<2x1xf32> to vector<2x32xf32>
      %259 = arith.mulf %254, %258 : vector<2x32xf32>
      %260 = vector.broadcast %239 : vector<1x32xf32> to vector<2x32xf32>
      %261 = arith.mulf %259, %260 : vector<2x32xf32>
      %262 = vector.broadcast %241 : vector<1x32xf32> to vector<2x32xf32>
      %263 = arith.addf %261, %262 : vector<2x32xf32>
      %c1_178 = arith.constant 1 : index
      %c0_179 = arith.constant 0 : index
      %c0_180 = arith.constant 0 : index
      %264 = vector.load %arg8[%c1_178, %c0_179, %c0_180] : memref<2x32x128xf32, #tpu.memory_space<vmem>>, vector<1x32x128xf32>
      %265 = vector.shape_cast %264 : vector<1x32x128xf32> to vector<32x128xf32>
      %cst_181 = arith.constant dense<0.000000e+00> : vector<2x128xf32>
      %266 = tpu.matmul %263, %265, %cst_181 {dimension_numbers = #tpu.dot_dimension_numbers<[1], [0], [0], [1], [0, 0, 1, 1], [], []>} : vector<2x32xf32>, vector<32x128xf32>, vector<2x128xf32> -> vector<2x128xf32>
      %c1_182 = arith.constant 1 : index
      %c0_183 = arith.constant 0 : index
      %c0_184 = arith.constant 0 : index
      %267 = vector.load %arg9[%c1_182, %c0_183, %c0_184] : memref<2x1x128xf32, #tpu.memory_space<vmem>>, vector<1x1x128xf32>
      %268 = vector.shape_cast %267 : vector<1x1x128xf32> to vector<1x128xf32>
      %269 = vector.broadcast %268 : vector<1x128xf32> to vector<2x128xf32>
      %270 = arith.addf %266, %269 : vector<2x128xf32>
      %cst_185 = arith.constant 0.000000e+00 : f32
      %271 = vector.broadcast %cst_185 : f32 to vector<2x128xf32>
      %272 = arith.maximumf %270, %271 : vector<2x128xf32>
      %c1_186 = arith.constant 1 : index
      %c0_187 = arith.constant 0 : index
      %c0_188 = arith.constant 0 : index
      %273 = vector.load %arg10[%c1_186, %c0_187, %c0_188] : memref<2x128x32xf32, #tpu.memory_space<vmem>>, vector<1x128x32xf32>
      %274 = vector.shape_cast %273 : vector<1x128x32xf32> to vector<128x32xf32>
      %cst_189 = arith.constant dense<0.000000e+00> : vector<2x32xf32>
      %275 = tpu.matmul %272, %274, %cst_189 {dimension_numbers = #tpu.dot_dimension_numbers<[1], [0], [0], [1], [0, 0, 1, 1], [], []>} : vector<2x128xf32>, vector<128x32xf32>, vector<2x32xf32> -> vector<2x32xf32>
      %c1_190 = arith.constant 1 : index
      %c0_191 = arith.constant 0 : index
      %c0_192 = arith.constant 0 : index
      %276 = vector.load %arg11[%c1_190, %c0_191, %c0_192] : memref<2x1x32xf32, #tpu.memory_space<vmem>>, vector<1x1x32xf32>
      %277 = vector.shape_cast %276 : vector<1x1x32xf32> to vector<1x32xf32>
      %278 = vector.broadcast %277 : vector<1x32xf32> to vector<2x32xf32>
      %279 = arith.addf %275, %278 : vector<2x32xf32>
      %280 = arith.addf %279, %263 : vector<2x32xf32>
      %c4_193 = arith.constant 4 : index
      %c1_194 = arith.constant 1 : index
      %c0_195 = arith.constant 0 : index
      %c0_196 = arith.constant 0 : index
      %281 = vector.load %arg7[%c4_193, %c1_194, %c0_195, %c0_196] : memref<6x2x1x32xf32, #tpu.memory_space<vmem>>, vector<1x1x1x32xf32>
      %282 = vector.shape_cast %281 : vector<1x1x1x32xf32> to vector<1x32xf32>
      %c5_197 = arith.constant 5 : index
      %c1_198 = arith.constant 1 : index
      %c0_199 = arith.constant 0 : index
      %c0_200 = arith.constant 0 : index
      %283 = vector.load %arg7[%c5_197, %c1_198, %c0_199, %c0_200] : memref<6x2x1x32xf32, #tpu.memory_space<vmem>>, vector<1x1x1x32xf32>
      %284 = vector.shape_cast %283 : vector<1x1x1x32xf32> to vector<1x32xf32>
      %cst_201 = arith.constant dense<0.000000e+00> : vector<2xf32>
      %285 = vector.multi_reduction <add>, %280, %cst_201 [1] : vector<2x32xf32> to vector<2xf32>
      %286 = vector.shape_cast %285 : vector<2xf32> to vector<2x1xf32>
      %cst_202 = arith.constant 3.200000e+01 : f32
      %287 = vector.broadcast %cst_202 : f32 to vector<2x1xf32>
      %288 = arith.divf %286, %287 : vector<2x1xf32>
      %289 = vector.broadcast %288 : vector<2x1xf32> to vector<2x32xf32>
      %290 = arith.subf %280, %289 : vector<2x32xf32>
      %291 = arith.mulf %290, %290 : vector<2x32xf32>
      %cst_203 = arith.constant dense<0.000000e+00> : vector<2xf32>
      %292 = vector.multi_reduction <add>, %291, %cst_203 [1] : vector<2x32xf32> to vector<2xf32>
      %293 = vector.shape_cast %292 : vector<2xf32> to vector<2x1xf32>
      %cst_204 = arith.constant 3.200000e+01 : f32
      %294 = vector.broadcast %cst_204 : f32 to vector<2x1xf32>
      %295 = arith.divf %293, %294 : vector<2x1xf32>
      %296 = vector.broadcast %288 : vector<2x1xf32> to vector<2x32xf32>
      %297 = arith.subf %280, %296 : vector<2x32xf32>
      %cst_205 = arith.constant 9.99999974E-6 : f32
      %298 = vector.broadcast %cst_205 : f32 to vector<2x1xf32>
      %299 = arith.addf %295, %298 : vector<2x1xf32>
      %300 = math.rsqrt %299 : vector<2x1xf32>
      %301 = vector.broadcast %300 : vector<2x1xf32> to vector<2x32xf32>
      %302 = arith.mulf %297, %301 : vector<2x32xf32>
      %303 = vector.broadcast %282 : vector<1x32xf32> to vector<2x32xf32>
      %304 = arith.mulf %302, %303 : vector<2x32xf32>
      %305 = vector.broadcast %284 : vector<1x32xf32> to vector<2x32xf32>
      %306 = arith.addf %304, %305 : vector<2x32xf32>
      %cst_206 = arith.constant dense<0.000000e+00> : vector<2x32xf32>
      %307 = tpu.matmul %306, %11, %cst_206 {dimension_numbers = #tpu.dot_dimension_numbers<[1], [0], [0], [1], [0, 0, 1, 1], [], []>} : vector<2x32xf32>, vector<32x32xf32>, vector<2x32xf32> -> vector<2x32xf32>
      %308 = vector.broadcast %12 : vector<1x32xf32> to vector<2x32xf32>
      %309 = arith.addf %307, %308 : vector<2x32xf32>
      %cst_207 = arith.constant 0.000000e+00 : f32
      %310 = vector.broadcast %cst_207 : f32 to vector<2x32xf32>
      %311 = arith.select %17, %309, %310 : vector<2x32xf32>
      %312 = arith.index_cast %arg15 : i32 to index
      %c0_208 = arith.constant 0 : index
      %c0_209 = arith.constant 0 : index
      %313 = vector.load %arg14[%312, %c0_208, %c0_209] : memref<8x2x32xf32, #tpu.memory_space<vmem>>, vector<1x2x32xf32>
      %314 = vector.shape_cast %313 : vector<1x2x32xf32> to vector<2x32xf32>
      %315 = vector.shape_cast %311 : vector<2x32xf32> to vector<1x2x32xf32>
      tpu.vector_store %arg14[%312, %c0_208, %c0_209], %315 {strides = array<i32>} : memref<8x2x32xf32, #tpu.memory_space<vmem>>, vector<1x2x32xf32>,
      %cst_210 = arith.constant dense<0xFF800000> : vector<2xf32>
      %316 = vector.multi_reduction <maximumf>, %309, %cst_210 [1] : vector<2x32xf32> to vector<2xf32>
      %317 = vector.shape_cast %316 : vector<2xf32> to vector<2x1xf32>
      %318 = vector.broadcast %317 : vector<2x1xf32> to vector<2x32xf32>
      %319 = arith.cmpf oeq, %309, %318 : vector<2x32xf32>
      %c32_i32 = arith.constant 32 : i32
      %320 = vector.broadcast %c32_i32 : i32 to vector<2x32xi32>
      %321 = arith.select %319, %13, %320 : vector<2x32xi1>, vector<2x32xi32>
      %cst_211 = arith.constant dense<2147483647> : vector<2xi32>
      %322 = vector.multi_reduction <minsi>, %321, %cst_211 [1] : vector<2x32xi32> to vector<2xi32>
      %323 = vector.shape_cast %322 : vector<2xi32> to vector<2x1xi32>
      %324 = arith.select %17, %323, %arg16 : vector<2x1xi32>
      %c2_i32 = arith.constant 2 : i32
      %325 = vector.broadcast %c2_i32 : i32 to vector<2x1xi32>
      %326 = arith.cmpi eq, %323, %325 : vector<2x1xi32>
      %327 = arith.extui %326 : vector<2x1xi1> to vector<2x1xi32>
      %328 = vector.shape_cast %327 : vector<2x1xi32> to vector<1x2x1xi32>
      %cst_212 = arith.constant dense<0> : vector<1xi32>
      %329 = vector.multi_reduction <add>, %328, %cst_212 [1, 2] : vector<1x2x1xi32> to vector<1xi32>
      %330 = vector.shape_cast %329 : vector<1xi32> to vector<1x1x1xi32>
      %331 = vector.extract %330[0, 0, 0] : i32 from vector<1x1x1xi32>
      %c2_i32_213 = arith.constant 2 : i32
      %332 = arith.cmpi eq, %331, %c2_i32_213 : i32
      %333 = arith.andi %17, %332 : i1
      %c1_i32_214 = arith.constant 1 : i32
      %334 = arith.select %333, %c1_i32_214, %arg17 : i32
      scf.yield %324, %334 : vector<2x1xi32>, i32
    }
    %c7_i32_18 = arith.constant 7 : i32
    return
  }
  func.func @transform_0(%arg0: i32) -> (i32, i32, i32) {
    %c0_i32 = arith.constant 0 : i32
    %c0_i32_0 = arith.constant 0 : i32
    %c0_i32_1 = arith.constant 0 : i32
    %c0_i32_2 = arith.constant 0 : i32
    return %c0_i32, %c0_i32_0, %c0_i32_1 : i32, i32, i32
  }
  func.func @transform_1(%arg0: i32) -> (i32, i32) {
    %c0_i32 = arith.constant 0 : i32
    %c0_i32_0 = arith.constant 0 : i32
    %c0_i32_1 = arith.constant 0 : i32
    return %c0_i32, %c0_i32_0 : i32, i32
  }
  func.func @transform_2(%arg0: i32) -> (i32, i32) {
    %c0_i32 = arith.constant 0 : i32
    %c0_i32_0 = arith.constant 0 : i32
    %c0_i32_1 = arith.constant 0 : i32
    return %c0_i32, %c0_i32_0 : i32, i32
  }
  func.func @transform_3(%arg0: i32) -> (i32, i32) {
    %c0_i32 = arith.constant 0 : i32
    %c0_i32_0 = arith.constant 0 : i32
    %c0_i32_1 = arith.constant 0 : i32
    return %c0_i32, %c0_i32_0 : i32, i32
  }
  func.func @transform_4(%arg0: i32) -> (i32, i32, i32, i32) {
    %c0_i32 = arith.constant 0 : i32
    %c0_i32_0 = arith.constant 0 : i32
    %c0_i32_1 = arith.constant 0 : i32
    %c0_i32_2 = arith.constant 0 : i32
    %c0_i32_3 = arith.constant 0 : i32
    return %c0_i32, %c0_i32_0, %c0_i32_1, %c0_i32_2 : i32, i32, i32, i32
  }
  func.func @transform_5(%arg0: i32) -> (i32, i32, i32, i32) {
    %c0_i32 = arith.constant 0 : i32
    %c0_i32_0 = arith.constant 0 : i32
    %c0_i32_1 = arith.constant 0 : i32
    %c0_i32_2 = arith.constant 0 : i32
    %c0_i32_3 = arith.constant 0 : i32
    return %c0_i32, %c0_i32_0, %c0_i32_1, %c0_i32_2 : i32, i32, i32, i32
  }
  func.func @transform_6(%arg0: i32) -> (i32, i32, i32, i32) {
    %c0_i32 = arith.constant 0 : i32
    %c0_i32_0 = arith.constant 0 : i32
    %c0_i32_1 = arith.constant 0 : i32
    %c0_i32_2 = arith.constant 0 : i32
    %c0_i32_3 = arith.constant 0 : i32
    return %c0_i32, %c0_i32_0, %c0_i32_1, %c0_i32_2 : i32, i32, i32, i32
  }
  func.func @transform_7(%arg0: i32) -> (i32, i32, i32) {
    %c0_i32 = arith.constant 0 : i32
    %c0_i32_0 = arith.constant 0 : i32
    %c0_i32_1 = arith.constant 0 : i32
    %c0_i32_2 = arith.constant 0 : i32
    return %c0_i32, %c0_i32_0, %c0_i32_1 : i32, i32, i32
  }
  func.func @transform_8(%arg0: i32) -> (i32, i32, i32) {
    %c0_i32 = arith.constant 0 : i32
    %c0_i32_0 = arith.constant 0 : i32
    %c0_i32_1 = arith.constant 0 : i32
    %c0_i32_2 = arith.constant 0 : i32
    return %c0_i32, %c0_i32_0, %c0_i32_1 : i32, i32, i32
  }
  func.func @transform_9(%arg0: i32) -> (i32, i32, i32) {
    %c0_i32 = arith.constant 0 : i32
    %c0_i32_0 = arith.constant 0 : i32
    %c0_i32_1 = arith.constant 0 : i32
    %c0_i32_2 = arith.constant 0 : i32
    return %c0_i32, %c0_i32_0, %c0_i32_1 : i32, i32, i32
  }
  func.func @transform_10(%arg0: i32) -> (i32, i32, i32) {
    %c0_i32 = arith.constant 0 : i32
    %c0_i32_0 = arith.constant 0 : i32
    %c0_i32_1 = arith.constant 0 : i32
    %c0_i32_2 = arith.constant 0 : i32
    return %c0_i32, %c0_i32_0, %c0_i32_1 : i32, i32, i32
  }
  func.func @transform_11(%arg0: i32) -> (i32, i32) {
    %c0_i32 = arith.constant 0 : i32
    %c0_i32_0 = arith.constant 0 : i32
    %c0_i32_1 = arith.constant 0 : i32
    return %c0_i32, %c0_i32_0 : i32, i32
  }
  func.func @transform_12(%arg0: i32) -> (i32, i32) {
    %c0_i32 = arith.constant 0 : i32
    %c0_i32_0 = arith.constant 0 : i32
    %c0_i32_1 = arith.constant 0 : i32
    return %c0_i32, %c0_i32_0 : i32, i32
  }
  func.func @transform_13(%arg0: i32) -> (i32, i32, i32) {
    %c0_i32 = arith.constant 0 : i32
    %c0_i32_0 = arith.constant 0 : i32
    %c0_i32_1 = arith.constant 0 : i32
    %c0_i32_2 = arith.constant 0 : i32
    return %c0_i32, %c0_i32_0, %c0_i32_1 : i32, i32, i32
  }
}

</mosaic_0001>

<bundles_post_ra>
// kernel: transformer_forward.2
= control target key start
LH: loop header
LB: loop body
LE: loop exit
PB: predicated region body
PF: predicated region fallthrough
CT: control target
= control target key end

     0   :  { %s2120_s17 = smov 0   ;;  %s2453_s0 = inlined_call_operand.vmem [shape: f32[2,8,32], index: 0, kind: input, shape index: {}]   ;;  %s2454_s1 = inlined_call_operand.vmem [shape: f32[2,1,8], index: 1, kind: input, shape index: {}]   ;;  %s2455_s2 = inlined_call_operand.vmem [shape: f32[2,32,96], index: 2, kind: input, shape index: {}]   ;;  %s2456_s3 = inlined_call_operand.vmem [shape: f32[2,1,96], index: 3, kind: input, shape index: {}]   ;;  %s2457_s4 = inlined_call_operand.vmem [shape: f32[2,32,32], index: 4, kind: input, shape index: {}]   ;;  %s2458_s5 = inlined_call_operand.vmem [shape: f32[2,1,32], index: 5, kind: input, shape index: {}]   ;;  %s2459_s6 = inlined_call_operand.vmem [shape: f32[4,2,1,32], index: 6, kind: input, shape index: {}]   ;;  %s2460_s7 = inlined_call_operand.vmem [shape: f32[2,32,128], index: 7, kind: input, shape index: {}]   ;;  %s2461_s8 = inlined_call_operand.vmem [shape: f32[2,1,128], index: 8, kind: input, shape index: {}]   ;;  %s2462_s9 = inlined_call_operand.vmem [shape: f32[2,128,32], index: 9, kind: input, shape index: {}]   ;;  %s2463_s10 = inlined_call_operand.vmem [shape: f32[2,1,32], index: 10, kind: input, shape index: {}]   ;;  %s2464_s11 = inlined_call_operand.vmem [shape: f32[2,8,32], index: 11, kind: output, shape index: {}]  }
   0x1 LB: > { %s1629_s18 = sadd.s32 4294967295, %s2053_s17   ;;  %p1633_p0 = scmp.ge.s32.totalorder %s2053_s17, 1  ;;  %s2053_s17 = sphi %s2120_s17, %s21_s17  }
   0x2   : > { %p344_p1 = scmp.lt.s32.totalorder %s2053_s17, 3 }
   0x4   : > { %p345_p2 = pnand %p1633_p0, %p344_p1 }
   0x5   : > { %v398_v0 = vld [vmem:[%s2455_s2] sm:$0xff] (!%p345_p2)  ;;  %v399_v1 = vld [vmem:[%s2455_s2 + $0x8] sm:$0xff] (!%p345_p2)  ;;  %v400_v2 = vld [vmem:[%s2455_s2 + $0x10] sm:$0xff] (!%p345_p2)  ;;  %v2055_v3 = vmov (!%p345_p2), 0.0|0.0   ;;  %vm2056_vm0 = vmmov (!%p345_p2), 0   ;;  %v2057_v6 = vmov (!%p345_p2), 0.0  }
   0x6   : > { %348 = sbr.rel (%p345_p2) target bundleno = 4714 (0x126a), region = 64  ;;  %1934 = vmatprep.subr.bf16.mxu1 (!%p345_p2), %v2055_v3  ;;  %v1935_v4 = vpack.c.bf16 (!%p345_p2), %v399_v1, %v398_v0  ;;  %v401_v5 = vld [vmem:[%s2455_s2 + $0x18] sm:$0xff] (!%p345_p2)  ;;  %1786 = vmatprep.mubr.msk.f32.mxu1 (!%p345_p2), %vm2056_vm0, %v2057_v6  ;;  %p385_p3 = scmp.lt.s32.totalorder (!%p345_p2), %s1629_s18, 1  ;;  %vm409_vm1 = vcmask (!%p345_p2), 261120   ;;  %v1636_v9 = vld [vmem:[%s2456_s3] ss:$0 sm:$0xff] (!%p345_p2) }
   0x7   : > { %1952 = vmatprep.subr.bf16.mxu0 (!%p345_p2), %v2055_v3  ;;  %1853 = vmatprep.mubr.msk.f32.mxu0 (!%p345_p2), %vm2056_vm0, %v2057_v6  ;;  %v1938_v7 = vpack.c.bf16 (!%p345_p2), %v401_v5, %v400_v2  ;;  %s2058_s14 = smov (!%p345_p2), 96   ;;  %vm568_vm2 = vcmask (!%p345_p2), 64512   ;;  %s2059_s20 = smov (!%p345_p2), 64   ;;  %v656_v27 = vld [vmem:[%s2457_s4] sm:$0xff] (!%p345_p2)  ;;  %v657_v28 = vld [vmem:[%s2457_s4 + $0x8] sm:$0xff] (!%p345_p2)  ;;  %v658_v32 = vld [vmem:[%s2457_s4 + $0x10] sm:$0xff] (!%p345_p2) }
   0x8   : > { %1936 = vmatpush3.bf16.msra.mxu1 (!%p345_p2), %v1935_v4  ;;  %v1941_v30 = vpack.c.bf16 (!%p345_p2), %v657_v28, %v656_v27  ;;  %v659_v33 = vld [vmem:[%s2457_s4 + $0x18] sm:$0xff] (!%p345_p2)  ;;  %v1642_v37 = vld [vmem:[%s2458_s5] ss:$0 sm:$0xff] (!%p345_p2)  ;;  %v773_v49 = vld [vmem:[%s2460_s7 + $0x8] sm:$0xff] (!%p345_p2) }
   0x9   : > { %1937 = vmatprep.subr.bf16.mxu1 (!%p345_p2), %v2055_v3  ;;  %v1944_v34 = vpack.c.bf16 (!%p345_p2), %v659_v33, %v658_v32  ;;  %v772_v48 = vld [vmem:[%s2460_s7] sm:$0xff] (!%p345_p2)  ;;  %v774_v51 = vld [vmem:[%s2460_s7 + $0x10] sm:$0xff] (!%p345_p2)  ;;  %v775_v52 = vld [vmem:[%s2460_s7 + $0x18] sm:$0xff] (!%p345_p2) }
   0xa   : > { %v1947_v50 = vpack.c.bf16 (!%p345_p2), %v773_v49, %v772_v48  ;;  %v1950_v53 = vpack.c.bf16 (!%p345_p2), %v775_v52, %v774_v51  ;;  %v857_v54 = vld [vmem:[%s2462_s9] sm:$0xff] (!%p345_p2)  ;;  %v858_v55 = vld [vmem:[%s2462_s9 + $0x8] sm:$0xff] (!%p345_p2)  ;;  %v859_v56 = vld [vmem:[%s2462_s9 + $0x10] sm:$0xff] (!%p345_p2) }
   0xb   : > { %v1953_v57 = vpack.c.bf16 (!%p345_p2), %v858_v55, %v857_v54  ;;  %v860_v58 = vld [vmem:[%s2462_s9 + $0x18] sm:$0xff] (!%p345_p2)  ;;  %v861_v60 = vld [vmem:[%s2462_s9 + $0x20] sm:$0xff] (!%p345_p2)  ;;  %v862_v61 = vld [vmem:[%s2462_s9 + $0x28] sm:$0xff] (!%p345_p2) }
   0xc   : > { %1939 = vmatpush3.bf16.msra.mxu1 (!%p345_p2), %v1938_v7  ;;  %v1956_v59 = vpack.c.bf16 (!%p345_p2), %v860_v58, %v859_v56  ;;  %v1959_v62 = vpack.c.bf16 (!%p345_p2), %v862_v61, %v861_v60  ;;  %v863_v63 = vld [vmem:[%s2462_s9 + $0x30] sm:$0xff] (!%p345_p2)  ;;  %v864_v0 = vld [vmem:[%s2462_s9 + $0x38] sm:$0xff] (!%p345_p2)  ;;  %v865_v2 = vld [vmem:[%s2462_s9 + $0x40] sm:$0xff] (!%p345_p2) }
   0xd   : > { %s2466_s18 = smov (!%p385_p3, %s1629_s18), 1  ;;  %1789 = vmatprep.subr.mxu1 %v2057_v6  ;;  %1954 = vmatpush3.bf16.msra.mxu0 %v1953_v57  ;;  %v1962_v1 = vpack.c.bf16 %v864_v0, %v863_v63  ;;  %v866_v4 = vld [vmem:[%s2462_s9 + $0x48] sm:$0xff]  ;;  %v867_v7 = vld [vmem:[%s2462_s9 + $0x50] sm:$0xff]  ;;  %v1652_v52 = vld [vmem:[%s2459_s6 + $0x4] ss:$0 sm:$0xff] }
   0xe   : > { %s1634_s27 = sshll.u32 %s2466_s18, 3  ;;  %s391_s19 = scalar_lea.vmem %s2454_s1, %s2466_s18  ;;  %1955 = vmatprep.subr.bf16.mxu0 %v2055_v3  ;;  %v1965_v5 = vpack.c.bf16 %v866_v4, %v865_v2  ;;  %v1653_v54 = vld [vmem:[%s2459_s6 + $0x6] ss:$0 sm:$0xff]  ;;  %v1659_v57 = vld [vmem:[%s2456_s3 + $0x1] ss:$0 sm:$0xff] }
   0xf   : > { %s388_s30 = scalar_lea.vmem %s2453_s0, %s1634_s27  ;;  %v2172_v15 = vld [vmem:[%s391_s19] ss:$0 sm:$0xff] }
  0x10   : > { %v396_v8 = vld [vmem:[%s388_s30] sm:$0xff] }
  0x11   : > { %1787 = vmatmul.mubr.msk.f32.vlgmr.msra.gmra.mrb[0].mxu1 %vm409_vm1, %v396_v8  ;;  %1957 = vmatpush3.bf16.msra.mxu0 %v1956_v59 }
  0x12   : > { %1791 = vmatprep.mubr.msk.f32.mxu1 %vm2056_vm0, %v2057_v6  ;;  %1958 = vmatprep.subr.bf16.mxu0 %v2055_v3 }
  0x15   : > { %1960 = vmatpush3.bf16.msra.mxu0 %v1959_v62 }
  0x16   : > { %1961 = vmatprep.subr.bf16.mxu0 %v2055_v3 }
  0x19   : > { %1963 = vmatpush3.bf16.msra.mxu0 %v1962_v1 }
  0x1a   : > { %1964 = vmatprep.subr.bf16.mxu0 %v2055_v3 }
  0x1d   : > { %1966 = vmatpush3.bf16.msra.mxu0 %v1965_v5 }
  0x1e   : > { %1967 = vmatprep.subr.bf16.mxu0 %v2055_v3 }
  0xe4   : > { %v479_v10 = vpop.f32.mrb[0].mxu1 }
  0xe5   : > { %v480_v11 = vadd.f32 %v1636_v9, %v479_v10  ;;  %v1788_v12 = vpop.f32.mrb[1].mxu1  ;;  %v869_v10 = vld [vmem:[%s2462_s9 + $0x60] sm:$0xff] }
  0xe7   : > { %484 = vrot.lane.b32.xlu0 %v480_v11, %s2058_s14 }
 0x159   : > { %v485_v13 = vpop.permute.xlu0 %484 }
 0x15a   : > { %1790 = vmatpush3.xpose.msk.msra.mxu1 %vm409_vm1, %v485_v13 }
 0x15b   : > { %1794 = vmatprep.subr.mxu1 %v2057_v6 }
 0x15d   : > { %1792 = vmatmul.mubr.msk.f32.vlgmr.msra.gmra.mrb[2].mxu1 %vm409_vm1, %v480_v11 }
 0x15e   : > { %1796 = vmatprep.mubr.msk.f32.mxu1 %vm2056_vm0, %v2057_v6 }
 0x230   : > { %v556_v14 = vpop.f32.mrb[2].mxu1 }
 0x231   : > { %v560_v16 = vmul.f32 0.17677669, %v556_v14  ;;  %v1793_v17 = vpop.f32.mrb[3].mxu1 }
 0x233   : > { %v567_v18 = vadd.f32 %v2172_v15, %v560_v16 }
 0x235   : > { %v569_v19 = vsel %vm568_vm2, %v567_v18, -inf }
 0x236   : > { %570 = vmax.xlane.f32.xlu0 %v569_v19 }
 0x2c3   : > { %v571_v20 = vpop.xlane.xlu0 %570 }
 0x2c4   : > { %v572_v21 = vsub.f32 %v567_v18, %v571_v20  ;;  %v1645_v18 = vld [vmem:[%s2459_s6] ss:$0 sm:$0xff]  ;;  %v1646_v20 = vld [vmem:[%s2459_s6 + $0x2] ss:$0 sm:$0xff] }
 0x2c6   : > { %v573_v22 = vmul.f32 1.442695, %v572_v21 }
 0x2c8   : > { %2031 = vpow2.f32 %v573_v22 }
 0x2d2   : > { %v2032_v23 = vpop.eup %2031 }
 0x2d3   : > { %v575_v24 = vsel %vm568_vm2, %v2032_v23, 0.0 }
 0x2d4   : > { %576 = vadd.xlane.f32.xlu1 %v575_v24  ;;  %v872_v24 = vld [vmem:[%s2462_s9 + $0x78] sm:$0xff] }
 0x2e5   : > { %580 = vrot.lane.b32.xlu1 %v480_v11, %s2059_s20  ;;  %v870_v11 = vld [vmem:[%s2462_s9 + $0x68] sm:$0xff] }
 0x2e6   : > { %v1971_v12 = vpack.c.bf16 %v870_v11, %v869_v10 }
 0x361   : > { %v577_v25 = vpop.xlane.xlu1 %576 }
 0x362   : > { %2033 = vrcp.f32 %v577_v25 }
 0x365   : > { %v581_v26 = vpop.permute.xlu1 %580 }
 0x366   : > { %1795 = vmatpush3.msra.mxu1 %v581_v26  ;;  %v1647_v26 = vld [vmem:[%s2461_s8] ss:$0 sm:$0xff] }
 0x367   : > { %1940 = vmatprep.subr.bf16.mxu1 %v2055_v3 }
 0x36c   : > { %v2034_v29 = vpop.eup %2033 }
 0x36d   : > { %v579_v31 = vmul.f32 %v2034_v29, %v2032_v23  ;;  %v871_v23 = vld [vmem:[%s2462_s9 + $0x70] sm:$0xff] }
 0x36e   : > { %v1974_v25 = vpack.c.bf16 %v872_v24, %v871_v23 }
 0x36f   : > { %1797 = vmatmul.mubr.msk.f32.vlgmr.msra.gmra.mrb[4].mxu1 %vm568_vm2, %v579_v31  ;;  %v1649_v31 = vld [vmem:[%s2463_s10] ss:$0 sm:$0xff] }
 0x370   : > { %1942 = vmatpush3.bf16.msra.mxu1 %v1941_v30  ;;  %1807 = vmatprep.mubr.msk.f32.mxu1 %vm2056_vm0, %v2057_v6 }
 0x371   : > { %1943 = vmatprep.subr.bf16.mxu1 %v2055_v3 }
 0x374   : > { %1945 = vmatpush3.bf16.msra.mxu1 %v1944_v34 }
 0x375   : > { %1946 = vmatprep.subr.bf16.mxu1 %v2055_v3 }
 0x442   : > { %v652_v35 = vpop.f32.mrb[4].mxu1 }
 0x443   : > { %v1798_v36 = vpop.f32.mrb[5].mxu1  ;;  %1808 = vmatmul.mubr.msk.f32.vlgmr.msra.gmra.mrb[6].mxu1 %vm409_vm1, %v652_v35 }
 0x444   : > { %1818 = vmatprep.mubr.msk.f32.mxu1 %vm2056_vm0, %v2057_v6  ;;  %1948 = vmatpush3.bf16.msra.mxu1 %v1947_v50 }
 0x445   : > { %1949 = vmatprep.subr.bf16.mxu1 %v2055_v3 }
 0x448   : > { %1951 = vmatpush3.bf16.msra.mxu1 %v1950_v53 }
 0x449   : > { %1976 = vmatprep.subr.bf16.mxu1 %v2055_v3 }
 0x516   : > { %v736_v38 = vpop.f32.mrb[6].mxu1 }
 0x517   : > { %v737_v39 = vadd.f32 %v1642_v37, %v736_v38  ;;  %v1809_v40 = vpop.f32.mrb[7].mxu1 }
 0x519   : > { %v740_v41 = vadd.f32 %v737_v39, %v396_v8  ;;  %v868_v8 = vld [vmem:[%s2462_s9 + $0x58] sm:$0xff] }
 0x51a   : > { %v1968_v9 = vpack.c.bf16 %v868_v8, %v867_v7 }
 0x51b   : > { %v744_v42 = vsel %vm409_vm1, %v740_v41, 0.0 }
 0x51c   : > { %745 = vadd.xlane.f32.xlu1 %v744_v42  ;;  %1969 = vmatpush3.bf16.msra.mxu0 %v1968_v9  ;;  %v1654_v42 = vld [vmem:[%s2455_s2 + $0x20] sm:$0xff] }
 0x51d   : > { %1970 = vmatprep.subr.bf16.mxu0 %v2055_v3 }
 0x520   : > { %1972 = vmatpush3.bf16.msra.mxu0 %v1971_v12  ;;  %v1665_v12 = vld [vmem:[%s2457_s4 + $0x28] sm:$0xff] }
 0x521   : > { %1973 = vmatprep.subr.bf16.mxu0 %v2055_v3 }
 0x524   : > { %1975 = vmatpush3.bf16.msra.mxu0 %v1974_v25 }
 0x525   : > { %1994 = vmatprep.subr.bf16.mxu0 %v2055_v3 }
 0x5a9   : > { %v746_v43 = vpop.xlane.xlu1 %745 }
 0x5aa   : > { %v748_v44 = vmul.f32 0.03125, %v746_v43  ;;  %v1655_v43 = vld [vmem:[%s2455_s2 + $0x28] sm:$0xff] }
 0x5ac   : > { %v749_v45 = vsub.f32 %v740_v41, %v748_v44  ;;  %v1977_v44 = vpack.c.bf16 %v1655_v43, %v1654_v42  ;;  %v1685_v42 = vld [vmem:[%s2462_s9 + $0x98] sm:$0xff] }
 0x5ae   : > { %v750_v46 = vmul.f32 %v749_v45, %v749_v45 }
 0x5b0   : > { %v751_v47 = vsel %vm409_vm1, %v750_v46, 0.0  ;;  %v1657_v46 = vld [vmem:[%s2455_s2 + $0x38] sm:$0xff] }
 0x5b1   : > { %752 = vadd.xlane.f32.xlu0 %v751_v47 }
 0x63e   : > { %v753_v13 = vpop.xlane.xlu0 %752 }
 0x63f   : > { %v754_v14 = vmul.f32 0.03125, %v753_v13 }
 0x641   : > { %v755_v16 = vadd.f32 1e-05, %v754_v14 }
 0x643   : > { %2035 = vrsqrt.f32 %v755_v16 }
 0x64d   : > { %v2036_v17 = vpop.eup %2035 }
 0x64e   : > { %v757_v19 = vmul.f32 %v2036_v17, %v749_v45  ;;  %v1656_v45 = vld [vmem:[%s2455_s2 + $0x30] sm:$0xff] }
 0x64f   : > { %v1980_v47 = vpack.c.bf16 %v1657_v46, %v1656_v45  ;;  %v1666_v17 = vld [vmem:[%s2457_s4 + $0x30] sm:$0xff]  ;;  %v1687_v45 = vld [vmem:[%s2462_s9 + $0xa8] sm:$0xff] }
 0x650   : > { %v764_v21 = vmul.f32 %v1645_v18, %v757_v19  ;;  %v1667_v18 = vld [vmem:[%s2457_s4 + $0x38] sm:$0xff] }
 0x651   : > { %v1986_v19 = vpack.c.bf16 %v1667_v18, %v1666_v17 }
 0x652   : > { %v771_v22 = vadd.f32 %v1646_v20, %v764_v21 }
 0x654   : > { %1819 = vmatmul.mubr.msk.f32.vlgmr.msra.gmra.mrb[8].mxu1 %vm409_vm1, %v771_v22 }
 0x655   : > { %1864 = vmatprep.mubr.msk.f32.mxu1 %vm2056_vm0, %v2057_v6  ;;  %1978 = vmatpush3.bf16.msra.mxu1 %v1977_v44  ;;  %v1686_v44 = vld [vmem:[%s2462_s9 + $0xa0] sm:$0xff] }
 0x656   : > { %1979 = vmatprep.subr.bf16.mxu1 %v2055_v3  ;;  %v2001_v46 = vpack.c.bf16 %v1687_v45, %v1686_v44 }
 0x659   : > { %1981 = vmatpush3.bf16.msra.mxu1 %v1980_v47  ;;  %v1688_v47 = vld [vmem:[%s2462_s9 + $0xb0] sm:$0xff] }
 0x65a   : > { %1867 = vmatprep.subr.mxu1 %v2057_v6 }
 0x727   : > { %v852_v27 = vpop.f32.mrb[8].mxu1 }
 0x728   : > { %v853_v28 = vadd.f32 %v1647_v26, %v852_v27  ;;  %v1820_v29 = vpop.f32.mrb[9].mxu1 }
 0x72a   : > { %v856_v30 = vmax.f32 %v853_v28, 0.0 }
 0x72c   : > { %1854 = vmatmul.mubr.f32.vlgmr.msra.gmra.mrb[0].mxu0 %v856_v30 }
 0x72d   : > { %1931 = vmatprep.mubr.msk.f32.mxu0 %vm2056_vm0, %v2057_v6 }
 0x7ff   : > { %v946_v32 = vpop.f32.mrb[0].mxu0 }
 0x800   : > { %v947_v33 = vadd.f32 %v1649_v31, %v946_v32  ;;  %v1855_v34 = vpop.f32.mrb[1].mxu0 }
 0x802   : > { %v950_v35 = vadd.f32 %v947_v33, %v771_v22  ;;  %v1669_v22 = vld [vmem:[%s2458_s5 + $0x1] ss:$0 sm:$0xff]  ;;  %v1676_v33 = vld [vmem:[%s2460_s7 + $0x28] sm:$0xff] }
 0x804   : > { %v955_v36 = vsel %vm409_vm1, %v950_v35, 0.0 }
 0x805   : > { %956 = vadd.xlane.f32.xlu0 %v955_v36  ;;  %v1678_v36 = vld [vmem:[%s2460_s7 + $0x38] sm:$0xff] }
 0x892   : > { %v957_v37 = vpop.xlane.xlu0 %956 }
 0x893   : > { %v958_v38 = vmul.f32 0.03125, %v957_v37 }
 0x895   : > { %v959_v39 = vsub.f32 %v950_v35, %v958_v38  ;;  %v1677_v35 = vld [vmem:[%s2460_s7 + $0x30] sm:$0xff]  ;;  %v1682_v38 = vld [vmem:[%s2462_s9 + $0x80] sm:$0xff] }
 0x896   : > { %v1992_v37 = vpack.c.bf16 %v1678_v36, %v1677_v35 }
 0x897   : > { %v960_v40 = vmul.f32 %v959_v39, %v959_v39 }
 0x899   : > { %v961_v41 = vsel %vm409_vm1, %v960_v40, 0.0  ;;  %v1684_v40 = vld [vmem:[%s2462_s9 + $0x90] sm:$0xff] }
 0x89a   : > { %962 = vadd.xlane.f32.xlu0 %v961_v41  ;;  %v1998_v43 = vpack.c.bf16 %v1685_v42, %v1684_v40 }
 0x927   : > { %v963_v48 = vpop.xlane.xlu0 %962 }
 0x928   : > { %v964_v49 = vmul.f32 0.03125, %v963_v48  ;;  %v1689_v48 = vld [vmem:[%s2462_s9 + $0xb8] sm:$0xff] }
 0x92a   : > { %v965_v50 = vadd.f32 1e-05, %v964_v49  ;;  %v2004_v49 = vpack.c.bf16 %v1689_v48, %v1688_v47 }
 0x92c   : > { %2037 = vrsqrt.f32 %v965_v50  ;;  %v1690_v50 = vld [vmem:[%s2462_s9 + $0xc0] sm:$0xff] }
 0x936   : > { %v2038_v51 = vpop.eup %2037 }
 0x937   : > { %v967_v53 = vmul.f32 %v2038_v51, %v959_v39  ;;  %v1683_v39 = vld [vmem:[%s2462_s9 + $0x88] sm:$0xff] }
 0x938   : > { %v1995_v41 = vpack.c.bf16 %v1683_v39, %v1682_v38  ;;  %v1691_v51 = vld [vmem:[%s2462_s9 + $0xc8] sm:$0xff] }
 0x939   : > { %v974_v55 = vmul.f32 %v1652_v52, %v967_v53  ;;  %v2007_v52 = vpack.c.bf16 %v1691_v51, %v1690_v50  ;;  %v1692_v53 = vld [vmem:[%s2462_s9 + $0xd0] sm:$0xff] }
 0x93a   : > { %1996 = vmatpush3.bf16.msra.mxu0 %v1995_v41 }
 0x93b   : > { %v981_v56 = vadd.f32 %v1653_v54, %v974_v55  ;;  %1997 = vmatprep.subr.bf16.mxu0 %v2055_v3  ;;  %v1693_v54 = vld [vmem:[%s2462_s9 + $0xd8] sm:$0xff] }
 0x93c   : > { %v2010_v55 = vpack.c.bf16 %v1693_v54, %v1692_v53 }
 0x93d   : > { %1865 = vmatmul.mubr.msk.f32.vlgmr.msra.gmra.mrb[10].mxu1 %vm409_vm1, %v981_v56 }
 0x93e   : > { %1869 = vmatprep.mubr.msk.f32.mxu1 %vm2056_vm0, %v2057_v6  ;;  %1999 = vmatpush3.bf16.msra.mxu0 %v1998_v43 }
 0x93f   : > { %2000 = vmatprep.subr.bf16.mxu0 %v2055_v3 }
 0x942   : > { %2002 = vmatpush3.bf16.msra.mxu0 %v2001_v46 }
 0x943   : > { %2003 = vmatprep.subr.bf16.mxu0 %v2055_v3 }
 0x946   : > { %2005 = vmatpush3.bf16.msra.mxu0 %v2004_v49 }
 0x947   : > { %2006 = vmatprep.subr.bf16.mxu0 %v2055_v3 }
 0x94a   : > { %2008 = vmatpush3.bf16.msra.mxu0 %v2007_v52 }
 0x94b   : > { %2009 = vmatprep.subr.bf16.mxu0 %v2055_v3 }
 0x94e   : > { %2011 = vmatpush3.bf16.msra.mxu0 %v2010_v55 }
 0x94f   : > { %2012 = vmatprep.subr.bf16.mxu0 %v2055_v3 }
 0xa10   : > { %v1064_v58 = vpop.f32.mrb[10].mxu1 }
 0xa11   : > { %v1065_v59 = vadd.f32 %v1659_v57, %v1064_v58  ;;  %v1866_v60 = vpop.f32.mrb[11].mxu1  ;;  %v1695_v57 = vld [vmem:[%s2462_s9 + $0xe8] sm:$0xff] }
 0xa13   : > { %1069 = vrot.lane.b32.xlu0 %v1065_v59, %s2058_s14  ;;  %s395_s14 = scalar_lea.vmem %s2464_s11, %s1634_s27 }
 0xa85   : > { %v1070_v61 = vpop.permute.xlu0 %1069 }
 0xa86   : > { %1868 = vmatpush3.xpose.msk.msra.mxu1 %vm409_vm1, %v1070_v61 }
 0xa87   : > { %1872 = vmatprep.subr.mxu1 %v2057_v6 }
 0xa89   : > { %1870 = vmatmul.mubr.msk.f32.vlgmr.msra.gmra.mrb[12].mxu1 %vm409_vm1, %v1065_v59 }
 0xa8a   : > { %1874 = vmatprep.mubr.msk.f32.mxu1 %vm2056_vm0, %v2057_v6 }
 0xb5c   : > { %v1141_v62 = vpop.f32.mrb[12].mxu1 }
 0xb5d   : > { %v1145_v63 = vmul.f32 0.17677669, %v1141_v62  ;;  %v1871_v0 = vpop.f32.mrb[13].mxu1 }
 0xb5f   : > { %v1146_v1 = vadd.f32 %v2172_v15, %v1145_v63  ;;  %v1664_v15 = vld [vmem:[%s2457_s4 + $0x20] sm:$0xff] }
 0xb60   : > { %v1983_v14 = vpack.c.bf16 %v1665_v12, %v1664_v15  ;;  %v1673_v63 = vld [vmem:[%s2459_s6 + $0x1] ss:$0 sm:$0xff] }
 0xb61   : > { %v1147_v2 = vsel %vm568_vm2, %v1146_v1, -inf  ;;  %v1699_v12 = vld [vmem:[%s2463_s10 + $0x1] ss:$0 sm:$0xff] }
 0xb62   : > { %1148 = vmax.xlane.f32.xlu1 %v1147_v2 }
 0xbef   : > { %v1149_v4 = vpop.xlane.xlu1 %1148 }
 0xbf0   : > { %v1150_v5 = vsub.f32 %v1146_v1, %v1149_v4  ;;  %v1674_v1 = vld [vmem:[%s2459_s6 + $0x3] ss:$0 sm:$0xff] }
 0xbf2   : > { %v1151_v7 = vmul.f32 1.442695, %v1150_v5  ;;  %v1697_v5 = vld [vmem:[%s2462_s9 + $0xf8] sm:$0xff] }
 0xbf4   : > { %2039 = vpow2.f32 %v1151_v7 }
 0xbfe   : > { %v2040_v8 = vpop.eup %2039 }
 0xbff   : > { %v1153_v9 = vsel %vm568_vm2, %v2040_v8, 0.0 }
 0xc00   : > { %1154 = vadd.xlane.f32.xlu1 %v1153_v9 }
 0xc11   : > { %1158 = vrot.lane.b32.xlu1 %v1065_v59, %s2059_s20 }
 0xc8d   : > { %v1155_v10 = vpop.xlane.xlu1 %1154 }
 0xc8e   : > { %2041 = vrcp.f32 %v1155_v10 }
 0xc91   : > { %v1159_v11 = vpop.permute.xlu1 %1158 }
 0xc92   : > { %1873 = vmatpush3.msra.mxu1 %v1159_v11 }
 0xc93   : > { %1982 = vmatprep.subr.bf16.mxu1 %v2055_v3 }
 0xc98   : > { %v2042_v13 = vpop.eup %2041 }
 0xc99   : > { %v1157_v16 = vmul.f32 %v2042_v13, %v2040_v8  ;;  %v1680_v8 = vld [vmem:[%s2461_s8 + $0x1] ss:$0 sm:$0xff] }
 0xc9b   : > { %1875 = vmatmul.mubr.msk.f32.vlgmr.msra.gmra.mrb[14].mxu1 %vm568_vm2, %v1157_v16 }
 0xc9c   : > { %1984 = vmatpush3.bf16.msra.mxu1 %v1983_v14  ;;  %1885 = vmatprep.mubr.msk.f32.mxu1 %vm2056_vm0, %v2057_v6 }
 0xc9d   : > { %1985 = vmatprep.subr.bf16.mxu1 %v2055_v3 }
 0xca0   : > { %1987 = vmatpush3.bf16.msra.mxu1 %v1986_v19 }
 0xca1   : > { %1988 = vmatprep.subr.bf16.mxu1 %v2055_v3 }
 0xd6e   : > { %v1230_v20 = vpop.f32.mrb[14].mxu1 }
 0xd6f   : > { %v1876_v21 = vpop.f32.mrb[15].mxu1  ;;  %1886 = vmatmul.mubr.msk.f32.vlgmr.msra.gmra.mrb[16].mxu1 %vm409_vm1, %v1230_v20 }
 0xd70   : > { %1896 = vmatprep.mubr.msk.f32.mxu1 %vm2056_vm0, %v2057_v6  ;;  %v1675_v6 = vld [vmem:[%s2460_s7 + $0x20] sm:$0xff] }
 0xd71   : > { %v1989_v34 = vpack.c.bf16 %v1676_v33, %v1675_v6 }
 0xd73   : > { %1990 = vmatpush3.bf16.msra.mxu1 %v1989_v34 }
 0xd74   : > { %1991 = vmatprep.subr.bf16.mxu1 %v2055_v3 }
 0xd77   : > { %1993 = vmatpush3.bf16.msra.mxu1 %v1992_v37 }
 0xe42   : > { %v1316_v23 = vpop.f32.mrb[16].mxu1 }
 0xe43   : > { %v1317_v24 = vadd.f32 %v1669_v22, %v1316_v23  ;;  %v1887_v25 = vpop.f32.mrb[17].mxu1 }
 0xe45   : > { %v1320_v26 = vadd.f32 %v1317_v24, %v981_v56  ;;  %v1694_v56 = vld [vmem:[%s2462_s9 + $0xe0] sm:$0xff] }
 0xe46   : > { %v2013_v58 = vpack.c.bf16 %v1695_v57, %v1694_v56 }
 0xe47   : > { %v1325_v27 = vsel %vm409_vm1, %v1320_v26, 0.0 }
 0xe48   : > { %1326 = vadd.xlane.f32.xlu0 %v1325_v27  ;;  %2014 = vmatpush3.bf16.msra.mxu0 %v2013_v58 }
 0xe49   : > { %2015 = vmatprep.subr.bf16.mxu0 %v2055_v3  ;;  %v1696_v3 = vld [vmem:[%s2462_s9 + $0xf0] sm:$0xff] }
 0xe4a   : > { %v2016_v7 = vpack.c.bf16 %v1697_v5, %v1696_v3 }
 0xe4c   : > { %2017 = vmatpush3.bf16.msra.mxu0 %v2016_v7 }
 0xed5   : > { %v1327_v28 = vpop.xlane.xlu0 %1326 }
 0xed6   : > { %v1328_v29 = vmul.f32 0.03125, %v1327_v28  ;;  %v1702_v28 = vld [vmem:[%s2459_s6 + $0x5] ss:$0 sm:$0xff] }
 0xed8   : > { %v1329_v30 = vsub.f32 %v1320_v26, %v1328_v29 }
 0xeda   : > { %v1330_v31 = vmul.f32 %v1329_v30, %v1329_v30 }
 0xedc   : > { %v1331_v32 = vsel %vm409_vm1, %v1330_v31, 0.0 }
 0xedd   : > { %1332 = vadd.xlane.f32.xlu1 %v1331_v32 }
 0xf6a   : > { %v1333_v59 = vpop.xlane.xlu1 %1332 }
 0xf6b   : > { %v1334_v60 = vmul.f32 0.03125, %v1333_v59 }
 0xf6d   : > { %v1335_v61 = vadd.f32 1e-05, %v1334_v60 }
 0xf6f   : > { %2043 = vrsqrt.f32 %v1335_v61 }
 0xf79   : > { %v2044_v62 = vpop.eup %2043 }
 0xf7a   : > { %v1337_v0 = vmul.f32 %v2044_v62, %v1329_v30  ;;  %v1703_v30 = vld [vmem:[%s2459_s6 + $0x7] ss:$0 sm:$0xff] }
 0xf7c   : > { %v1344_v2 = vmul.f32 %v1673_v63, %v1337_v0 }
 0xf7e   : > { %v1351_v4 = vadd.f32 %v1674_v1, %v1344_v2 }
 0xf80   : > { %1897 = vmatmul.mubr.msk.f32.vlgmr.msra.gmra.mrb[18].mxu1 %vm409_vm1, %v1351_v4 }
0x1053   : > { %v1434_v9 = vpop.f32.mrb[18].mxu1 }
0x1054   : > { %v1435_v10 = vadd.f32 %v1680_v8, %v1434_v9  ;;  %v1898_v11 = vpop.f32.mrb[19].mxu1 }
0x1056   : > { %v1438_v15 = vmax.f32 %v1435_v10, 0.0 }
0x1058   : > { %1932 = vmatmul.mubr.f32.vlgmr.msra.gmra.mrb[2].mxu0 %v1438_v15 }
0x112b   : > { %v1530_v13 = vpop.f32.mrb[2].mxu0 }
0x112c   : > { %v1531_v14 = vadd.f32 %v1699_v12, %v1530_v13  ;;  %v1933_v16 = vpop.f32.mrb[3].mxu0 }
0x112e   : > { %v1534_v17 = vadd.f32 %v1531_v14, %v1351_v4 }
0x1130   : > { %v1539_v18 = vsel %vm409_vm1, %v1534_v17, 0.0 }
0x1131   : > { %1540 = vadd.xlane.f32.xlu0 %v1539_v18 }
0x11be   : > { %v1541_v19 = vpop.xlane.xlu0 %1540 }
0x11bf   : > { %v1542_v20 = vmul.f32 0.03125, %v1541_v19 }
0x11c1   : > { %v1543_v21 = vsub.f32 %v1534_v17, %v1542_v20 }
0x11c3   : > { %v1544_v22 = vmul.f32 %v1543_v21, %v1543_v21 }
0x11c5   : > { %v1545_v23 = vsel %vm409_vm1, %v1544_v22, 0.0 }
0x11c6   : > { %1546 = vadd.xlane.f32.xlu0 %v1545_v23 }
0x1253   : > { %v1547_v24 = vpop.xlane.xlu0 %1546 }
0x1254   : > { %v1548_v25 = vmul.f32 0.03125, %v1547_v24 }
0x1256   : > { %v1549_v26 = vadd.f32 1e-05, %v1548_v25 }
0x1258   : > { %2045 = vrsqrt.f32 %v1549_v26 }
0x1262   : > { %v2046_v27 = vpop.eup %2045 }
0x1263   : > { %v1551_v29 = vmul.f32 %v2046_v27, %v1543_v21 }
0x1265   : > { %v1558_v31 = vmul.f32 %v1702_v28, %v1551_v29 }
0x1267   : > { %v1565_v32 = vadd.f32 %v1703_v30, %v1558_v31 }
0x1269   : > { %1566 = vst.msk [vmem:[%s395_s14] sm:$0xff] %vm409_vm1, %v1565_v32 }
0x126a PF: > { %s21_s17 = sadd.s32 1, %s2053_s17  }
0x126b   : > { %p18_p4 = scmp.ge.s32.totalorder %s21_s17, 4  }
0x126d   :  { %20 = sbr.rel (!%p18_p4) target bundleno = 1 (0x1), region = 112 }

// kernel: transformer_forward.3
= control target key start
LH: loop header
LB: loop body
LE: loop exit
PB: predicated region body
PF: predicated region fallthrough
CT: control target
= control target key end

     0   :  { %vm44_vm0 = vcmask 254976   ;;  %vm66_vm1 = vcmask 261120   ;;  %v3037_v0 = vmov 0.0   ;;  %v157_v9 = vlaneseq  ;;  %s3223_s19 = smov 0   ;;  %s3731_s2 = inlined_call_operand.vmem [shape: f32[32,128], index: 2, kind: input, shape index: {}]   ;;  %s3732_s4 = inlined_call_operand.vmem [shape: f32[4,2,32,32], index: 4, kind: input, shape index: {}]   ;;  %s3733_s5 = inlined_call_operand.vmem [shape: f32[4,2,1,32], index: 5, kind: input, shape index: {}]   ;;  %s3734_s6 = inlined_call_operand.vmem [shape: f32[6,2,1,32], index: 6, kind: input, shape index: {}]   ;;  %s3735_s7 = inlined_call_operand.vmem [shape: f32[2,32,128], index: 7, kind: input, shape index: {}]   ;;  %s3736_s8 = inlined_call_operand.vmem [shape: f32[2,1,128], index: 8, kind: input, shape index: {}]   ;;  %s3737_s9 = inlined_call_operand.vmem [shape: f32[2,128,32], index: 9, kind: input, shape index: {}]   ;;  %s3738_s10 = inlined_call_operand.vmem [shape: f32[2,1,32], index: 10, kind: input, shape index: {}]   ;;  %s3739_s13 = inlined_call_operand.vmem [shape: f32[8,2,32], index: 13, kind: output, shape index: {}]   ;;  %s3740_s0 = inlined_call_operand.vmem [shape: f32[2,8,32], index: 0, kind: input, shape index: {}]   ;;  %s3741_s1 = inlined_call_operand.vmem [shape: f32[32,32], index: 1, kind: input, shape index: {}]   ;;  %s3742_s11 = inlined_call_operand.vmem [shape: f32[32,32], index: 11, kind: input, shape index: {}]   ;;  %s3743_s12 = inlined_call_operand.vmem [shape: f32[1,32], index: 12, kind: input, shape index: {}]   ;;  %s3744_s3 = inlined_call_operand.vmem [shape: f32[1,128], index: 3, kind: input, shape index: {}]  }
   0x1   :  { %45 = vst.msk [vmem:[%s3739_s13] sm:$0x3] %vm44_vm0, %v3037_v0  ;;  %46 = vst.msk [vmem:[%s3739_s13 + $0x2] sm:$0x3] %vm44_vm0, %v3037_v0  ;;  %v55_v1 = vld [vmem:[%s3731_s2] sm:$0xff]  ;;  %v56_v2 = vld [vmem:[%s3731_s2 + $0x8] sm:$0xff] }
   0x2   :  { %47 = vst.msk [vmem:[%s3739_s13 + $0x4] sm:$0x3] %vm44_vm0, %v3037_v0  ;;  %48 = vst.msk [vmem:[%s3739_s13 + $0x6] sm:$0x3] %vm44_vm0, %v3037_v0  ;;  %v57_v3 = vld [vmem:[%s3731_s2 + $0x10] sm:$0xff]  ;;  %v2822_v4 = vpack.c.bf16 %v56_v2, %v55_v1  ;;  %v58_v5 = vld [vmem:[%s3731_s2 + $0x18] sm:$0xff] }
   0x3   :  { %49 = vst.msk [vmem:[%s3739_s13 + $0x8] sm:$0x3] %vm44_vm0, %v3037_v0  ;;  %50 = vst.msk [vmem:[%s3739_s13 + $0xa] sm:$0x3] %vm44_vm0, %v3037_v0  ;;  %v53_v6 = vld [vmem:[%s3740_s0] sm:$0xff]  ;;  %v2826_v7 = vpack.c.bf16 %v58_v5, %v57_v3  ;;  %v54_v8 = vld [vmem:[%s3740_s0 + $0x8] sm:$0xff] }
   0x4   :  { %51 = vst.msk [vmem:[%s3739_s13 + $0xc] sm:$0x3] %vm44_vm0, %v3037_v0  ;;  %52 = vst.msk [vmem:[%s3739_s13 + $0xe] sm:$0x3] %vm44_vm0, %v3037_v0  ;;  %2577 = vmatprep.mubr.msk.f32.mxu0 %vm66_vm1, %v53_v6  ;;  %2823 = vmatprep.subr.bf16.mxu0 %v2822_v4  ;;  %v3171_v10 = vld [vmem:[%s3741_s1] sm:$0xff]  ;;  %v3176_v11 = vld [vmem:[%s3741_s1 + $0x8] sm:$0xff] }
   0x5   :  { %2825 = vmatpush3.bf16.msra.mxu0 %v2822_v4  ;;  %v3181_v12 = vld [vmem:[%s3741_s1 + $0x10] sm:$0xff]  ;;  %v3184_v13 = vand.u32 127, %v157_v9  ;;  %v3189_v14 = vld [vmem:[%s3741_s1 + $0x18] sm:$0xff]  ;;  %v3194_v15 = vld [vmem:[%s3742_s11] sm:$0xff]  ;;  %v3225_v25 = vmov 1  }
   0x6   :  { %2827 = vmatprep.subr.bf16.mxu0 %v2826_v7  ;;  %v3199_v16 = vld [vmem:[%s3742_s11 + $0x8] sm:$0xff]  ;;  %v3204_v17 = vld [vmem:[%s3742_s11 + $0x10] sm:$0xff]  ;;  %v3209_v18 = vld [vmem:[%s3742_s11 + $0x18] sm:$0xff]  ;;  %s3227_s11 = smov 1  }
   0x7   :  { %v3214_v19 = vld [vmem:[%s3743_s12] ss:$0 sm:$0xff] }
   0x8   :  { %v2330_v20 = vld [vmem:[%s3744_s3] ss:$0 sm:$0xff] }
   0x9   :  { %2829 = vmatpush3.bf16.msra.mxu0 %v2826_v7 }
   0xc   :  { %2578 = vmatmul.mubr.msk.f32.vlgmr.msra.gmra.mrb[0].mxu0 %vm66_vm1, %v54_v8 }
  0xdf   :  { %v2579_v21 = vpop.f32.mrb[0].mxu0 }
  0xe0   :  { %v3219_v22 = vadd.f32 %v2579_v21, %v2330_v20  ;;  %v139_v23 = vpop.f32.mrb[1].mxu0 }
  0xe1   :  { %v3221_v24 = vadd.f32 %v2330_v20, %v139_v23 }
  0xe2 LB: > { %v2831_v26 = vpack.c.bf16 %v3176_v11, %v3171_v10  ;;  %v3038_v27 = vmov 0.0|0.0   ;;  %v2834_v28 = vpack.c.bf16 %v3189_v14, %v3181_v12  ;;  %vm3039_vm2 = vmmov 0   ;;  %v244_v30 = vld [vmem:[%s3732_s4] sm:$0xff]  ;;  %v245_v31 = vld [vmem:[%s3732_s4 + $0x8] sm:$0xff]  ;;  %v246_v34 = vld [vmem:[%s3732_s4 + $0x10] sm:$0xff]  ;;  %s3042_s29 = smov 96   ;;  %s3035_s11 = sphi %s3227_s11, %s164_s11   ;;  %v3031_v25 = vphi %v3225_v25, %v2297_v25   ;;  %s3027_s19 = sphi %s3223_s19, %s3748_s19  }
  0xe3   : > { %2830 = vmatprep.subr.bf16.mxu1 %v3038_v27  ;;  %2842 = vmatprep.subr.bf16.mxu0 %v3038_v27  ;;  %v3040_v29 = vmov 0.0   ;;  %vm168_vm3 = vcmp.eq.s32.totalorder %v3031_v25, %v3184_v13  ;;  %v2837_v33 = vpack.c.bf16 %v245_v31, %v244_v30  ;;  %v247_v35 = vld [vmem:[%s3732_s4 + $0x18] sm:$0xff]  ;;  %v2337_v37 = vld [vmem:[%s3732_s4 + $0x40] sm:$0xff]  ;;  %v2338_v38 = vld [vmem:[%s3732_s4 + $0x48] sm:$0xff]  ;;  %v3041_v23 = vmov 1966171168  }
  0xe4   : > { %2832 = vmatpush3.bf16.msra.mxu1 %v2831_v26  ;;  %2588 = vmatprep.mubr.msk.f32.mxu1 %vm3039_vm2, %v3040_v29  ;;  %v2333_v32 = vsel %vm168_vm3, 1.0, %v3040_v29  ;;  %v2840_v36 = vpack.c.bf16 %v247_v35, %v246_v34  ;;  %v2843_v39 = vpack.c.bf16 %v2338_v38, %v2337_v37  ;;  %v2339_v42 = vld [vmem:[%s3732_s4 + $0x50] sm:$0xff]  ;;  %v2340_v43 = vld [vmem:[%s3732_s4 + $0x58] sm:$0xff]  ;;  %v2335_v45 = vld [vmem:[%s3733_s5] ss:$0 sm:$0xff]  ;;  %v534_v26 = vunpack.c.l.s4 %v3041_v23  ;;  %s3043_s18 = smov 64  }
  0xe5   : > { %2833 = vmatprep.subr.bf16.mxu1 %v3038_v27  ;;  %2610 = vmatprep.mubr.msk.f32.mxu0 %vm3039_vm2, %v3040_v29  ;;  %v2846_v44 = vpack.c.bf16 %v2340_v43, %v2339_v42  ;;  %v2342_v49 = vld [vmem:[%s3733_s5 + $0x2] ss:$0 sm:$0xff]  ;;  %v2348_v61 = vld [vmem:[%s3732_s4 + $0x88] sm:$0xff]  ;;  %v2349_v62 = vld [vmem:[%s3732_s4 + $0x90] sm:$0xff]  ;;  %v537_v30 = vshrl.u32 %v157_v9, 7  ;;  %vm707_vm4 = vcmask 57344  }
  0xe6   : > { %2844 = vmatpush3.bf16.msra.mxu0 %v2843_v39  ;;  %v2347_v60 = vld [vmem:[%s3732_s4 + $0x80] sm:$0xff]  ;;  %v2350_v0 = vld [vmem:[%s3732_s4 + $0x98] sm:$0xff]  ;;  %vm733_vm5 = vcmask 64512   ;;  %vm899_vm6 = vcmask 1041409   ;;  %s3044_s23 = smov 32   ;;  %p167_p0 = scmp.eq.s32.totalorder %s3027_s19, 0 }
  0xe7   : > { %2845 = vmatprep.subr.bf16.mxu0 %v3038_v27  ;;  %v2849_v63 = vpack.c.bf16 %v2348_v61, %v2347_v60  ;;  %v2852_v1 = vpack.c.bf16 %v2350_v0, %v2349_v62  ;;  %v2345_v6 = vld [vmem:[%s3734_s6] ss:$0 sm:$0xff]  ;;  %v2346_v8 = vld [vmem:[%s3734_s6 + $0x2] ss:$0 sm:$0xff]  ;;  %v2352_v31 = vld [vmem:[%s3733_s5 + $0x4] ss:$0 sm:$0xff] }
  0xe8   : > { %2835 = vmatpush3.bf16.msra.mxu1 %v2834_v28  ;;  %v535_v28 = vunpack.c.0.s8 %v534_v26  ;;  %v2360_v0 = vld [vmem:[%s3732_s4 + $0xc0] sm:$0xff]  ;;  %s2451_s0 = sshll.u32 %s3035_s11, 1  ;;  %vm2300_vm10 = vcmask 1041408   ;;  %s164_s11 = sadd.s32 1, %s3035_s11  }
  0xe9   : > { %2836 = vmatprep.subr.bf16.mxu1 %v3038_v27  ;;  %s2275_s26 = scalar_lea.vmem %s3739_s13, %s2451_s0  ;;  %p161_p3 = scmp.ge.s32.totalorder %s164_s11, 8  }
  0xea   : > { %2847 = vmatpush3.bf16.msra.mxu0 %v2846_v44 }
  0xeb   : > { %2589 = vmatmul.mubr.msk.f32.vlgmr.msra.gmra.mrb[0].mxu1 %vm66_vm1, %v2333_v32  ;;  %2634 = vmatprep.subr.mxu0 %v3040_v29  ;;  %v3331_v32 = vsub.s32 %v535_v28, %v537_v30 }
  0xec   : > { %2838 = vmatpush3.bf16.msra.mxu1 %v2837_v33  ;;  %2599 = vmatprep.mubr.msk.f32.mxu1 %vm3039_vm2, %v3040_v29 }
  0xed   : > { %2839 = vmatprep.subr.bf16.mxu1 %v3038_v27 }
  0xf0   : > { %2841 = vmatpush3.bf16.msra.mxu1 %v2840_v36 }
  0xf1   : > { %2848 = vmatprep.subr.bf16.mxu1 %v3038_v27 }
 0x1be   : > { %v240_v40 = vpop.f32.mrb[0].mxu1 }
 0x1bf   : > { %v2590_v41 = vpop.f32.mrb[1].mxu1  ;;  %2600 = vmatmul.mubr.msk.f32.vlgmr.msra.gmra.mrb[2].mxu1 %vm66_vm1, %v240_v40 }
 0x1c0   : > { %2621 = vmatprep.mubr.msk.f32.mxu1 %vm3039_vm2, %v3040_v29  ;;  %2850 = vmatpush3.bf16.msra.mxu1 %v2849_v63 }
 0x1c1   : > { %2851 = vmatprep.subr.bf16.mxu1 %v3038_v27 }
 0x1c4   : > { %2853 = vmatpush3.bf16.msra.mxu1 %v2852_v1  ;;  %v2361_v1 = vld [vmem:[%s3732_s4 + $0xc8] sm:$0xff] }
 0x1c5   : > { %2624 = vmatprep.subr.mxu1 %v3040_v29 }
 0x292   : > { %v324_v46 = vpop.f32.mrb[2].mxu1 }
 0x293   : > { %v325_v47 = vadd.f32 %v2335_v45, %v324_v46  ;;  %v2601_v48 = vpop.f32.mrb[3].mxu1 }
 0x295   : > { %2611 = vmatmul.mubr.msk.f32.vlgmr.msra.gmra.mrb[0].mxu0 %vm66_vm1, %v325_v47 }
 0x296   : > { %2636 = vmatprep.mubr.msk.f32.mxu0 %vm3039_vm2, %v3040_v29 }
 0x368   : > { %v410_v50 = vpop.f32.mrb[0].mxu0 }
 0x369   : > { %v411_v51 = vadd.f32 %v2342_v49, %v410_v50  ;;  %v2612_v52 = vpop.f32.mrb[1].mxu0 }
 0x36b   : > { %v414_v53 = vadd.f32 %v411_v51, %v240_v40 }
 0x36d   : > { %v418_v54 = vsel %vm44_vm0, %v414_v53, 0.0 }
 0x36e   : > { %419 = vadd.xlane.f32.xlu0 %v418_v54 }
 0x3fb   : > { %v420_v55 = vpop.xlane.xlu0 %419 }
 0x3fc   : > { %v422_v56 = vmul.f32 0.03125, %v420_v55 }
 0x3fe   : > { %v423_v57 = vsub.f32 %v414_v53, %v422_v56 }
 0x400   : > { %v424_v58 = vmul.f32 %v423_v57, %v423_v57 }
 0x402   : > { %v425_v59 = vsel %vm44_vm0, %v424_v58, 0.0 }
 0x403   : > { %426 = vadd.xlane.f32.xlu0 %v425_v59 }
 0x490   : > { %v427_v2 = vpop.xlane.xlu0 %426 }
 0x491   : > { %v428_v3 = vmul.f32 0.03125, %v427_v2 }
 0x493   : > { %v429_v4 = vadd.f32 1e-05, %v428_v3  ;;  %v2855_v3 = vpack.c.bf16 %v2361_v1, %v2360_v0  ;;  %v1101_v0 = vld [vmem:[%s3737_s9 + $0x58] sm:$0xff] }
 0x495   : > { %2985 = vrsqrt.f32 %v429_v4 }
 0x49f   : > { %v2986_v5 = vpop.eup %2985 }
 0x4a0   : > { %v431_v7 = vmul.f32 %v2986_v5, %v423_v57  ;;  %v2362_v5 = vld [vmem:[%s3732_s4 + $0xd0] sm:$0xff] }
 0x4a2   : > { %v438_v20 = vmul.f32 %v2345_v6, %v431_v7  ;;  %v2363_v6 = vld [vmem:[%s3732_s4 + $0xd8] sm:$0xff] }
 0x4a3   : > { %v2858_v7 = vpack.c.bf16 %v2363_v6, %v2362_v5 }
 0x4a4   : > { %v3318_v21 = vadd.f32 %v2346_v8, %v438_v20 }
 0x4a6   : > { %2622 = vmatmul.mubr.msk.f32.vlgmr.msra.gmra.mrb[4].mxu1 %vm66_vm1, %v3318_v21 }
 0x4a7   : > { %2625 = vmatpush3.xpose.msk.msra.mxu1 %vm66_vm1, %v3221_v24  ;;  %2626 = vmatprep.mubr.msk.f32.mxu1 %vm3039_vm2, %v3040_v29 }
 0x4a8   : > { %2629 = vmatprep.subr.mxu1 %v3040_v29 }
 0x579   : > { %v528_v33 = vpop.f32.mrb[4].mxu1 }
 0x57a   : > { %v529_v34 = vadd.f32 %v2352_v31, %v528_v33  ;;  %v2623_v35 = vpop.f32.mrb[5].mxu1  ;;  %v2365_v31 = vld [vmem:[%s3733_s5 + $0x6] ss:$0 sm:$0xff] }
 0x57c   : > { %v539_v36 = vrot.slane %v529_v34, %v3331_v32 }
 0x57e   : > { %v540_v37 = vcombine.high %v539_v36, %v539_v36  ;;  %v547_v38 = vrot.slane %v539_v36, %v3331_v32 }
 0x580   : > { %2627 = vmatmul.mubr.msk.f32.vlgmr.msra.gmra.mrb[6].mxu1 %vm66_vm1, %v547_v38  ;;  %v554_v39 = vrot.slane %v540_v37, %v3331_v32 }
 0x581   : > { %2630 = vmatpush3.xpose.msk.msra.mxu1 %vm66_vm1, %v3219_v22  ;;  %2631 = vmatprep.mubr.msk.f32.mxu1 %vm3039_vm2, %v3040_v29 }
 0x582   : > { %2639 = vmatprep.subr.mxu1 %v3040_v29 }
 0x584   : > { %2632 = vmatmul.mubr.msk.f32.vlgmr.msra.gmra.mrb[8].mxu1 %vm66_vm1, %v554_v39 }
 0x585   : > { %2641 = vmatprep.mubr.msk.f32.mxu1 %vm3039_vm2, %v3040_v29 }
 0x653   : > { %v626_v40 = vpop.f32.mrb[6].mxu1 }
 0x654   : > { %v2628_v41 = vpop.f32.mrb[7].mxu1  ;;  %v705_v45 = vmul.f32 0.17677669, %v626_v40 }
 0x656   : > { %v708_v47 = vsel %vm707_vm4, %v705_v45, -inf }
 0x657   : > { %v701_v42 = vpop.f32.mrb[8].mxu1 }
 0x658   : > { %v706_v43 = vmul.f32 0.17677669, %v701_v42  ;;  %v2633_v44 = vpop.f32.mrb[9].mxu1 }
 0x659   : > { %v1006_v44 = vld [vmem:[%s3735_s7 + $0x8] sm:$0xff] }
 0x65a   : > { %v711_v46 = vsel %vm707_vm4, %v706_v43, -inf }
 0x65b   : > { %712 = vmax.xlane.f32.xlu1 %v711_v46  ;;  %v1008_v46 = vld [vmem:[%s3735_s7 + $0x18] sm:$0xff] }
 0x65f   : > { %709 = vmax.xlane.f32.xlu1 %v708_v47 }
 0x6e8   : > { %v713_v48 = vpop.xlane.xlu1 %712 }
 0x6e9   : > { %v715_v49 = vsub.f32 %v706_v43, %v713_v48  ;;  %v1005_v43 = vld [vmem:[%s3735_s7] sm:$0xff] }
 0x6ea   : > { %v1090_v48 = vld [vmem:[%s3737_s9] sm:$0xff] }
 0x6eb   : > { %v718_v50 = vmul.f32 1.442695, %v715_v49  ;;  %v1091_v49 = vld [vmem:[%s3737_s9 + $0x8] sm:$0xff] }
 0x6ec   : > { %v710_v51 = vpop.xlane.xlu1 %709 }
 0x6ed   : > { %2987 = vpow2.f32 %v718_v50  ;;  %v714_v52 = vsub.f32 %v705_v45, %v710_v51  ;;  %v2861_v45 = vpack.c.bf16 %v1006_v44, %v1005_v43  ;;  %v1092_v50 = vld [vmem:[%s3737_s9 + $0x10] sm:$0xff]  ;;  %v2867_v51 = vpack.c.bf16 %v1091_v49, %v1090_v48 }
 0x6ef   : > { %v716_v53 = vmul.f32 1.442695, %v714_v52  ;;  %v1093_v52 = vld [vmem:[%s3737_s9 + $0x18] sm:$0xff] }
 0x6f1   : > { %2989 = vpow2.f32 %v716_v53  ;;  %v2870_v53 = vpack.c.bf16 %v1093_v52, %v1092_v50  ;;  %v2378_v50 = vld [vmem:[%s3732_s4 + $0x20] sm:$0xff]  ;;  %v2380_v52 = vld [vmem:[%s3732_s4 + $0x30] sm:$0xff] }
 0x6f7   : > { %v2988_v54 = vpop.eup %2987 }
 0x6f8   : > { %v723_v55 = vsel %vm707_vm4, %v2988_v54, 0.0 }
 0x6f9   : > { %724 = vadd.xlane.f32.xlu0 %v723_v55  ;;  %v1095_v55 = vld [vmem:[%s3737_s9 + $0x28] sm:$0xff] }
 0x6fb   : > { %v2990_v56 = vpop.eup %2989 }
 0x6fc   : > { %v720_v57 = vsel %vm707_vm4, %v2990_v56, 0.0 }
 0x6fd   : > { %721 = vadd.xlane.f32.xlu1 %v720_v57  ;;  %v1096_v57 = vld [vmem:[%s3737_s9 + $0x30] sm:$0xff] }
 0x70e   : > { %730 = vrot.lane.b32.xlu1 %v3221_v24, %s3042_s29 }
 0x70f   : > { %807 = vrot.lane.b32.xlu0 %v3219_v22, %s3042_s29 }
 0x786   : > { %v725_v58 = vpop.xlane.xlu0 %724 }
 0x787   : > { %2991 = vrcp.f32 %v725_v58  ;;  %v1097_v58 = vld [vmem:[%s3737_s9 + $0x38] sm:$0xff] }
 0x78a   : > { %v722_v59 = vpop.xlane.xlu1 %721  ;;  %v808_v60 = vpop.permute.xlu0 %807 }
 0x78b   : > { %2993 = vrcp.f32 %v722_v59  ;;  %2640 = vmatpush3.msra.mxu1 %v808_v60  ;;  %v2876_v59 = vpack.c.bf16 %v1097_v58, %v1096_v57  ;;  %v1098_v60 = vld [vmem:[%s3737_s9 + $0x40] sm:$0xff] }
 0x78c   : > { %2860 = vmatprep.subr.bf16.mxu1 %v3038_v27 }
 0x78e   : > { %v731_v61 = vpop.permute.xlu1 %730 }
 0x78f   : > { %2635 = vmatpush3.msra.mxu0 %v731_v61  ;;  %v1099_v61 = vld [vmem:[%s3737_s9 + $0x48] sm:$0xff] }
 0x790   : > { %2854 = vmatprep.subr.bf16.mxu0 %v3038_v27 }
 0x791   : > { %v2992_v62 = vpop.eup %2991 }
 0x792   : > { %v729_v63 = vmul.f32 %v2992_v62, %v2988_v54  ;;  %v1094_v54 = vld [vmem:[%s3737_s9 + $0x20] sm:$0xff]  ;;  %v2879_v62 = vpack.c.bf16 %v1099_v61, %v1098_v60  ;;  %v2376_v60 = vld [vmem:[%s3734_s6 + $0x8] ss:$0 sm:$0xff] }
 0x794   : > { %2642 = vmatmul.mubr.msk.f32.vlgmr.msra.gmra.mrb[10].mxu1 %vm733_vm5, %v729_v63  ;;  %v1100_v63 = vld [vmem:[%s3737_s9 + $0x50] sm:$0xff] }
 0x795   : > { %v2994_v2 = vpop.eup %2993  ;;  %2663 = vmatprep.mubr.msk.f32.mxu1 %vm3039_vm2, %v3040_v29  ;;  %2862 = vmatpush3.bf16.msra.mxu1 %v2861_v45  ;;  %v2882_v1 = vpack.c.bf16 %v1101_v0, %v1100_v63  ;;  %v2386_v63 = vld [vmem:[%s3732_s4 + $0x68] sm:$0xff] }
 0x796   : > { %v727_v4 = vmul.f32 %v2994_v2, %v2990_v56  ;;  %2863 = vmatprep.subr.bf16.mxu1 %v3038_v27  ;;  %v2873_v56 = vpack.c.bf16 %v1095_v55, %v1094_v54  ;;  %v1102_v2 = vld [vmem:[%s3737_s9 + $0x60] sm:$0xff]  ;;  %v2381_v54 = vld [vmem:[%s3732_s4 + $0x38] sm:$0xff]  ;;  %v2377_v0 = vld [vmem:[%s3734_s6 + $0xa] ss:$0 sm:$0xff] }
 0x797   : > { %v2894_v55 = vpack.c.bf16 %v2381_v54, %v2380_v52 }
 0x798   : > { %2637 = vmatmul.mubr.msk.f32.vlgmr.msra.gmra.mrb[2].mxu0 %vm733_vm5, %v727_v4 }
 0x799   : > { %2856 = vmatpush3.bf16.msra.mxu0 %v2855_v3  ;;  %2652 = vmatprep.mubr.msk.f32.mxu0 %vm3039_vm2, %v3040_v29  ;;  %v1103_v3 = vld [vmem:[%s3737_s9 + $0x68] sm:$0xff] }
 0x79a   : > { %2857 = vmatprep.subr.bf16.mxu0 %v3038_v27  ;;  %v2885_v4 = vpack.c.bf16 %v1103_v3, %v1102_v2 }
 0x79d   : > { %2859 = vmatpush3.bf16.msra.mxu0 %v2858_v7 }
 0x79e   : > { %2866 = vmatprep.subr.bf16.mxu0 %v3038_v27 }
 0x867   : > { %v879_v8 = vpop.f32.mrb[10].mxu1 }
 0x868   : > { %v2643_v20 = vpop.f32.mrb[11].mxu1  ;;  %v898_v23 = vrot.slane %v879_v8, 7 }
 0x869   : > { %v2369_v20 = vld [vmem:[%s3734_s6 + $0x4] ss:$0 sm:$0xff] }
 0x86b   : > { %v803_v26 = vpop.f32.mrb[2].mxu0 }
 0x86c   : > { %v900_v28 = vsel %vm899_vm6, %v898_v23, %v803_v26  ;;  %v2638_v30 = vpop.f32.mrb[3].mxu0  ;;  %v2370_v26 = vld [vmem:[%s3734_s6 + $0x6] ss:$0 sm:$0xff] }
 0x86d   : > { %2653 = vmatmul.mubr.msk.f32.vlgmr.msra.gmra.mrb[4].mxu0 %vm66_vm1, %v900_v28 }
 0x86e   : > { %2698 = vmatprep.mubr.msk.f32.mxu0 %vm3039_vm2, %v3040_v29  ;;  %2868 = vmatpush3.bf16.msra.mxu0 %v2867_v51  ;;  %v2379_v51 = vld [vmem:[%s3732_s4 + $0x28] sm:$0xff] }
 0x86f   : > { %2869 = vmatprep.subr.bf16.mxu0 %v3038_v27 }
 0x872   : > { %2871 = vmatpush3.bf16.msra.mxu0 %v2870_v53  ;;  %v2891_v53 = vpack.c.bf16 %v2379_v51, %v2378_v50  ;;  %v2395_v51 = vld [vmem:[%s3734_s6 + $0x3] ss:$0 sm:$0xff] }
 0x873   : > { %2872 = vmatprep.subr.bf16.mxu0 %v3038_v27 }
 0x876   : > { %2874 = vmatpush3.bf16.msra.mxu0 %v2873_v56 }
 0x877   : > { %2875 = vmatprep.subr.bf16.mxu0 %v3038_v27 }
 0x87a   : > { %2877 = vmatpush3.bf16.msra.mxu0 %v2876_v59 }
 0x87b   : > { %2878 = vmatprep.subr.bf16.mxu0 %v3038_v27 }
 0x87e   : > { %2880 = vmatpush3.bf16.msra.mxu0 %v2879_v62  ;;  %v2385_v62 = vld [vmem:[%s3732_s4 + $0x60] sm:$0xff] }
 0x87f   : > { %2881 = vmatprep.subr.bf16.mxu0 %v3038_v27  ;;  %v2897_v2 = vpack.c.bf16 %v2386_v63, %v2385_v62 }
 0x882   : > { %2883 = vmatpush3.bf16.msra.mxu0 %v2882_v1 }
 0x883   : > { %2884 = vmatprep.subr.bf16.mxu0 %v3038_v27 }
 0x886   : > { %2886 = vmatpush3.bf16.msra.mxu0 %v2885_v4  ;;  %v2387_v4 = vld [vmem:[%s3732_s4 + $0x70] sm:$0xff] }
 0x887   : > { %2887 = vmatprep.subr.bf16.mxu0 %v3038_v27 }
 0x940   : > { %v969_v33 = vpop.f32.mrb[4].mxu0 }
 0x941   : > { %v970_v34 = vadd.f32 %v2365_v31, %v969_v33  ;;  %v2654_v35 = vpop.f32.mrb[5].mxu0  ;;  %v1104_v31 = vld [vmem:[%s3737_s9 + $0x70] sm:$0xff]  ;;  %v1105_v33 = vld [vmem:[%s3737_s9 + $0x78] sm:$0xff] }
 0x942   : > { %v2371_v35 = vld [vmem:[%s3736_s8] ss:$0 sm:$0xff] }
 0x943   : > { %v973_v36 = vadd.f32 %v970_v34, %v3318_v21  ;;  %v1007_v21 = vld [vmem:[%s3735_s7 + $0x10] sm:$0xff]  ;;  %v2888_v34 = vpack.c.bf16 %v1105_v33, %v1104_v31 }
 0x944   : > { %v2864_v47 = vpack.c.bf16 %v1008_v46, %v1007_v21 }
 0x945   : > { %v978_v37 = vsel %vm44_vm0, %v973_v36, 0.0  ;;  %2889 = vmatpush3.bf16.msra.mxu0 %v2888_v34 }
 0x946   : > { %979 = vadd.xlane.f32.xlu1 %v978_v37  ;;  %2865 = vmatpush3.bf16.msra.mxu1 %v2864_v47 }
 0x947   : > { %2890 = vmatprep.subr.bf16.mxu1 %v3038_v27  ;;  %2744 = vmatprep.subr.mxu0 %v3040_v29 }
 0x9d3   : > { %v980_v38 = vpop.xlane.xlu1 %979 }
 0x9d4   : > { %v981_v39 = vmul.f32 0.03125, %v980_v38 }
 0x9d6   : > { %v982_v40 = vsub.f32 %v973_v36, %v981_v39 }
 0x9d8   : > { %v983_v41 = vmul.f32 %v982_v40, %v982_v40 }
 0x9da   : > { %v984_v42 = vsel %vm44_vm0, %v983_v41, 0.0 }
 0x9db   : > { %985 = vadd.xlane.f32.xlu0 %v984_v42 }
 0xa68   : > { %v986_v5 = vpop.xlane.xlu0 %985 }
 0xa69   : > { %v987_v6 = vmul.f32 0.03125, %v986_v5  ;;  %v2388_v5 = vld [vmem:[%s3732_s4 + $0x78] sm:$0xff] }
 0xa6b   : > { %v988_v7 = vadd.f32 1e-05, %v987_v6  ;;  %v2900_v6 = vpack.c.bf16 %v2388_v5, %v2387_v4 }
 0xa6d   : > { %2995 = vrsqrt.f32 %v988_v7  ;;  %v2383_v7 = vld [vmem:[%s3733_s5 + $0x1] ss:$0 sm:$0xff] }
 0xa77   : > { %v2996_v8 = vpop.eup %2995 }
 0xa78   : > { %v990_v23 = vmul.f32 %v2996_v8, %v982_v40  ;;  %v2373_v40 = vld [vmem:[%s3738_s10] ss:$0 sm:$0xff] }
 0xa7a   : > { %v997_v28 = vmul.f32 %v2369_v20, %v990_v23 }
 0xa7c   : > { %v1004_v30 = vadd.f32 %v2370_v26, %v997_v28  ;;  %v2390_v26 = vld [vmem:[%s3733_s5 + $0x3] ss:$0 sm:$0xff] }
 0xa7e   : > { %2664 = vmatmul.mubr.msk.f32.vlgmr.msra.gmra.mrb[12].mxu1 %vm66_vm1, %v1004_v30 }
 0xa7f   : > { %2709 = vmatprep.mubr.msk.f32.mxu1 %vm3039_vm2, %v3040_v29  ;;  %2892 = vmatpush3.bf16.msra.mxu1 %v2891_v53 }
 0xa80   : > { %2893 = vmatprep.subr.bf16.mxu1 %v3038_v27 }
 0xa83   : > { %2895 = vmatpush3.bf16.msra.mxu1 %v2894_v55  ;;  %v2401_v55 = vld [vmem:[%s3733_s5 + $0x5] ss:$0 sm:$0xff] }
 0xa84   : > { %2896 = vmatprep.subr.bf16.mxu1 %v3038_v27 }
 0xb51   : > { %v1085_v36 = vpop.f32.mrb[12].mxu1 }
 0xb52   : > { %v1086_v37 = vadd.f32 %v2371_v35, %v1085_v36  ;;  %v2665_v38 = vpop.f32.mrb[13].mxu1 }
 0xb54   : > { %v1089_v39 = vmax.f32 %v1086_v37, 0.0 }
 0xb56   : > { %2699 = vmatmul.mubr.f32.vlgmr.msra.gmra.mrb[6].mxu0 %v1089_v39 }
 0xb57   : > { %2746 = vmatprep.mubr.msk.f32.mxu0 %vm3039_vm2, %v3040_v29 }
 0xc29   : > { %v1179_v41 = vpop.f32.mrb[6].mxu0 }
 0xc2a   : > { %v1180_v42 = vadd.f32 %v2373_v40, %v1179_v41  ;;  %v2700_v43 = vpop.f32.mrb[7].mxu0  ;;  %v2396_v40 = vld [vmem:[%s3732_s4 + $0xa0] sm:$0xff]  ;;  %v2397_v41 = vld [vmem:[%s3732_s4 + $0xa8] sm:$0xff] }
 0xc2b   : > { %v2903_v43 = vpack.c.bf16 %v2397_v41, %v2396_v40 }
 0xc2c   : > { %v1183_v44 = vadd.f32 %v1180_v42, %v1004_v30  ;;  %v2398_v42 = vld [vmem:[%s3732_s4 + $0xb0] sm:$0xff] }
 0xc2e   : > { %v1188_v21 = vsel %vm44_vm0, %v1183_v44, 0.0 }
 0xc2f   : > { %1189 = vadd.xlane.f32.xlu0 %v1188_v21 }
 0xcbc   : > { %v1190_v45 = vpop.xlane.xlu0 %1189 }
 0xcbd   : > { %v1191_v46 = vmul.f32 0.03125, %v1190_v45 }
 0xcbf   : > { %v1192_v47 = vsub.f32 %v1183_v44, %v1191_v46  ;;  %v2399_v44 = vld [vmem:[%s3732_s4 + $0xb8] sm:$0xff] }
 0xcc0   : > { %v2906_v21 = vpack.c.bf16 %v2399_v44, %v2398_v42  ;;  %v2410_v44 = vld [vmem:[%s3732_s4 + $0xe8] sm:$0xff] }
 0xcc1   : > { %v1193_v48 = vmul.f32 %v1192_v47, %v1192_v47 }
 0xcc3   : > { %v1194_v49 = vsel %vm44_vm0, %v1193_v48, 0.0 }
 0xcc4   : > { %1195 = vadd.xlane.f32.xlu1 %v1194_v49  ;;  %v2394_v49 = vld [vmem:[%s3734_s6 + $0x1] ss:$0 sm:$0xff] }
 0xd51   : > { %v1196_v56 = vpop.xlane.xlu1 %1195 }
 0xd52   : > { %v1197_v57 = vmul.f32 0.03125, %v1196_v56 }
 0xd54   : > { %v1198_v58 = vadd.f32 1e-05, %v1197_v57 }
 0xd56   : > { %2997 = vrsqrt.f32 %v1198_v58 }
 0xd60   : > { %v2998_v59 = vpop.eup %2997 }
 0xd61   : > { %v1200_v61 = vmul.f32 %v2998_v59, %v1192_v47 }
 0xd63   : > { %v1207_v1 = vmul.f32 %v2376_v60, %v1200_v61 }
 0xd65   : > { %v1214_v3 = vadd.f32 %v2377_v0, %v1207_v1 }
 0xd67   : > { %2710 = vmatmul.mubr.msk.f32.vlgmr.msra.gmra.mrb[14].mxu1 %vm66_vm1, %v1214_v3 }
 0xd68   : > { %2898 = vmatpush3.bf16.msra.mxu1 %v2897_v2  ;;  %2720 = vmatprep.mubr.msk.f32.mxu1 %vm3039_vm2, %v3040_v29 }
 0xd69   : > { %2899 = vmatprep.subr.bf16.mxu1 %v3038_v27 }
 0xd6c   : > { %2901 = vmatpush3.bf16.msra.mxu1 %v2900_v6 }
 0xd6d   : > { %2902 = vmatprep.subr.bf16.mxu1 %v3038_v27 }
 0xe3a   : > { %v1297_v8 = vpop.f32.mrb[14].mxu1 }
 0xe3b   : > { %v1298_v20 = vadd.f32 %v2383_v7, %v1297_v8  ;;  %v2711_v23 = vpop.f32.mrb[15].mxu1 }
 0xe3d   : > { %2721 = vmatmul.mubr.msk.f32.vlgmr.msra.gmra.mrb[16].mxu1 %vm66_vm1, %v1298_v20 }
 0xe3e   : > { %2731 = vmatprep.mubr.msk.f32.mxu1 %vm3039_vm2, %v3040_v29  ;;  %2904 = vmatpush3.bf16.msra.mxu1 %v2903_v43  ;;  %v2409_v43 = vld [vmem:[%s3732_s4 + $0xe0] sm:$0xff] }
 0xe3f   : > { %2905 = vmatprep.subr.bf16.mxu1 %v3038_v27 }
 0xe42   : > { %2907 = vmatpush3.bf16.msra.mxu1 %v2906_v21  ;;  %v2909_v21 = vpack.c.bf16 %v2410_v44, %v2409_v43  ;;  %v2440_v43 = vld [vmem:[%s3737_s9 + $0xe8] sm:$0xff] }
 0xe43   : > { %2734 = vmatprep.subr.mxu1 %v3040_v29 }
 0xf10   : > { %v1383_v28 = vpop.f32.mrb[16].mxu1 }
 0xf11   : > { %v1384_v30 = vadd.f32 %v2390_v26, %v1383_v28  ;;  %v2722_v31 = vpop.f32.mrb[17].mxu1 }
 0xf13   : > { %v1387_v33 = vadd.f32 %v1384_v30, %v1214_v3 }
 0xf15   : > { %v1392_v34 = vsel %vm44_vm0, %v1387_v33, 0.0 }
 0xf16   : > { %1393 = vadd.xlane.f32.xlu0 %v1392_v34 }
 0xf2c   : > { %1528 = vrot.lane.b32.xlu0 %v3221_v24, %s3043_s18 }
 0xfa3   : > { %v1394_v35 = vpop.xlane.xlu0 %1393 }
 0xfa4   : > { %v1395_v36 = vmul.f32 0.03125, %v1394_v35 }
 0xfa6   : > { %v1396_v37 = vsub.f32 %v1387_v33, %v1395_v36 }
 0xfa7   : > { %v1529_v54 = vpop.permute.xlu0 %1528 }
 0xfa8   : > { %v1397_v38 = vmul.f32 %v1396_v37, %v1396_v37 }
 0xfaa   : > { %v1398_v39 = vsel %vm44_vm0, %v1397_v38, 0.0 }
 0xfab   : > { %1399 = vadd.xlane.f32.xlu1 %v1398_v39 }
 0xfbc   : > { %1604 = vrot.lane.b32.xlu1 %v3219_v22, %s3043_s18 }
0x1038   : > { %v1400_v45 = vpop.xlane.xlu1 %1399 }
0x1039   : > { %v1401_v46 = vmul.f32 0.03125, %v1400_v45  ;;  %v2411_v45 = vld [vmem:[%s3732_s4 + $0xf0] sm:$0xff] }
0x103b   : > { %v1402_v47 = vadd.f32 1e-05, %v1401_v46  ;;  %v2412_v46 = vld [vmem:[%s3732_s4 + $0xf8] sm:$0xff] }
0x103c   : > { %v1605_v62 = vpop.permute.xlu1 %1604 }
0x103d   : > { %2999 = vrsqrt.f32 %v1402_v47  ;;  %v2912_v47 = vpack.c.bf16 %v2412_v46, %v2411_v45 }
0x1047   : > { %v3000_v48 = vpop.eup %2999 }
0x1048   : > { %v1404_v50 = vmul.f32 %v3000_v48, %v1396_v37 }
0x104a   : > { %v1411_v52 = vmul.f32 %v2394_v49, %v1404_v50 }
0x104c   : > { %v3542_v53 = vadd.f32 %v2395_v51, %v1411_v52 }
0x104e   : > { %2732 = vmatmul.mubr.msk.f32.vlgmr.msra.gmra.mrb[18].mxu1 %vm66_vm1, %v3542_v53 }
0x104f   : > { %2736 = vmatprep.mubr.msk.f32.mxu1 %vm3039_vm2, %v3040_v29  ;;  %2735 = vmatpush3.xpose.msk.msra.mxu1 %vm66_vm1, %v1529_v54 }
0x1050   : > { %2739 = vmatprep.subr.mxu1 %v3040_v29 }
0x1121   : > { %v1501_v56 = vpop.f32.mrb[18].mxu1 }
0x1122   : > { %v1502_v57 = vadd.f32 %v2401_v55, %v1501_v56  ;;  %v2733_v58 = vpop.f32.mrb[19].mxu1  ;;  %v2414_v55 = vld [vmem:[%s3733_s5 + $0x7] ss:$0 sm:$0xff] }
0x1124   : > { %v1512_v59 = vrot.slane %v1502_v57, %v3331_v32 }
0x1126   : > { %v1513_v60 = vcombine.high %v1512_v59, %v1512_v59  ;;  %v1520_v61 = vrot.slane %v1512_v59, %v3331_v32 }
0x1128   : > { %2737 = vmatmul.mubr.msk.f32.vlgmr.msra.gmra.mrb[20].mxu1 %vm66_vm1, %v1520_v61  ;;  %v1527_v63 = vrot.slane %v1513_v60, %v3331_v32 }
0x1129   : > { %2740 = vmatpush3.xpose.msk.msra.mxu1 %vm66_vm1, %v1605_v62  ;;  %2741 = vmatprep.mubr.msk.f32.mxu1 %vm3039_vm2, %v3040_v29 }
0x112a   : > { %2749 = vmatprep.subr.mxu1 %v3040_v29 }
0x112c   : > { %2742 = vmatmul.mubr.msk.f32.vlgmr.msra.gmra.mrb[22].mxu1 %vm66_vm1, %v1527_v63 }
0x112d   : > { %2751 = vmatprep.mubr.msk.f32.mxu1 %vm3039_vm2, %v3040_v29 }
0x11fb   : > { %v1600_v0 = vpop.f32.mrb[20].mxu1 }
0x11fc   : > { %v1680_v1 = vmul.f32 0.17677669, %v1600_v0  ;;  %v2738_v2 = vpop.f32.mrb[21].mxu1 }
0x11fd   : > { %v2420_v2 = vld [vmem:[%s3735_s7 + $0x20] sm:$0xff] }
0x11fe   : > { %v1682_v3 = vsel %vm707_vm4, %v1680_v1, -inf }
0x11ff   : > { %1683 = vmax.xlane.f32.xlu0 %v1682_v3  ;;  %v1676_v4 = vpop.f32.mrb[22].mxu1  ;;  %v2421_v3 = vld [vmem:[%s3735_s7 + $0x28] sm:$0xff] }
0x1200   : > { %v1681_v5 = vmul.f32 0.17677669, %v1676_v4  ;;  %v2743_v6 = vpop.f32.mrb[23].mxu1  ;;  %v2915_v4 = vpack.c.bf16 %v2421_v3, %v2420_v2 }
0x1202   : > { %v1685_v7 = vsel %vm707_vm4, %v1681_v5, -inf }
0x1203   : > { %1686 = vmax.xlane.f32.xlu1 %v1685_v7  ;;  %v2427_v7 = vld [vmem:[%s3737_s9 + $0x80] sm:$0xff] }
0x128c   : > { %v1684_v32 = vpop.xlane.xlu0 %1683 }
0x128d   : > { %v1688_v8 = vsub.f32 %v1680_v1, %v1684_v32  ;;  %v2428_v32 = vld [vmem:[%s3737_s9 + $0x88] sm:$0xff] }
0x128f   : > { %v1690_v20 = vmul.f32 1.442695, %v1688_v8  ;;  %v2429_v8 = vld [vmem:[%s3737_s9 + $0x90] sm:$0xff] }
0x1290   : > { %v1687_v23 = vpop.xlane.xlu1 %1686 }
0x1291   : > { %3001 = vpow2.f32 %v1690_v20  ;;  %v1689_v26 = vsub.f32 %v1681_v5, %v1687_v23  ;;  %v2423_v5 = vld [vmem:[%s3735_s7 + $0x38] sm:$0xff]  ;;  %v2921_v20 = vpack.c.bf16 %v2428_v32, %v2427_v7  ;;  %v2945_v7 = vpack.c.bf16 %v3199_v16, %v3194_v15 }
0x1292   : > { %v2430_v23 = vld [vmem:[%s3737_s9 + $0x98] sm:$0xff]  ;;  %v2948_v32 = vpack.c.bf16 %v3209_v18, %v3204_v17 }
0x1293   : > { %v1692_v28 = vmul.f32 1.442695, %v1689_v26  ;;  %v2924_v26 = vpack.c.bf16 %v2430_v23, %v2429_v8 }
0x1295   : > { %3003 = vpow2.f32 %v1692_v28  ;;  %v2431_v28 = vld [vmem:[%s3737_s9 + $0xa0] sm:$0xff] }
0x129b   : > { %v3002_v30 = vpop.eup %3001 }
0x129c   : > { %v1694_v31 = vsel %vm707_vm4, %v3002_v30, 0.0 }
0x129d   : > { %1695 = vadd.xlane.f32.xlu1 %v1694_v31 }
0x129f   : > { %v3004_v33 = vpop.eup %3003 }
0x12a0   : > { %v1697_v34 = vsel %vm707_vm4, %v3004_v33, 0.0 }
0x12a1   : > { %1698 = vadd.xlane.f32.xlu0 %v1697_v34  ;;  %v2434_v34 = vld [vmem:[%s3737_s9 + $0xb8] sm:$0xff] }
0x12ae   : > { %1704 = vrot.lane.b32.xlu1 %v3221_v24, %s3044_s23 }
0x12b7   : > { %1780 = vrot.lane.b32.xlu0 %v3219_v22, %s3044_s23  ;;  %s2270_s23 = scalar_select %p167_p0, 1, 0 }
0x132a   : > { %v1696_v35 = vpop.xlane.xlu1 %1695 }
0x132b   : > { %3005 = vrcp.f32 %v1696_v35 }
0x132e   : > { %v1699_v36 = vpop.xlane.xlu0 %1698  ;;  %v1705_v37 = vpop.permute.xlu1 %1704 }
0x132f   : > { %3007 = vrcp.f32 %v1699_v36  ;;  %2745 = vmatpush3.msra.mxu0 %v1705_v37  ;;  %v2435_v36 = vld [vmem:[%s3737_s9 + $0xc0] sm:$0xff]  ;;  %v2436_v37 = vld [vmem:[%s3737_s9 + $0xc8] sm:$0xff] }
0x1330   : > { %2908 = vmatprep.subr.bf16.mxu0 %v3038_v27 }
0x1332   : > { %v1781_v38 = vpop.permute.xlu0 %1780 }
0x1333   : > { %2750 = vmatpush3.msra.mxu1 %v1781_v38  ;;  %v2933_v38 = vpack.c.bf16 %v2436_v37, %v2435_v36 }
0x1334   : > { %2914 = vmatprep.subr.bf16.mxu1 %v3038_v27 }
0x1335   : > { %v3006_v39 = vpop.eup %3005 }
0x1336   : > { %v1701_v40 = vmul.f32 %v3006_v39, %v3002_v30  ;;  %v2432_v30 = vld [vmem:[%s3737_s9 + $0xa8] sm:$0xff]  ;;  %v2437_v39 = vld [vmem:[%s3737_s9 + $0xd0] sm:$0xff] }
0x1337   : > { %v2927_v31 = vpack.c.bf16 %v2432_v30, %v2431_v28  ;;  %v2447_v28 = vld [vmem:[%s3734_s6 + $0x9] ss:$0 sm:$0xff] }
0x1338   : > { %2747 = vmatmul.mubr.msk.f32.vlgmr.msra.gmra.mrb[8].mxu0 %vm733_vm5, %v1701_v40  ;;  %v2438_v40 = vld [vmem:[%s3737_s9 + $0xd8] sm:$0xff] }
0x1339   : > { %v3008_v41 = vpop.eup %3007  ;;  %2762 = vmatprep.mubr.msk.f32.mxu0 %vm3039_vm2, %v3040_v29  ;;  %2910 = vmatpush3.bf16.msra.mxu0 %v2909_v21 }
0x133a   : > { %v1703_v42 = vmul.f32 %v3008_v41, %v3004_v33  ;;  %2911 = vmatprep.subr.bf16.mxu0 %v3038_v27  ;;  %v2433_v33 = vld [vmem:[%s3737_s9 + $0xb0] sm:$0xff]  ;;  %v2936_v41 = vpack.c.bf16 %v2438_v40, %v2437_v39 }
0x133b   : > { %v2930_v35 = vpack.c.bf16 %v2434_v34, %v2433_v33 }
0x133c   : > { %2752 = vmatmul.mubr.msk.f32.vlgmr.msra.gmra.mrb[24].mxu1 %vm733_vm5, %v1703_v42  ;;  %v2439_v42 = vld [vmem:[%s3737_s9 + $0xe0] sm:$0xff] }
0x133d   : > { %2773 = vmatprep.mubr.msk.f32.mxu1 %vm3039_vm2, %v3040_v29  ;;  %2913 = vmatpush3.bf16.msra.mxu0 %v2912_v47  ;;  %v2939_v44 = vpack.c.bf16 %v2440_v43, %v2439_v42 }
0x133e   : > { %2920 = vmatprep.subr.bf16.mxu0 %v3038_v27  ;;  %2916 = vmatpush3.bf16.msra.mxu1 %v2915_v4 }
0x133f   : > { %2917 = vmatprep.subr.bf16.mxu1 %v3038_v27 }
0x140b   : > { %v1776_v48 = vpop.f32.mrb[8].mxu0 }
0x140c   : > { %v2748_v49 = vpop.f32.mrb[9].mxu0 }
0x140f   : > { %v1852_v50 = vpop.f32.mrb[24].mxu1 }
0x1410   : > { %v1871_v51 = vrot.slane %v1852_v50, 7  ;;  %v2753_v52 = vpop.f32.mrb[25].mxu1  ;;  %v2419_v50 = vld [vmem:[%s3734_s6 + $0x7] ss:$0 sm:$0xff] }
0x1412   : > { %v1872_v54 = vsel %vm899_vm6, %v1871_v51, %v1776_v48  ;;  %v2418_v48 = vld [vmem:[%s3734_s6 + $0x5] ss:$0 sm:$0xff] }
0x1413   : > { %2763 = vmatmul.mubr.msk.f32.vlgmr.msra.gmra.mrb[10].mxu0 %vm66_vm1, %v1872_v54  ;;  %v2441_v54 = vld [vmem:[%s3737_s9 + $0xf0] sm:$0xff] }
0x1414   : > { %2808 = vmatprep.mubr.msk.f32.mxu0 %vm3039_vm2, %v3040_v29  ;;  %2922 = vmatpush3.bf16.msra.mxu0 %v2921_v20 }
0x1415   : > { %2923 = vmatprep.subr.bf16.mxu0 %v3038_v27 }
0x1418   : > { %2925 = vmatpush3.bf16.msra.mxu0 %v2924_v26 }
0x1419   : > { %2926 = vmatprep.subr.bf16.mxu0 %v3038_v27 }
0x141c   : > { %2928 = vmatpush3.bf16.msra.mxu0 %v2927_v31  ;;  %v2448_v31 = vld [vmem:[%s3734_s6 + $0xb] ss:$0 sm:$0xff] }
0x141d   : > { %2929 = vmatprep.subr.bf16.mxu0 %v3038_v27 }
0x1420   : > { %2931 = vmatpush3.bf16.msra.mxu0 %v2930_v35 }
0x1421   : > { %2932 = vmatprep.subr.bf16.mxu0 %v3038_v27 }
0x1424   : > { %2934 = vmatpush3.bf16.msra.mxu0 %v2933_v38 }
0x1425   : > { %2935 = vmatprep.subr.bf16.mxu0 %v3038_v27 }
0x1428   : > { %2937 = vmatpush3.bf16.msra.mxu0 %v2936_v41 }
0x1429   : > { %2938 = vmatprep.subr.bf16.mxu0 %v3038_v27 }
0x142c   : > { %2940 = vmatpush3.bf16.msra.mxu0 %v2939_v44 }
0x142d   : > { %2941 = vmatprep.subr.bf16.mxu0 %v3038_v27 }
0x14e6   : > { %v1941_v56 = vpop.f32.mrb[10].mxu0 }
0x14e7   : > { %v1942_v57 = vadd.f32 %v2414_v55, %v1941_v56  ;;  %v2764_v58 = vpop.f32.mrb[11].mxu0  ;;  %v2442_v55 = vld [vmem:[%s3737_s9 + $0xf8] sm:$0xff] }
0x14e8   : > { %v2942_v56 = vpack.c.bf16 %v2442_v55, %v2441_v54  ;;  %v3045_v55 = vmov 0  }
0x14e9   : > { %v1945_v59 = vadd.f32 %v1942_v57, %v3542_v53  ;;  %v2422_v53 = vld [vmem:[%s3735_s7 + $0x30] sm:$0xff]  ;;  %v2425_v57 = vld [vmem:[%s3736_s8 + $0x1] ss:$0 sm:$0xff] }
0x14ea   : > { %v2918_v6 = vpack.c.bf16 %v2423_v5, %v2422_v53  ;;  %2943 = vmatpush3.bf16.msra.mxu0 %v2942_v56 }
0x14eb   : > { %v1950_v60 = vsel %vm44_vm0, %v1945_v59, 0.0 }
0x14ec   : > { %1951 = vadd.xlane.f32.xlu1 %v1950_v60  ;;  %2919 = vmatpush3.bf16.msra.mxu1 %v2918_v6 }
0x14ed   : > { %2944 = vmatprep.subr.bf16.mxu1 %v3038_v27 }
0x1579   : > { %v1952_v61 = vpop.xlane.xlu1 %1951 }
0x157a   : > { %v1953_v62 = vmul.f32 0.03125, %v1952_v61 }
0x157c   : > { %v1954_v63 = vsub.f32 %v1945_v59, %v1953_v62 }
0x157e   : > { %v1955_v0 = vmul.f32 %v1954_v63, %v1954_v63 }
0x1580   : > { %v1956_v1 = vsel %vm44_vm0, %v1955_v0, 0.0 }
0x1581   : > { %1957 = vadd.xlane.f32.xlu0 %v1956_v1 }
0x160e   : > { %v1958_v21 = vpop.xlane.xlu0 %1957 }
0x160f   : > { %v1959_v45 = vmul.f32 0.03125, %v1958_v21 }
0x1611   : > { %v1960_v46 = vadd.f32 1e-05, %v1959_v45 }
0x1613   : > { %3009 = vrsqrt.f32 %v1960_v46 }
0x161d   : > { %v3010_v47 = vpop.eup %3009 }
0x161e   : > { %v1962_v49 = vmul.f32 %v3010_v47, %v1954_v63 }
0x1620   : > { %v1969_v51 = vmul.f32 %v2418_v48, %v1962_v49 }
0x1622   : > { %v1976_v52 = vadd.f32 %v2419_v50, %v1969_v51 }
0x1624   : > { %2774 = vmatmul.mubr.msk.f32.vlgmr.msra.gmra.mrb[26].mxu1 %vm66_vm1, %v1976_v52 }
0x1625   : > { %2819 = vmatprep.mubr.msk.f32.mxu1 %vm3039_vm2, %v3040_v29  ;;  %v2444_v29 = vld [vmem:[%s3738_s10 + $0x1] ss:$0 sm:$0xff]  ;;  %2946 = vmatpush3.bf16.msra.mxu1 %v2945_v7 }
0x1626   : > { %2947 = vmatprep.subr.bf16.mxu1 %v3038_v27  ;;  %v2271_v27 = vstv %s2270_s23 }
0x1627   : > { %vm3704_vm7 = vcmp.eq.s32.totalorder %v2271_v27, 1 }
0x1629   : > { %2949 = vmatpush3.bf16.msra.mxu1 %v2948_v32 }
0x16f7   : > { %v2059_v58 = vpop.f32.mrb[26].mxu1 }
0x16f8   : > { %v2060_v59 = vadd.f32 %v2425_v57, %v2059_v58  ;;  %v2775_v60 = vpop.f32.mrb[27].mxu1 }
0x16fa   : > { %v2063_v61 = vmax.f32 %v2060_v59, 0.0 }
0x16fc   : > { %2809 = vmatmul.mubr.f32.vlgmr.msra.gmra.mrb[12].mxu0 %v2063_v61 }
0x17cf   : > { %v2155_v62 = vpop.f32.mrb[12].mxu0 }
0x17d0   : > { %v2156_v63 = vadd.f32 %v2444_v29, %v2155_v62  ;;  %v2810_v0 = vpop.f32.mrb[13].mxu0 }
0x17d2   : > { %v2159_v1 = vadd.f32 %v2156_v63, %v1976_v52 }
0x17d4   : > { %v2164_v2 = vsel %vm44_vm0, %v2159_v1, 0.0 }
0x17d5   : > { %2165 = vadd.xlane.f32.xlu0 %v2164_v2 }
0x1862   : > { %v2166_v3 = vpop.xlane.xlu0 %2165 }
0x1863   : > { %v2167_v53 = vmul.f32 0.03125, %v2166_v3 }
0x1865   : > { %v2168_v4 = vsub.f32 %v2159_v1, %v2167_v53 }
0x1867   : > { %v2169_v5 = vmul.f32 %v2168_v4, %v2168_v4 }
0x1869   : > { %v2170_v6 = vsel %vm44_vm0, %v2169_v5, 0.0 }
0x186a   : > { %2171 = vadd.xlane.f32.xlu1 %v2170_v6 }
0x18f7   : > { %v2172_v8 = vpop.xlane.xlu1 %2171 }
0x18f8   : > { %v2173_v20 = vmul.f32 0.03125, %v2172_v8 }
0x18fa   : > { %v2174_v23 = vadd.f32 1e-05, %v2173_v20 }
0x18fc   : > { %3011 = vrsqrt.f32 %v2174_v23 }
0x1906   : > { %v3012_v26 = vpop.eup %3011 }
0x1907   : > { %v2176_v30 = vmul.f32 %v3012_v26, %v2168_v4 }
0x1909   : > { %v2183_v33 = vmul.f32 %v2447_v28, %v2176_v30 }
0x190b   : > { %v2190_v34 = vadd.f32 %v2448_v31, %v2183_v33 }
0x190d   : > { %2820 = vmatmul.mubr.msk.f32.vlgmr.msra.gmra.mrb[28].mxu1 %vm66_vm1, %v2190_v34 }
0x19e0   : > { %v2266_v35 = vpop.f32.mrb[28].mxu1 }
0x19e1   : > { %v2267_v37 = vadd.f32 %v3214_v19, %v2266_v35  ;;  %v2821_v38 = vpop.f32.mrb[29].mxu1 }
0x19e3   : > { %v2277_v39 = vsel %vm44_vm0, %v2267_v37, -inf  ;;  %v2273_v40 = vsel %vm3704_vm7, %v2267_v37, 0.0 }
0x19e4   : > { %2278 = vmax.xlane.f32.xlu0 %v2277_v39  ;;  %2276 = vst.msk [vmem:[%s2275_s26] sm:$0x3] %vm44_vm0, %v2273_v40 }
0x1a71   : > { %v2279_v41 = vpop.xlane.xlu0 %2278 }
0x1a72   : > { %vm2280_vm8 = vcmp.eq.f32.partialorder %v2267_v37, %v2279_v41 }
0x1a73   : > { %v2281_v42 = vsel %vm2280_vm8, %v3184_v13, 32 }
0x1a74   : > { %v2282_v43 = vsel %vm44_vm0, %v2281_v42, 2147483647 }
0x1a75   : > { %v2284_v44 = vshra.s32 %v2282_v43, 16  ;;  %v2283_v45 = vand.u32 65535, %v2282_v43 }
0x1a77   : > { %v2286_v21 = vcvt.s32.f32 %v2284_v44  ;;  %v2285_v47 = vcvt.s32.f32 %v2283_v45 }
0x1a79   : > { %2287 = vmin.xlane.f32.xlu1 %v2286_v21 }
0x1b06   : > { %v2288_v46 = vpop.xlane.xlu1 %2287 }
0x1b07   : > { %vm2289_vm9 = vcmp.eq.f32.partialorder %v2286_v21, %v2288_v46  ;;  %v2294_v49 = vcvt.f32.s32 %v2288_v46 }
0x1b08   : > { %v2290_v48 = vsel %vm2289_vm9, %v2285_v47, inf }
0x1b09   : > { %2291 = vmin.xlane.f32.xlu0 %v2290_v48  ;;  %v2295_v51 = vshll.u32 %v2294_v49, 16 }
0x1b96   : > { %v2292_v50 = vpop.xlane.xlu0 %2291 }
0x1b97   : > { %v2293_v52 = vcvt.f32.s32 %v2292_v50 }
0x1b99   : > { %v2296_v54 = vadd.s32 %v2295_v51, %v2293_v52 }
0x1b9b   : > { %vm2298_vm11 = vcmp.eq.s32.totalorder %v2296_v54, 2  ;;  %v2297_v25 = vsel %vm3704_vm7, %v2296_v54, %v3031_v25  }
0x1b9c   : > { %v2299_v56 = vsel %vm2298_vm11, 1, %v3045_v55 }
0x1b9d   : > { %v2301_v57 = vsel %vm2300_vm10, %v2299_v56, 0 }
0x1b9e   : > { %v2302_v58 = vrot.slane %v2301_v57, 4 }
0x1ba0   : > { %v2303_v59 = vadd.s32 %v2302_v58, %v2301_v57 }
0x1ba2   : > { %v2304_v60 = vrot.slane %v2303_v59, 2 }
0x1ba4   : > { %v2305_v61 = vadd.s32 %v2304_v60, %v2303_v59 }
0x1ba6   : > { %v2306_v29 = vrot.slane %v2305_v61, 1 }
0x1ba8   : > { %v2307_v62 = vadd.s32 %v2306_v29, %v2305_v61 }
0x1baa   : > { %2950 = vpush %v2307_v62 }
0x1bda   :  { %163 = sbr.rel (!%p161_p3) target bundleno = 226 (0xe2), region = 109 }
0x1bdb   : > { %s2951_s27 = spop %2950 }
0x1bdc   : > { %p2309_p1 = scmp.eq.s32.totalorder %s2951_s27, 2 }
0x1bde   : > { %p2310_p2 = pnand %p2309_p1, %p167_p0 }
0x1be0   : > { %s3748_s19 = smov (!%p2310_p2, %s3027_s19), 1 }

</bundles_post_ra>
